<compile_context>
chip_gen: v6e
topology: v6e:2x2x1
jax: 0.10.0
libtpu: 0.0.40
codegen_flags: <defaults>
</compile_context>

<pallas_src>
import jax
import jax.numpy as jnp
from jax.experimental import pallas as pl
from jax.experimental.pallas import tpu as pltpu

C_IN   = 5       # num_input_features
C_OUT  = 32      # num_output_filters
C_PAD  = 128     # lane-dense slab width: [raw 5 | MLP 32 | zero padding]
N_PTS  = 256     # points per sample (static padded size)
BATCH  = 2
BN_EPS = 1e-3    # norm_cfg eps = 0.001

PC_RANGE   = jnp.array([-1.0, -1.0, -1.0, 1.0, 1.0, 1.0], jnp.float32)
VOXEL_SIZE = jnp.array([0.25, 0.25, 0.25], jnp.float32)
SENTINEL   = 2 ** 20   # out-of-range voxel coordinate for dropped points


# ---------------------------------------------------------------------------
# shared math helpers (used identically inside the kernel and in the reference)
# ---------------------------------------------------------------------------
def _bn(x, g, b):
    """BatchNorm1d with batch statistics (PyTorch training-mode semantics)."""
    mean = jnp.mean(x, axis=0, keepdims=True)
    var = jnp.mean(jnp.square(x - mean), axis=0, keepdims=True)
    return (x - mean) * jax.lax.rsqrt(var + BN_EPS) * g + b


def _bf16_dot(a, w):
    """MXU matmul: bf16 operands, f32 accumulation (cast right at the dot)."""
    return jnp.dot(a.astype(jnp.bfloat16), w.astype(jnp.bfloat16),
                   preferred_element_type=jnp.float32)


# ---------------------------------------------------------------------------
# Fused Pallas kernel:
#   PPmodel MLP  (BN -> Linear -> BN -> ReLU -> ... -> Linear)
#   + in-kernel pt_feat = [raw | MLP feat] slab construction
#   + scatter_mean over voxels as a one-hot (V,N) @ (N,128) MXU matmul
# ---------------------------------------------------------------------------
def fused_ppmodel_scatter_kernel(
        x_ref, inv_ref,
        g0_ref, b0_ref,
        w1_ref, b1_ref, g1_ref, bb1_ref,
        w2_ref, b2_ref, g2_ref, bb2_ref,
        w3_ref, b3_ref, g3_ref, bb3_ref,
        w4_ref, b4_ref,
        ptfeat_ref, voxel_ref):
    xp = x_ref[...]                                   # (N, 128) f32, raw in lanes 0:5
    n = xp.shape[0]

    # ---- PPmodel MLP (f32 BN / elementwise, bf16 MXU dots) ----
    # Padded lanes of xp are constant (zero), so BN normalizes them to exactly 0
    # and the zero-padded rows of w1 keep them out of the first matmul.
    h = _bn(xp, g0_ref[...], b0_ref[...])             # (N, 128)
    h = _bf16_dot(h, w1_ref[...]) + b1_ref[...]       # (N, 64)
    h = jnp.maximum(_bn(h, g1_ref[...], bb1_ref[...]), 0.0)
    h = _bf16_dot(h, w2_ref[...]) + b2_ref[...]       # (N, 128)
    h = jnp.maximum(_bn(h, g2_ref[...], bb2_ref[...]), 0.0)
    h = _bf16_dot(h, w3_ref[...]) + b3_ref[...]       # (N, 256)
    h = jnp.maximum(_bn(h, g3_ref[...], bb3_ref[...]), 0.0)
    # w4/b4 are zero-padded to 128 output lanes with the real weights in lanes
    # 5:37, so this matmul already places the MLP features at their slab offset.
    featp = _bf16_dot(h, w4_ref[...]) + b4_ref[...]   # (N, 128), feat in lanes 5:37

    # ---- lane-dense pt_feat slab: [raw(0:5) | feat(5:37) | zeros] ----
    slab = xp + featp                                 # no lane shifts needed
    ptfeat_ref[...] = slab                            # full-width unmasked store

    # ---- scatter_mean on the MXU: one-hot (V, N) @ slab (N, 128) ----
    inv = inv_ref[...]                                          # (1, N) int32
    vox_ids = jax.lax.broadcasted_iota(jnp.int32, (n, n), 0)    # (V, N), V == N
    onehot = (vox_ids == inv).astype(jnp.float32)               # canonical (M,K)
    sums = jnp.dot(onehot, slab, preferred_element_type=jnp.float32)   # (V, 128)
    cnt = jnp.sum(onehot, axis=1, keepdims=True)                # points per voxel
    voxel_ref[...] = sums * pl.reciprocal(jnp.maximum(cnt, 1.0), approx=True)


def prepare_kernel_params(params):
    """Pad/cast the PPmodel parameters into the layout the fused kernel expects."""
    (g0, b0, w1, b1, g1, bb1, w2, b2, g2, bb2,
     w3, b3, g3, bb3, w4, b4) = params
    f32 = jnp.float32
    g0p = jnp.zeros((1, C_PAD), f32).at[:, :C_IN].set(g0)
    b0p = jnp.zeros((1, C_PAD), f32).at[:, :C_IN].set(b0)
    w1p = jnp.zeros((C_PAD, 64), f32).at[:C_IN, :].set(w1).astype(jnp.bfloat16)
    w4p = (jnp.zeros((256, C_PAD), f32)
           .at[:, C_IN:C_IN + C_OUT].set(w4).astype(jnp.bfloat16))
    b4p = jnp.zeros((1, C_PAD), f32).at[:, C_IN:C_IN + C_OUT].set(b4)
    return (g0p, b0p,
            w1p, b1, g1, bb1,
            w2.astype(jnp.bfloat16), b2, g2, bb2,
            w3.astype(jnp.bfloat16), b3, g3, bb3,
            w4p, b4p)


def run_fused(pts, inverse, kparams):
    """Single pallas_call for all samples: pts [B,N,5], inverse [B,N] int."""
    B, N, _ = pts.shape
    x_pad = jnp.zeros((B, N, C_PAD), pts.dtype).at[:, :, :C_IN].set(pts)
    inv3 = inverse.reshape(B, 1, N).astype(jnp.int32)

    # advisory cost estimate so XLA overlaps the surrounding unique/argsort glue
    flops = (2 * B * N * (C_PAD * 64 + 64 * 128 + 128 * 256 + 256 * C_PAD)
             + 2 * B * N * N * C_PAD)
    param_bytes = sum(int(p.size) * p.dtype.itemsize for p in kparams)
    io_bytes = int(x_pad.size) * 4 + int(inv3.size) * 4 + 2 * B * N * C_PAD * 4
    cost = pl.CostEstimate(flops=flops, transcendentals=B * (N + 1024),
                           bytes_accessed=param_bytes + io_bytes)

    in_specs = ([pl.BlockSpec((None, N, C_PAD), lambda b: (b, 0, 0)),
                 pl.BlockSpec((None, 1, N), lambda b: (b, 0, 0))] +
                # weights / BN params: same block for every grid step -> stay
                # resident in VMEM across the whole batch.
                [pl.BlockSpec(p.shape, lambda b: (0, 0)) for p in kparams])
    out_specs = (pl.BlockSpec((None, N, C_PAD), lambda b: (b, 0, 0)),
                 pl.BlockSpec((None, N, C_PAD), lambda b: (b, 0, 0)))

    return pl.pallas_call(
        fused_ppmodel_scatter_kernel,
        grid=(B,),
        in_specs=in_specs,
        out_specs=out_specs,
        out_shape=(jax.ShapeDtypeStruct((B, N, C_PAD), jnp.float32),
                   jax.ShapeDtypeStruct((B, N, C_PAD), jnp.float32)),
        compiler_params=pltpu.CompilerParams(
            dimension_semantics=("parallel",)),   # 2 TCs on v7x; loop on v5e/v6e
        cost_estimate=cost,
    )(x_pad, inv3, *kparams)


# ---------------------------------------------------------------------------
# pure-JAX reference for the PPmodel MLP (original, un-padded parameters)
# ---------------------------------------------------------------------------
def ppmodel_ref(x, params):
    (g0, b0, w1, b1, g1, bb1, w2, b2, g2, bb2,
     w3, b3, g3, bb3, w4, b4) = params
    h = _bn(x, g0, b0)
    h = jnp.maximum(_bn(_bf16_dot(h, w1) + b1, g1, bb1), 0.0)
    h = jnp.maximum(_bn(_bf16_dot(h, w2) + b2, g2, bb2), 0.0)
    h = jnp.maximum(_bn(_bf16_dot(h, w3) + b3, g3, bb3), 0.0)
    return _bf16_dot(h, w4) + b4


# ---------------------------------------------------------------------------
# voxelization_pp bookkeeping (XLA glue; static shapes + validity masks)
# ---------------------------------------------------------------------------
def voxel_bookkeeping(xyz, pc_range, voxel_size):
    n = xyz.shape[0]
    keep = ((xyz[:, 0] >= pc_range[0]) & (xyz[:, 0] <= pc_range[3]) &
            (xyz[:, 1] >= pc_range[1]) & (xyz[:, 1] <= pc_range[4]) &
            (xyz[:, 2] >= pc_range[2]) & (xyz[:, 2] <= pc_range[5]))
    rev = jnp.array([2, 1, 0])
    # TODO(synk): torch uses int64; int32 is used here (TPU-friendly, values tiny).
    pt_coor = ((xyz[:, ::-1] - pc_range[rev]) / voxel_size[rev]).astype(jnp.int32)
    coords_masked = jnp.where(keep[:, None], pt_coor, SENTINEL)
    uc, inv = jnp.unique(coords_masked, axis=0, return_inverse=True,
                         size=n, fill_value=SENTINEL)
    inv = inv.reshape(-1)
    vvalid = uc[:, 0] != SENTINEL           # real voxel rows (sorted, torch order)
    return keep, pt_coor, jnp.where(vvalid[:, None], uc, 0), inv, vvalid


# ---------------------------------------------------------------------------
# DynamicVoxelPPEncoder.forward (virtual=False)
# ---------------------------------------------------------------------------
def dynamic_voxel_pp_encoder_forward(points, base_index_mask, params,
                                     pc_range=PC_RANGE, voxel_size=VOXEL_SIZE):
    pts = jnp.stack(list(points), axis=0) if isinstance(points, (list, tuple)) \
        else points                                              # [B, N, C_IN]
    B, N, _ = pts.shape
    shape_np = jnp.round(
        (pc_range[3:] - pc_range[:3]) / voxel_size).astype(jnp.int32)

    keeps, pt_coords, uniques, inverses, vvalids = [], [], [], [], []
    for b in range(B):
        keep, pt_coor, uc, inv, vvalid = voxel_bookkeeping(
            pts[b, :, :3], pc_range, voxel_size)
        keeps.append(keep); pt_coords.append(pt_coor); uniques.append(uc)
        inverses.append(inv); vvalids.append(vvalid)
    inverse = jnp.stack(inverses, axis=0)                        # [B, N]

    # ---- single fused Pallas call: MLP + concat + scatter_mean for all samples
    kparams = prepare_kernel_params(params)
    ptfeat_slab, vox_slab = run_fused(pts, inverse, kparams)
    D = C_IN + C_OUT

    voxels, coors = [], []
    point_feats, pf_valids, point_coors, new_masks = [], [], [], []
    for b in range(B):
        voxels.append(jnp.where(vvalids[b][:, None], vox_slab[b, :, :D], 0.0))
        coors.append(uniques[b])

        pt_feat = ptfeat_slab[b, :, :D]                          # [N, 37]
        bim = base_index_mask[b]
        # invariant (same as the torch code): exactly N non-(-1) entries per mask
        pos = jnp.nonzero(bim != -1, size=N)[0]
        old_vals = bim[pos]
        new_vals = keeps[b].astype(bim.dtype) & old_vals
        new_masks.append(bim.at[pos].set(new_vals))

        # boolean-mask row selection -> compact valid rows to the front (stable),
        # pad the rest with zeros; torch returns only the valid rows.
        sel = new_vals.astype(bool)
        order = jnp.argsort(jnp.logical_not(sel), stable=True)
        sel_sorted = sel[order]
        point_feats.append(jnp.where(sel_sorted[:, None], pt_feat[order], 0.0))
        point_coors.append(jnp.where(sel_sorted[:, None], pt_coords[b][order], 0))
        pf_valids.append(sel_sorted)

    coors_batch, points_feat_batch, points_coor_batch = [], [], []
    for b in range(B):
        coors_batch.append(jnp.concatenate(
            [jnp.full((N, 1), b, coors[b].dtype), coors[b]], axis=1))
        points_feat_batch.append(jnp.concatenate(
            [jnp.full((N, 1), float(b), point_feats[b].dtype),
             point_feats[b]], axis=1))
        points_coor_batch.append(jnp.concatenate(
            [jnp.full((N, 1), b, point_coors[b].dtype),
             point_coors[b]], axis=1))

    return (jnp.concatenate(voxels, axis=0),
            jnp.concatenate(coors_batch, axis=0),
            jnp.concatenate(points_feat_batch, axis=0),
            jnp.concatenate(points_coor_batch, axis=0),
            new_masks,
            shape_np,
            # extra outputs: validity masks for the statically padded rows
            jnp.concatenate(vvalids, axis=0),
            jnp.concatenate(pf_valids, axis=0))


# ---------------------------------------------------------------------------
# deterministic parameter init (synthetic; no checkpoint load)
# ---------------------------------------------------------------------------
def init_ppmodel_params(key):
    dims = [(C_IN, 64), (64, 128), (128, 256), (256, C_OUT)]
    params = []
    k = key

    def nk():
        nonlocal k
        k, sub = jax.random.split(k)
        return sub

    params.append(1.0 + 0.1 * jax.random.normal(nk(), (1, C_IN), jnp.float32))
    params.append(0.1 * jax.random.normal(nk(), (1, C_IN), jnp.float32))
    for li, (din, dout) in enumerate(dims):
        params.append(jax.random.normal(nk(), (din, dout), jnp.float32)
                      / jnp.sqrt(float(din)))
        params.append(0.1 * jax.random.normal(nk(), (1, dout), jnp.float32))
        if li < 3:
            params.append(1.0 + 0.1 * jax.random.normal(nk(), (1, dout),
                                                        jnp.float32))
            params.append(0.1 * jax.random.normal(nk(), (1, dout), jnp.float32))
    return tuple(params)


if __name__ == "__main__":
    key = jax.random.PRNGKey(0)
    kp, kx, km = jax.random.split(key, 3)
    params = init_ppmodel_params(kp)

    points_list, mask_list = [], []
    for i in range(BATCH):
        kx, k1, k2 = jax.random.split(kx, 3)
        xyz = jax.random.uniform(k1, (N_PTS, 3), jnp.float32, -1.2, 1.2)
        extra = jax.random.uniform(k2, (N_PTS, C_IN - 3), jnp.float32, 0.0, 1.0)
        points_list.append(jnp.concatenate([xyz, extra], axis=1))
        km, k3 = jax.random.split(km)
        m = jax.random.bernoulli(k3, 0.7, (N_PTS + 4,)).astype(jnp.int32)
        m = m.at[jnp.array([0, 7, 19, 100])].set(-1)   # exactly N_PTS non -1
        mask_list.append(m)

    # -------- correctness checks against pure-JAX references --------
    pts = jnp.stack(points_list, axis=0)
    inverses = []
    for b in range(BATCH):
        _, _, _, inv, _ = voxel_bookkeeping(pts[b, :, :3], PC_RANGE, VOXEL_SIZE)
        inverses.append(inv)
    inverse = jnp.stack(inverses, axis=0)
    kparams = prepare_kernel_params(params)
    ptfeat_slab, vox_slab = run_fused(pts, inverse, kparams)
    D = C_IN + C_OUT

    # 1) PPmodel MLP + in-kernel concat (bf16 MXU operands, f32 accumulation/BN)
    for b in range(BATCH):
        ref_pf = jnp.concatenate([pts[b], ppmodel_ref(pts[b], params)], axis=1)
        got_pf = ptfeat_slab[b, :, :D]
        err = jnp.max(jnp.abs(ref_pf - got_pf))
        assert jnp.allclose(ref_pf, got_pf, rtol=1e-4, atol=1e-4), \
            f"PPmodel mismatch (max abs err = {err})"

    # 2) scatter_mean vs exact segment_sum on the kernel's own pt_feat slab.
    #    Looser tolerance: kernel uses an approximate EUP reciprocal and MXU
    #    matmul accumulation for the sums.
    for b in range(BATCH):
        slab = ptfeat_slab[b]
        seg_sum = jax.ops.segment_sum(slab, inverse[b], num_segments=N_PTS)
        seg_cnt = jax.ops.segment_sum(jnp.ones((N_PTS,), jnp.float32),
                                      inverse[b], num_segments=N_PTS)
        ref_mean = seg_sum / jnp.maximum(seg_cnt, 1.0)[:, None]
        assert jnp.allclose(ref_mean[:, :D], vox_slab[b, :, :D],
                            rtol=1e-2, atol=1e-2), "scatter_mean mismatch"

    # -------- full forward (jitted so the XLA glue overlaps the kernel) --------
    fwd = jax.jit(dynamic_voxel_pp_encoder_forward)
    out = fwd(tuple(points_list), tuple(mask_list), params)
    out = jax.block_until_ready(out)
    print("KERNEL_OK")
</pallas_src>

<mosaic_0001>
module attributes {stable_mosaic.version = 11 : i64} {
  func.func @fused_ppmodel_scatter_kernel(%arg0: i32, %arg1: memref<1x256x128xf32, #tpu.memory_space<vmem>>, %arg2: memref<1x1x256xi32, #tpu.memory_space<vmem>>, %arg3: memref<1x128xf32, #tpu.memory_space<vmem>>, %arg4: memref<1x128xf32, #tpu.memory_space<vmem>>, %arg5: memref<128x64xbf16, #tpu.memory_space<vmem>>, %arg6: memref<1x64xf32, #tpu.memory_space<vmem>>, %arg7: memref<1x64xf32, #tpu.memory_space<vmem>>, %arg8: memref<1x64xf32, #tpu.memory_space<vmem>>, %arg9: memref<64x128xbf16, #tpu.memory_space<vmem>>, %arg10: memref<1x128xf32, #tpu.memory_space<vmem>>, %arg11: memref<1x128xf32, #tpu.memory_space<vmem>>, %arg12: memref<1x128xf32, #tpu.memory_space<vmem>>, %arg13: memref<128x256xbf16, #tpu.memory_space<vmem>>, %arg14: memref<1x256xf32, #tpu.memory_space<vmem>>, %arg15: memref<1x256xf32, #tpu.memory_space<vmem>>, %arg16: memref<1x256xf32, #tpu.memory_space<vmem>>, %arg17: memref<256x128xbf16, #tpu.memory_space<vmem>>, %arg18: memref<1x128xf32, #tpu.memory_space<vmem>>, %arg19: memref<1x256x128xf32, #tpu.memory_space<vmem>>, %arg20: memref<1x256x128xf32, #tpu.memory_space<vmem>>) attributes {dimension_semantics = [#tpu.dimension_semantics<parallel>], iteration_bounds = array<i64: 2>, scalar_prefetch = 0 : i64, scratch_operands = 0 : i64, tpu.core_type = #tpu.core_type<tc>, window_params = [{transform_indices = @transform_0, window_bounds = array<i64: 1, 256, 128>}, {transform_indices = @transform_1, window_bounds = array<i64: 1, 1, 256>}, {pipeline_mode = #tpu.pipeline_mode<synchronous>, transform_indices = @transform_2, window_bounds = array<i64: 1, 128>}, {pipeline_mode = #tpu.pipeline_mode<synchronous>, transform_indices = @transform_3, window_bounds = array<i64: 1, 128>}, {pipeline_mode = #tpu.pipeline_mode<synchronous>, transform_indices = @transform_4, window_bounds = array<i64: 128, 64>}, {pipeline_mode = #tpu.pipeline_mode<synchronous>, transform_indices = @transform_5, window_bounds = array<i64: 1, 64>}, {pipeline_mode = #tpu.pipeline_mode<synchronous>, transform_indices = @transform_6, window_bounds = array<i64: 1, 64>}, {pipeline_mode = #tpu.pipeline_mode<synchronous>, transform_indices = @transform_7, window_bounds = array<i64: 1, 64>}, {pipeline_mode = #tpu.pipeline_mode<synchronous>, transform_indices = @transform_8, window_bounds = array<i64: 64, 128>}, {pipeline_mode = #tpu.pipeline_mode<synchronous>, transform_indices = @transform_9, window_bounds = array<i64: 1, 128>}, {pipeline_mode = #tpu.pipeline_mode<synchronous>, transform_indices = @transform_10, window_bounds = array<i64: 1, 128>}, {pipeline_mode = #tpu.pipeline_mode<synchronous>, transform_indices = @transform_11, window_bounds = array<i64: 1, 128>}, {pipeline_mode = #tpu.pipeline_mode<synchronous>, transform_indices = @transform_12, window_bounds = array<i64: 128, 256>}, {pipeline_mode = #tpu.pipeline_mode<synchronous>, transform_indices = @transform_13, window_bounds = array<i64: 1, 256>}, {pipeline_mode = #tpu.pipeline_mode<synchronous>, transform_indices = @transform_14, window_bounds = array<i64: 1, 256>}, {pipeline_mode = #tpu.pipeline_mode<synchronous>, transform_indices = @transform_15, window_bounds = array<i64: 1, 256>}, {pipeline_mode = #tpu.pipeline_mode<synchronous>, transform_indices = @transform_16, window_bounds = array<i64: 256, 128>}, {pipeline_mode = #tpu.pipeline_mode<synchronous>, transform_indices = @transform_17, window_bounds = array<i64: 1, 128>}, {transform_indices = @transform_18, window_bounds = array<i64: 1, 256, 128>}, {transform_indices = @transform_19, window_bounds = array<i64: 1, 256, 128>}]} {
    %c0 = arith.constant 0 : index
    %c0_0 = arith.constant 0 : index
    %c0_1 = arith.constant 0 : index
    %0 = vector.load %arg1[%c0, %c0_0, %c0_1] : memref<1x256x128xf32, #tpu.memory_space<vmem>>, vector<1x256x128xf32>
    %1 = vector.shape_cast %0 : vector<1x256x128xf32> to vector<256x128xf32>
    %c0_2 = arith.constant 0 : index
    %c0_3 = arith.constant 0 : index
    %2 = vector.load %arg3[%c0_2, %c0_3] : memref<1x128xf32, #tpu.memory_space<vmem>>, vector<1x128xf32>
    %c0_4 = arith.constant 0 : index
    %c0_5 = arith.constant 0 : index
    %3 = vector.load %arg4[%c0_4, %c0_5] : memref<1x128xf32, #tpu.memory_space<vmem>>, vector<1x128xf32>
    %cst = arith.constant dense<0.000000e+00> : vector<128xf32>
    %4 = vector.multi_reduction <add>, %1, %cst [0] : vector<256x128xf32> to vector<128xf32>
    %5 = vector.shape_cast %4 : vector<128xf32> to vector<1x128xf32>
    %cst_6 = arith.constant 2.560000e+02 : f32
    %6 = vector.broadcast %cst_6 : f32 to vector<1x128xf32>
    %7 = arith.divf %5, %6 : vector<1x128xf32>
    %8 = vector.broadcast %7 : vector<1x128xf32> to vector<256x128xf32>
    %9 = arith.subf %1, %8 : vector<256x128xf32>
    %10 = arith.mulf %9, %9 : vector<256x128xf32>
    %cst_7 = arith.constant dense<0.000000e+00> : vector<128xf32>
    %11 = vector.multi_reduction <add>, %10, %cst_7 [0] : vector<256x128xf32> to vector<128xf32>
    %12 = vector.shape_cast %11 : vector<128xf32> to vector<1x128xf32>
    %cst_8 = arith.constant 2.560000e+02 : f32
    %13 = vector.broadcast %cst_8 : f32 to vector<1x128xf32>
    %14 = arith.divf %12, %13 : vector<1x128xf32>
    %15 = vector.broadcast %7 : vector<1x128xf32> to vector<256x128xf32>
    %16 = arith.subf %1, %15 : vector<256x128xf32>
    %cst_9 = arith.constant 1.000000e-03 : f32
    %17 = vector.broadcast %cst_9 : f32 to vector<1x128xf32>
    %18 = arith.addf %14, %17 : vector<1x128xf32>
    %19 = math.rsqrt %18 : vector<1x128xf32>
    %20 = vector.broadcast %19 : vector<1x128xf32> to vector<256x128xf32>
    %21 = arith.mulf %16, %20 : vector<256x128xf32>
    %22 = vector.broadcast %2 : vector<1x128xf32> to vector<256x128xf32>
    %23 = arith.mulf %21, %22 : vector<256x128xf32>
    %24 = vector.broadcast %3 : vector<1x128xf32> to vector<256x128xf32>
    %25 = arith.addf %23, %24 : vector<256x128xf32>
    %c0_10 = arith.constant 0 : index
    %c0_11 = arith.constant 0 : index
    %26 = vector.load %arg5[%c0_10, %c0_11] : memref<128x64xbf16, #tpu.memory_space<vmem>>, vector<128x64xbf16>
    %27 = arith.truncf %25 : vector<256x128xf32> to vector<256x128xbf16>
    %cst_12 = arith.constant dense<0.000000e+00> : vector<256x64xf32>
    %28 = tpu.matmul %27, %26, %cst_12 {dimension_numbers = #tpu.dot_dimension_numbers<[1], [0], [0], [1], [0, 0, 1, 1], [], []>} : vector<256x128xbf16>, vector<128x64xbf16>, vector<256x64xf32> -> vector<256x64xf32>
    %c0_13 = arith.constant 0 : index
    %c0_14 = arith.constant 0 : index
    %29 = vector.load %arg6[%c0_13, %c0_14] : memref<1x64xf32, #tpu.memory_space<vmem>>, vector<1x64xf32>
    %30 = vector.broadcast %29 : vector<1x64xf32> to vector<256x64xf32>
    %31 = arith.addf %28, %30 : vector<256x64xf32>
    %c0_15 = arith.constant 0 : index
    %c0_16 = arith.constant 0 : index
    %32 = vector.load %arg7[%c0_15, %c0_16] : memref<1x64xf32, #tpu.memory_space<vmem>>, vector<1x64xf32>
    %c0_17 = arith.constant 0 : index
    %c0_18 = arith.constant 0 : index
    %33 = vector.load %arg8[%c0_17, %c0_18] : memref<1x64xf32, #tpu.memory_space<vmem>>, vector<1x64xf32>
    %cst_19 = arith.constant dense<0.000000e+00> : vector<64xf32>
    %34 = vector.multi_reduction <add>, %31, %cst_19 [0] : vector<256x64xf32> to vector<64xf32>
    %35 = vector.shape_cast %34 : vector<64xf32> to vector<1x64xf32>
    %cst_20 = arith.constant 2.560000e+02 : f32
    %36 = vector.broadcast %cst_20 : f32 to vector<1x64xf32>
    %37 = arith.divf %35, %36 : vector<1x64xf32>
    %38 = vector.broadcast %37 : vector<1x64xf32> to vector<256x64xf32>
    %39 = arith.subf %31, %38 : vector<256x64xf32>
    %40 = arith.mulf %39, %39 : vector<256x64xf32>
    %cst_21 = arith.constant dense<0.000000e+00> : vector<64xf32>
    %41 = vector.multi_reduction <add>, %40, %cst_21 [0] : vector<256x64xf32> to vector<64xf32>
    %42 = vector.shape_cast %41 : vector<64xf32> to vector<1x64xf32>
    %cst_22 = arith.constant 2.560000e+02 : f32
    %43 = vector.broadcast %cst_22 : f32 to vector<1x64xf32>
    %44 = arith.divf %42, %43 : vector<1x64xf32>
    %45 = vector.broadcast %37 : vector<1x64xf32> to vector<256x64xf32>
    %46 = arith.subf %31, %45 : vector<256x64xf32>
    %cst_23 = arith.constant 1.000000e-03 : f32
    %47 = vector.broadcast %cst_23 : f32 to vector<1x64xf32>
    %48 = arith.addf %44, %47 : vector<1x64xf32>
    %49 = math.rsqrt %48 : vector<1x64xf32>
    %50 = vector.broadcast %49 : vector<1x64xf32> to vector<256x64xf32>
    %51 = arith.mulf %46, %50 : vector<256x64xf32>
    %52 = vector.broadcast %32 : vector<1x64xf32> to vector<256x64xf32>
    %53 = arith.mulf %51, %52 : vector<256x64xf32>
    %54 = vector.broadcast %33 : vector<1x64xf32> to vector<256x64xf32>
    %55 = arith.addf %53, %54 : vector<256x64xf32>
    %cst_24 = arith.constant 0.000000e+00 : f32
    %56 = vector.broadcast %cst_24 : f32 to vector<256x64xf32>
    %57 = arith.maximumf %55, %56 : vector<256x64xf32>
    %c0_25 = arith.constant 0 : index
    %c0_26 = arith.constant 0 : index
    %58 = vector.load %arg9[%c0_25, %c0_26] : memref<64x128xbf16, #tpu.memory_space<vmem>>, vector<64x128xbf16>
    %59 = arith.truncf %57 : vector<256x64xf32> to vector<256x64xbf16>
    %cst_27 = arith.constant dense<0.000000e+00> : vector<256x128xf32>
    %60 = tpu.matmul %59, %58, %cst_27 {dimension_numbers = #tpu.dot_dimension_numbers<[1], [0], [0], [1], [0, 0, 1, 1], [], []>} : vector<256x64xbf16>, vector<64x128xbf16>, vector<256x128xf32> -> vector<256x128xf32>
    %c0_28 = arith.constant 0 : index
    %c0_29 = arith.constant 0 : index
    %61 = vector.load %arg10[%c0_28, %c0_29] : memref<1x128xf32, #tpu.memory_space<vmem>>, vector<1x128xf32>
    %62 = vector.broadcast %61 : vector<1x128xf32> to vector<256x128xf32>
    %63 = arith.addf %60, %62 : vector<256x128xf32>
    %c0_30 = arith.constant 0 : index
    %c0_31 = arith.constant 0 : index
    %64 = vector.load %arg11[%c0_30, %c0_31] : memref<1x128xf32, #tpu.memory_space<vmem>>, vector<1x128xf32>
    %c0_32 = arith.constant 0 : index
    %c0_33 = arith.constant 0 : index
    %65 = vector.load %arg12[%c0_32, %c0_33] : memref<1x128xf32, #tpu.memory_space<vmem>>, vector<1x128xf32>
    %cst_34 = arith.constant dense<0.000000e+00> : vector<128xf32>
    %66 = vector.multi_reduction <add>, %63, %cst_34 [0] : vector<256x128xf32> to vector<128xf32>
    %67 = vector.shape_cast %66 : vector<128xf32> to vector<1x128xf32>
    %cst_35 = arith.constant 2.560000e+02 : f32
    %68 = vector.broadcast %cst_35 : f32 to vector<1x128xf32>
    %69 = arith.divf %67, %68 : vector<1x128xf32>
    %70 = vector.broadcast %69 : vector<1x128xf32> to vector<256x128xf32>
    %71 = arith.subf %63, %70 : vector<256x128xf32>
    %72 = arith.mulf %71, %71 : vector<256x128xf32>
    %cst_36 = arith.constant dense<0.000000e+00> : vector<128xf32>
    %73 = vector.multi_reduction <add>, %72, %cst_36 [0] : vector<256x128xf32> to vector<128xf32>
    %74 = vector.shape_cast %73 : vector<128xf32> to vector<1x128xf32>
    %cst_37 = arith.constant 2.560000e+02 : f32
    %75 = vector.broadcast %cst_37 : f32 to vector<1x128xf32>
    %76 = arith.divf %74, %75 : vector<1x128xf32>
    %77 = vector.broadcast %69 : vector<1x128xf32> to vector<256x128xf32>
    %78 = arith.subf %63, %77 : vector<256x128xf32>
    %cst_38 = arith.constant 1.000000e-03 : f32
    %79 = vector.broadcast %cst_38 : f32 to vector<1x128xf32>
    %80 = arith.addf %76, %79 : vector<1x128xf32>
    %81 = math.rsqrt %80 : vector<1x128xf32>
    %82 = vector.broadcast %81 : vector<1x128xf32> to vector<256x128xf32>
    %83 = arith.mulf %78, %82 : vector<256x128xf32>
    %84 = vector.broadcast %64 : vector<1x128xf32> to vector<256x128xf32>
    %85 = arith.mulf %83, %84 : vector<256x128xf32>
    %86 = vector.broadcast %65 : vector<1x128xf32> to vector<256x128xf32>
    %87 = arith.addf %85, %86 : vector<256x128xf32>
    %cst_39 = arith.constant 0.000000e+00 : f32
    %88 = vector.broadcast %cst_39 : f32 to vector<256x128xf32>
    %89 = arith.maximumf %87, %88 : vector<256x128xf32>
    %c0_40 = arith.constant 0 : index
    %c0_41 = arith.constant 0 : index
    %90 = vector.load %arg13[%c0_40, %c0_41] : memref<128x256xbf16, #tpu.memory_space<vmem>>, vector<128x256xbf16>
    %91 = arith.truncf %89 : vector<256x128xf32> to vector<256x128xbf16>
    %cst_42 = arith.constant dense<0.000000e+00> : vector<256x256xf32>
    %92 = tpu.matmul %91, %90, %cst_42 {dimension_numbers = #tpu.dot_dimension_numbers<[1], [0], [0], [1], [0, 0, 1, 1], [], []>} : vector<256x128xbf16>, vector<128x256xbf16>, vector<256x256xf32> -> vector<256x256xf32>
    %c0_43 = arith.constant 0 : index
    %c0_44 = arith.constant 0 : index
    %93 = vector.load %arg14[%c0_43, %c0_44] : memref<1x256xf32, #tpu.memory_space<vmem>>, vector<1x256xf32>
    %94 = vector.broadcast %93 : vector<1x256xf32> to vector<256x256xf32>
    %95 = arith.addf %92, %94 : vector<256x256xf32>
    %c0_45 = arith.constant 0 : index
    %c0_46 = arith.constant 0 : index
    %96 = vector.load %arg15[%c0_45, %c0_46] : memref<1x256xf32, #tpu.memory_space<vmem>>, vector<1x256xf32>
    %c0_47 = arith.constant 0 : index
    %c0_48 = arith.constant 0 : index
    %97 = vector.load %arg16[%c0_47, %c0_48] : memref<1x256xf32, #tpu.memory_space<vmem>>, vector<1x256xf32>
    %cst_49 = arith.constant dense<0.000000e+00> : vector<256xf32>
    %98 = vector.multi_reduction <add>, %95, %cst_49 [0] : vector<256x256xf32> to vector<256xf32>
    %99 = vector.shape_cast %98 : vector<256xf32> to vector<1x256xf32>
    %cst_50 = arith.constant 2.560000e+02 : f32
    %100 = vector.broadcast %cst_50 : f32 to vector<1x256xf32>
    %101 = arith.divf %99, %100 : vector<1x256xf32>
    %102 = vector.broadcast %101 : vector<1x256xf32> to vector<256x256xf32>
    %103 = arith.subf %95, %102 : vector<256x256xf32>
    %104 = arith.mulf %103, %103 : vector<256x256xf32>
    %cst_51 = arith.constant dense<0.000000e+00> : vector<256xf32>
    %105 = vector.multi_reduction <add>, %104, %cst_51 [0] : vector<256x256xf32> to vector<256xf32>
    %106 = vector.shape_cast %105 : vector<256xf32> to vector<1x256xf32>
    %cst_52 = arith.constant 2.560000e+02 : f32
    %107 = vector.broadcast %cst_52 : f32 to vector<1x256xf32>
    %108 = arith.divf %106, %107 : vector<1x256xf32>
    %109 = vector.broadcast %101 : vector<1x256xf32> to vector<256x256xf32>
    %110 = arith.subf %95, %109 : vector<256x256xf32>
    %cst_53 = arith.constant 1.000000e-03 : f32
    %111 = vector.broadcast %cst_53 : f32 to vector<1x256xf32>
    %112 = arith.addf %108, %111 : vector<1x256xf32>
    %113 = math.rsqrt %112 : vector<1x256xf32>
    %114 = vector.broadcast %113 : vector<1x256xf32> to vector<256x256xf32>
    %115 = arith.mulf %110, %114 : vector<256x256xf32>
    %116 = vector.broadcast %96 : vector<1x256xf32> to vector<256x256xf32>
    %117 = arith.mulf %115, %116 : vector<256x256xf32>
    %118 = vector.broadcast %97 : vector<1x256xf32> to vector<256x256xf32>
    %119 = arith.addf %117, %118 : vector<256x256xf32>
    %cst_54 = arith.constant 0.000000e+00 : f32
    %120 = vector.broadcast %cst_54 : f32 to vector<256x256xf32>
    %121 = arith.maximumf %119, %120 : vector<256x256xf32>
    %c0_55 = arith.constant 0 : index
    %c0_56 = arith.constant 0 : index
    %122 = vector.load %arg17[%c0_55, %c0_56] : memref<256x128xbf16, #tpu.memory_space<vmem>>, vector<256x128xbf16>
    %123 = arith.truncf %121 : vector<256x256xf32> to vector<256x256xbf16>
    %cst_57 = arith.constant dense<0.000000e+00> : vector<256x128xf32>
    %124 = tpu.matmul %123, %122, %cst_57 {dimension_numbers = #tpu.dot_dimension_numbers<[1], [0], [0], [1], [0, 0, 1, 1], [], []>} : vector<256x256xbf16>, vector<256x128xbf16>, vector<256x128xf32> -> vector<256x128xf32>
    %c0_58 = arith.constant 0 : index
    %c0_59 = arith.constant 0 : index
    %125 = vector.load %arg18[%c0_58, %c0_59] : memref<1x128xf32, #tpu.memory_space<vmem>>, vector<1x128xf32>
    %126 = vector.broadcast %125 : vector<1x128xf32> to vector<256x128xf32>
    %127 = arith.addf %124, %126 : vector<256x128xf32>
    %128 = arith.addf %1, %127 : vector<256x128xf32>
    %c0_60 = arith.constant 0 : index
    %c0_61 = arith.constant 0 : index
    %c0_62 = arith.constant 0 : index
    %129 = vector.load %arg19[%c0_60, %c0_61, %c0_62] : memref<1x256x128xf32, #tpu.memory_space<vmem>>, vector<1x256x128xf32>
    %130 = vector.shape_cast %129 : vector<1x256x128xf32> to vector<256x128xf32>
    %131 = vector.shape_cast %128 : vector<256x128xf32> to vector<1x256x128xf32>
    tpu.vector_store %arg19[%c0_60, %c0_61, %c0_62], %131 {strides = array<i32>} : memref<1x256x128xf32, #tpu.memory_space<vmem>>, vector<1x256x128xf32>,
    %c0_63 = arith.constant 0 : index
    %c0_64 = arith.constant 0 : index
    %c0_65 = arith.constant 0 : index
    %132 = vector.load %arg2[%c0_63, %c0_64, %c0_65] : memref<1x1x256xi32, #tpu.memory_space<vmem>>, vector<1x1x256xi32>
    %133 = vector.shape_cast %132 : vector<1x1x256xi32> to vector<1x256xi32>
    %134 = tpu.iota {dimensions = array<i32: 0>} : vector<256x256xi32>
    %135 = vector.broadcast %133 : vector<1x256xi32> to vector<256x256xi32>
    %136 = arith.cmpi eq, %134, %135 : vector<256x256xi32>
    %137 = arith.extui %136 : vector<256x256xi1> to vector<256x256xi32>
    %138 = arith.sitofp %137 : vector<256x256xi32> to vector<256x256xf32>
    %cst_66 = arith.constant dense<0.000000e+00> : vector<256x128xf32>
    %139 = tpu.matmul %138, %128, %cst_66 {dimension_numbers = #tpu.dot_dimension_numbers<[1], [0], [0], [1], [0, 0, 1, 1], [], []>} : vector<256x256xf32>, vector<256x128xf32>, vector<256x128xf32> -> vector<256x128xf32>
    %cst_67 = arith.constant dense<0.000000e+00> : vector<256xf32>
    %140 = vector.multi_reduction <add>, %138, %cst_67 [1] : vector<256x256xf32> to vector<256xf32>
    %141 = vector.shape_cast %140 : vector<256xf32> to vector<256x1xf32>
    %cst_68 = arith.constant 1.000000e+00 : f32
    %142 = vector.broadcast %cst_68 : f32 to vector<256x1xf32>
    %143 = arith.maximumf %141, %142 : vector<256x1xf32>
    %144 = tpu.reciprocal %143 {approx = true} : vector<256x1xf32> -> vector<256x1xf32>
    %145 = vector.broadcast %144 : vector<256x1xf32> to vector<256x128xf32>
    %146 = arith.mulf %139, %145 : vector<256x128xf32>
    %c0_69 = arith.constant 0 : index
    %c0_70 = arith.constant 0 : index
    %c0_71 = arith.constant 0 : index
    %147 = vector.load %arg20[%c0_69, %c0_70, %c0_71] : memref<1x256x128xf32, #tpu.memory_space<vmem>>, vector<1x256x128xf32>
    %148 = vector.shape_cast %147 : vector<1x256x128xf32> to vector<256x128xf32>
    %149 = vector.shape_cast %146 : vector<256x128xf32> to vector<1x256x128xf32>
    tpu.vector_store %arg20[%c0_69, %c0_70, %c0_71], %149 {strides = array<i32>} : memref<1x256x128xf32, #tpu.memory_space<vmem>>, vector<1x256x128xf32>,
    return
  }
  func.func @transform_0(%arg0: i32) -> (i32, i32, i32) {
    %c0_i32 = arith.constant 0 : i32
    %c0_i32_0 = arith.constant 0 : i32
    %c0_i32_1 = arith.constant 0 : i32
    return %arg0, %c0_i32, %c0_i32_0 : i32, i32, i32
  }
  func.func @transform_1(%arg0: i32) -> (i32, i32, i32) {
    %c0_i32 = arith.constant 0 : i32
    %c0_i32_0 = arith.constant 0 : i32
    %c0_i32_1 = arith.constant 0 : i32
    return %arg0, %c0_i32, %c0_i32_0 : i32, i32, i32
  }
  func.func @transform_2(%arg0: i32) -> (i32, i32) {
    %c0_i32 = arith.constant 0 : i32
    %c0_i32_0 = arith.constant 0 : i32
    %c0_i32_1 = arith.constant 0 : i32
    return %c0_i32, %c0_i32_0 : i32, i32
  }
  func.func @transform_3(%arg0: i32) -> (i32, i32) {
    %c0_i32 = arith.constant 0 : i32
    %c0_i32_0 = arith.constant 0 : i32
    %c0_i32_1 = arith.constant 0 : i32
    return %c0_i32, %c0_i32_0 : i32, i32
  }
  func.func @transform_4(%arg0: i32) -> (i32, i32) {
    %c0_i32 = arith.constant 0 : i32
    %c0_i32_0 = arith.constant 0 : i32
    %c0_i32_1 = arith.constant 0 : i32
    return %c0_i32, %c0_i32_0 : i32, i32
  }
  func.func @transform_5(%arg0: i32) -> (i32, i32) {
    %c0_i32 = arith.constant 0 : i32
    %c0_i32_0 = arith.constant 0 : i32
    %c0_i32_1 = arith.constant 0 : i32
    return %c0_i32, %c0_i32_0 : i32, i32
  }
  func.func @transform_6(%arg0: i32) -> (i32, i32) {
    %c0_i32 = arith.constant 0 : i32
    %c0_i32_0 = arith.constant 0 : i32
    %c0_i32_1 = arith.constant 0 : i32
    return %c0_i32, %c0_i32_0 : i32, i32
  }
  func.func @transform_7(%arg0: i32) -> (i32, i32) {
    %c0_i32 = arith.constant 0 : i32
    %c0_i32_0 = arith.constant 0 : i32
    %c0_i32_1 = arith.constant 0 : i32
    return %c0_i32, %c0_i32_0 : i32, i32
  }
  func.func @transform_8(%arg0: i32) -> (i32, i32) {
    %c0_i32 = arith.constant 0 : i32
    %c0_i32_0 = arith.constant 0 : i32
    %c0_i32_1 = arith.constant 0 : i32
    return %c0_i32, %c0_i32_0 : i32, i32
  }
  func.func @transform_9(%arg0: i32) -> (i32, i32) {
    %c0_i32 = arith.constant 0 : i32
    %c0_i32_0 = arith.constant 0 : i32
    %c0_i32_1 = arith.constant 0 : i32
    return %c0_i32, %c0_i32_0 : i32, i32
  }
  func.func @transform_10(%arg0: i32) -> (i32, i32) {
    %c0_i32 = arith.constant 0 : i32
    %c0_i32_0 = arith.constant 0 : i32
    %c0_i32_1 = arith.constant 0 : i32
    return %c0_i32, %c0_i32_0 : i32, i32
  }
  func.func @transform_11(%arg0: i32) -> (i32, i32) {
    %c0_i32 = arith.constant 0 : i32
    %c0_i32_0 = arith.constant 0 : i32
    %c0_i32_1 = arith.constant 0 : i32
    return %c0_i32, %c0_i32_0 : i32, i32
  }
  func.func @transform_12(%arg0: i32) -> (i32, i32) {
    %c0_i32 = arith.constant 0 : i32
    %c0_i32_0 = arith.constant 0 : i32
    %c0_i32_1 = arith.constant 0 : i32
    return %c0_i32, %c0_i32_0 : i32, i32
  }
  func.func @transform_13(%arg0: i32) -> (i32, i32) {
    %c0_i32 = arith.constant 0 : i32
    %c0_i32_0 = arith.constant 0 : i32
    %c0_i32_1 = arith.constant 0 : i32
    return %c0_i32, %c0_i32_0 : i32, i32
  }
  func.func @transform_14(%arg0: i32) -> (i32, i32) {
    %c0_i32 = arith.constant 0 : i32
    %c0_i32_0 = arith.constant 0 : i32
    %c0_i32_1 = arith.constant 0 : i32
    return %c0_i32, %c0_i32_0 : i32, i32
  }
  func.func @transform_15(%arg0: i32) -> (i32, i32) {
    %c0_i32 = arith.constant 0 : i32
    %c0_i32_0 = arith.constant 0 : i32
    %c0_i32_1 = arith.constant 0 : i32
    return %c0_i32, %c0_i32_0 : i32, i32
  }
  func.func @transform_16(%arg0: i32) -> (i32, i32) {
    %c0_i32 = arith.constant 0 : i32
    %c0_i32_0 = arith.constant 0 : i32
    %c0_i32_1 = arith.constant 0 : i32
    return %c0_i32, %c0_i32_0 : i32, i32
  }
  func.func @transform_17(%arg0: i32) -> (i32, i32) {
    %c0_i32 = arith.constant 0 : i32
    %c0_i32_0 = arith.constant 0 : i32
    %c0_i32_1 = arith.constant 0 : i32
    return %c0_i32, %c0_i32_0 : i32, i32
  }
  func.func @transform_18(%arg0: i32) -> (i32, i32, i32) {
    %c0_i32 = arith.constant 0 : i32
    %c0_i32_0 = arith.constant 0 : i32
    %c0_i32_1 = arith.constant 0 : i32
    return %arg0, %c0_i32, %c0_i32_0 : i32, i32, i32
  }
  func.func @transform_19(%arg0: i32) -> (i32, i32, i32) {
    %c0_i32 = arith.constant 0 : i32
    %c0_i32_0 = arith.constant 0 : i32
    %c0_i32_1 = arith.constant 0 : i32
    return %arg0, %c0_i32, %c0_i32_0 : i32, i32, i32
  }
}

</mosaic_0001>

<bundles_post_ra>
// kernel: tpu_custom_call.1
= control target key start
LH: loop header
LB: loop body
LE: loop exit
PB: predicated region body
PF: predicated region fallthrough
CT: control target
= control target key end

     0   :  { %s9246_s0 = inlined_call_operand.hbm [shape: f32[2,256,128], index: 0, kind: input, shape index: {}]   ;;  %s9247_s1 = inlined_call_operand.vmem [shape: s32[2,1,256], index: 1, kind: input, shape index: {}]   ;;  %s9248_s2 = inlined_call_operand.vmem [shape: f32[1,128], index: 2, kind: input, shape index: {}]   ;;  %s9249_s3 = inlined_call_operand.vmem [shape: f32[1,128], index: 3, kind: input, shape index: {}]   ;;  %s9250_s4 = inlined_call_operand.vmem [shape: bf16[128,64], index: 4, kind: input, shape index: {}]   ;;  %s9251_s5 = inlined_call_operand.vmem [shape: f32[1,64], index: 5, kind: input, shape index: {}]   ;;  %s9252_s6 = inlined_call_operand.vmem [shape: f32[1,64], index: 6, kind: input, shape index: {}]   ;;  %s9253_s7 = inlined_call_operand.vmem [shape: f32[1,64], index: 7, kind: input, shape index: {}]   ;;  %s9254_s8 = inlined_call_operand.vmem [shape: bf16[64,128], index: 8, kind: input, shape index: {}]   ;;  %s9255_s9 = inlined_call_operand.vmem [shape: f32[1,128], index: 9, kind: input, shape index: {}]   ;;  %s9256_s10 = inlined_call_operand.vmem [shape: f32[1,128], index: 10, kind: input, shape index: {}]   ;;  %s9257_s11 = inlined_call_operand.vmem [shape: f32[1,128], index: 11, kind: input, shape index: {}]   ;;  %s9258_s12 = inlined_call_operand.hbm [shape: bf16[128,256], index: 12, kind: input, shape index: {}]   ;;  %s9259_s13 = inlined_call_operand.vmem [shape: f32[1,256], index: 13, kind: input, shape index: {}]   ;;  %s9260_s14 = inlined_call_operand.vmem [shape: f32[1,256], index: 14, kind: input, shape index: {}]   ;;  %s9261_s15 = inlined_call_operand.vmem [shape: f32[1,256], index: 15, kind: input, shape index: {}]   ;;  %s9262_s16 = inlined_call_operand.hbm [shape: bf16[256,128], index: 16, kind: input, shape index: {}]   ;;  %s9263_s17 = inlined_call_operand.vmem [shape: f32[1,128], index: 17, kind: input, shape index: {}]   ;;  %s9264_s18 = inlined_call_operand.hbm [shape: f32[2,256,128], index: 18, kind: output, shape index: {0}]   ;;  %s9265_s19 = inlined_call_operand.hbm [shape: f32[2,256,128], index: 19, kind: output, shape index: {1}]  }
   0x1   :  { %9371 = sst [smem:[#allocation50_spill]] %s9246_s0 }
   0x2   :  { %9372 = sst [smem:[#allocation51_spill]] %s9247_s1 }
   0x3   :  { %9373 = sst [smem:[#allocation52_spill]] %s9248_s2 }
   0x4   :  { %9374 = sst [smem:[#allocation53_spill]] %s9249_s3 }
   0x5   :  { %9375 = sst [smem:[#allocation54_spill]] %s9258_s12 }
   0x6   :  { %9376 = sst [smem:[#allocation55_spill]] %s9262_s16 }
   0x7   :  { %9377 = sst [smem:[#allocation56_spill]] %s9264_s18 }
   0x8   :  { %9378 = sst [smem:[#allocation57_spill]] %s9265_s19 }
   0x9   :  { %25 = vsyncpa [#allocation3], 0 }
   0xa   :  { %27 = vsyncpa [#allocation3 + $0x1], 0 }
   0xb   :  { %28 = vsyncpa [#allocation6], 0 }
   0xc   :  { %29 = vsyncpa [#allocation4], 0 }
   0xd   :  { %31 = vsyncpa [#allocation4 + $0x1], 0 }
   0xe   :  { %32 = vsyncpa [#allocation10], 0 }
   0xf   :  { %34 = vsyncpa [#allocation10 + $0x1], 0  ;;  %s5252_s0 = smov 0   ;;  %s5254_s30 = smov 0  }
  0x10   :  { %s5256_s20 = smov 0   ;;  %s5258_s21 = smov 0  }
  0x11 LB: > { %9379 = sst [smem:[#allocation15_spill]] %s5124_s0  ;;  %s5273_s1 = sadd.s32 4294967295, %s5136_s21   ;;  %s5136_s21 = sphi %s5258_s21, %s9542_s21   ;;  %s5132_s20 = sphi %s5256_s20, %s9544_s20   ;;  %s5128_s30 = sphi %s5254_s30, %s9546_s30   ;;  %s5124_s0 = sphi %s5252_s0, %s9545_s0  }
  0x12   : > { %9380 = sst [smem:[#allocation16_spill]] %s5132_s20  ;;  %s4236_s22 = sadd.s32 4294967294, %s5136_s21  }
  0x13   : > { %9381 = sst [smem:[#allocation17_spill]] %s5136_s21  ;;  %p60_p0 = scmp.ne.s32.totalorder %s5128_s30, %s5124_s0 }
  0x14   : > { %p9276_p1 = scmp.eq.s32.totalorder %s5273_s1, 0  ;;  %p446_p2 = scmp.eq.s32.totalorder %s5273_s1, 1 }
  0x15   : > { %p452_p3 = scmp.eq.s32.totalorder %s4236_s22, 1  ;;  %p4237_p5 = scmp.ge.s32.totalorder %s5136_s21, 1 }
  0x16   : > { %p5282_p4 = por %p9276_p1, %p60_p0  ;;  %p485_p7 = scmp.lt.s32.totalorder %s5136_s21, 3 }
  0x17   : > { %p5287_p6 = por %p452_p3, %p60_p0  ;;  %s5138_s25 = smov [#allocation5]  }
  0x18   : > { %s9382_s2 = scalar_select %p5282_p4, 1, 0 }
  0x19   : > { %s9383_s23 = scalar_select %p5287_p6, 1, 0 }
  0x1a   : > { %p5292_p8 = pnand %p4237_p5, %p485_p7  ;;  %s527_s3 = sshll.u32 %s5138_s25, 4  ;;  %s528_s3 = int_to_ptr.vmem [resolvable:$true] %s527_s3 }
  0x1b   : > { %9384 = sst [smem:[#allocation18_spill]] %s9383_s23  ;;  %s5139_s27 = smov [#allocation7]  }
  0x1c   : > { %s9385_s24 = scalar_select %p5292_p8, 1, 0 }
  0x1d   : > { %p4733_p9 = pneg %p5292_p8  ;;  %s549_s28 = sshll.u32 %s5139_s27, 4  ;;  %s550_s28 = int_to_ptr.vmem [resolvable:$true] %s549_s28 }
  0x1e   : > { %s4969_s29 = scalar_lea.vmem %s528_s3, 2048  ;;  %p4977_p5 = scmp.lt.s32.totalorder %s528_s3, %s528_s3 }
  0x1f   : > { %p5301_p11 = pnand %p4733_p9, %p9276_p1  ;;  %p4970_p13 = scmp.ne.s32.totalorder %s528_s3, %s4969_s29 }
  0x20   : > { %p4978_p7 = scmp.lt.s32.totalorder %s4969_s29, %s4969_s29 }
  0x21   : > { %p4960_p12 = pneg %p5301_p11 }
  0x22   : > { %p4979_p10 = por %p4978_p7, %p4977_p5 }
  0x23   : > { %p4972_p0 = pnand %p4970_p13, %p4960_p12 }
  0x25   : > { %p4973_p3 = pneg %p4972_p0 }
  0x27   : > { %p4980_p9 = pnand %p4979_p10, %p4973_p3 }
  0x29   : > { %4983 = shalt.err (!%p4980_p9)
}
  0x2a   : > { %s9269_s22 = smov 128   ;;  %s9270_s25 = smov 8  }
  0x2b   : > { %s9387_s12 = sld [smem:[#allocation54_spill]]  ;;  %s4995_s0 = scalar_lea.vmem %s550_s28, 2048 }
  0x2c   : > { %p4996_p13 = scmp.ne.s32.totalorder %s550_s28, %s4995_s0  ;;  %p5003_p10 = scmp.lt.s32.totalorder %s550_s28, %s550_s28 }
  0x2d   : > { %p5004_p3 = scmp.lt.s32.totalorder %s4995_s0, %s4995_s0 }
  0x2e   : > { %p4998_p0 = pnand %p4996_p13, %p4960_p12 }
  0x2f   : > { %p5005_p7 = por %p5004_p3, %p5003_p10 }
  0x30   : > { %p4999_p5 = pneg %p4998_p0 }
  0x31   : > { %4736 = dma.hbm_to_vmem [thread:$0]  (!%p5301_p11), %s9387_s12, 2048, %s528_s3, [#allocation6], %s9269_s22, %s9269_s22, %s9270_s25  }
  0x32   : > { %p5006_p9 = pnand %p5005_p7, %p4999_p5 }
  0x34   : > { %5009 = shalt.err (!%p5006_p9)
}
  0x35   : > { %s5142_s29 = smov 64   ;;  %s5143_s23 = smov 4  }
  0x36   : > { %s9388_s16 = sld [smem:[#allocation55_spill]]  ;;  %s5327_s27 = sadd.s32 1, %s5136_s21  }
  0x37   : > { %9389 = sst [smem:[#allocation19_spill]] %s5327_s27  ;;  %s44_s22 = ssub.s32 %s5136_s21, %s5327_s27 }
  0x38   : > { %p45_p12 = scmp.eq.s32.totalorder %s44_s22, 0  ;;  %s47_s25 = sadd.s32 1, %s5132_s20 }
  0x39   : > { %p54_p13 = scmp.ne.s32.totalorder %s5132_s20, %s5128_s30  ;;  %p55_p0 = scmp.eq.s32.totalorder %s5136_s21, 0 }
  0x3a   : > { %s5336_s12 = scalar_select %p45_p12, %s5132_s20, %s47_s25  }
  0x3b   : > { %p56_p5 = por %p55_p0, %p54_p13  ;;  %p5340_p10 = por %p446_p2, %p54_p13 }
  0x3c   : > { %4739 = dma.hbm_to_vmem [thread:$0]  (!%p5301_p11), %s9388_s16, 2048, %s550_s28, [#allocation6], %s5142_s29, %s5142_s29, %s5143_s23  }
  0x3d   : > { %9390 = sst [smem:[#allocation20_spill]] %s5336_s12  ;;  %p4753_p3 = scmp.lt.s32.totalorder %s5136_s21, 2 }
  0x3e   : > { %s9391_s19 = scalar_select %p5340_p10, 1, 0 }
  0x3f   : > { %s566_s26 = sand.u32 1, %s5132_s20   ;;  %s4456_s28 = sshll.u32 %s5136_s21, 12 }
  0x40   : > { %s4241_s3 = sshll.u32 %s566_s26, 8  ;;  %s9392_s0 = sld [smem:[#allocation50_spill]] }
  0x41   : > { %s570_s22 = scalar_lea.vmem [#allocation2], %s4241_s3  ;;  %p5354_p2 = pnand %p4753_p3, %p56_p5 }
  0x42   : > { %s577_s25 = sshll.u32 %s570_s22, 4  ;;  %s5358_s20 = scalar_lea.sflag [#allocation3], %s566_s26  ;;  %s5352_s25 = int_to_ptr.vmem [resolvable:$true] %s577_s25 }
  0x43   : > { %p5012_p7 = pneg %p5354_p2 }
  0x46   : > { %s9393_s16 = smov %s9392_s0  ;;  %s5350_s27 = scalar_lea.hbm %s9392_s0, %s4456_s28 }
  0x47   : > { %s5010_s21 = scalar_lea.hbm %s5350_s27, 4096  ;;  %s5015_s3 = scalar_lea.hbm %s9393_s16, 8192 }
  0x48   : > { %p5011_p11 = scmp.ne.s32.totalorder %s5350_s27, %s5010_s21  ;;  %p5016_p13 = scmp.lt.s32.totalorder %s5350_s27, %s9393_s16 }
  0x49   : > { %p5017_p0 = scmp.lt.s32.totalorder %s5015_s3, %s5010_s21 }
  0x4a   : > { %p5013_p9 = pnand %p5012_p7, %p5011_p11 }
  0x4b   : > { %p5018_p5 = por %p5017_p0, %p5016_p13 }
  0x4c   : > { %p5014_p12 = pneg %p5013_p9 }
  0x4e   : > { %p5019_p3 = pnand %p5018_p5, %p5014_p12 }
  0x50   : > { %5022 = shalt.err (!%p5019_p3)
}
  0x51   : > { %s5023_s26 = scalar_lea.vmem %s5352_s25, 4096  ;;  %s5144_s22 = smov [#allocation2]  }
  0x52   : > { %p5024_p1 = scmp.ne.s32.totalorder %s5352_s25, %s5023_s26  ;;  %s5028_s18 = sshll.u32 %s5144_s22, 4  ;;  %s5029_s18 = int_to_ptr.vmem [resolvable:$false] %s5028_s18 }
  0x53   : > { %s5030_s28 = scalar_lea.vmem %s5029_s18, 8192  ;;  %p5031_p9 = scmp.lt.s32.totalorder %s5352_s25, %s5029_s18 }
  0x54   : > { %p5026_p6 = pnand %p5024_p1, %p5012_p7  ;;  %p5032_p10 = scmp.lt.s32.totalorder %s5030_s28, %s5023_s26 }
  0x56   : > { %p5027_p11 = pneg %p5026_p6  ;;  %p5033_p4 = por %p5032_p10, %p5031_p9 }
  0x58   : > { %p5034_p8 = pnand %p5033_p4, %p5027_p11 }
  0x5a   : > { %5037 = shalt.err (!%p5034_p8)
}
  0x5b   : > { %s9395_s21 = smov 8   ;;  %s9396_s29 = smov 128  }
  0x5c   : > { %4743 = dma.hbm_to_vmem [thread:$0]  (!%p5354_p2), %s5350_s27, 4096, %s5352_s25, %s5358_s20, %s9396_s29, %s9396_s29, %s9395_s21  }
  0x5d   : > { %p9397_p1 = scmp.ne.s32.totalorder %s9385_s24, 0 }
  0x5f   : > { %596 = sbr.rel (%p9397_p1) target bundleno = 2194 (0x892), region = 92 }
  0x64   : > { %s5385_s3 = sand.u32 1, %s5128_s30   ;;  %p9398_p4 = scmp.ne.s32.totalorder %s9382_s2, 0 }
  0x65   : > { %s5388_s18 = sshll.u32 %s5385_s3, 8  ;;  %s599_s12 = scalar_lea.sflag [#allocation3], %s5385_s3 }
  0x66   : > { %s5392_s23 = scalar_lea.vmem [#allocation2], %s5388_s18 }
  0x67   : > { %5107 = dma.done.wait (%p9398_p4), %s599_s12, 4096  }
  0x68   : > { %5109 = vsyncadd (%p9398_p4), %s599_s12, 4294963200  ;;  %p9399_p6 = scmp.eq.s32.totalorder %s5273_s1, 0 }
  0x6a   : > { %5111 = dma.done.wait (%p9399_p6), [#allocation6], 4096   ;;  %p9400_p8 = pmov %p9399_p6 }
  0x6b   : > { %v4800_v0 = vld [vmem:[%s9250_s4 + $0x38] sm:$0xff]   ;;  %v4801_v1 = vld [vmem:[%s9250_s4 + $0x30] sm:$0xff]   ;;  %v4802_v2 = vld [vmem:[%s9250_s4 + $0x28] sm:$0xff]   ;;  %s9401_s26 = sld [smem:[#allocation52_spill]]  ;;  %vm1214_vm0 = vcmask 523264   ;;  %s8161_s27 = scalar_lea.vmem [#allocation8], %s5388_s18 }
  0x6c   : > { %5113 = vsyncadd (%p9400_p8), [#allocation6], 4294963200  ;;  %4615 = vmatprep.subr.bf16.mxu0 %v4800_v0  ;;  %v4803_v3 = vld [vmem:[%s9250_s4 + $0x20] sm:$0xff]   ;;  %v5418_v5 = vld [vmem:[%s5392_s23 + $0x8] sm:$0xff]  ;;  %s9402_s21 = sld [smem:[#allocation53_spill]]  ;;  %p674_p10 = scmp.lt.s32.totalorder %s5273_s1, 1 }
  0x6d   : > { %4616 = vmatpush3.bf16.msra.mxu0 %v4800_v0  ;;  %v5415_v4 = vld [vmem:[%s5392_s23] sm:$0xff]  ;;  %v5421_v6 = vld [vmem:[%s5392_s23 + $0x10] sm:$0xff]  ;;  %v5426_v8 = vld [vmem:[%s5392_s23 + $0x18] sm:$0xff]  ;;  %s9485_s22 = sld [smem:[#allocation51_spill]]  ;;  %s4084_s24 = sshll.u32 %s8161_s27, 4  ;;  %s9131_s24 = int_to_ptr.vmem [resolvable:$true] %s4084_s24 }
  0x6e   : > { %4617 = vmatprep.subr.bf16.mxu0 %v4801_v1  ;;  %v713_v7 = vadd.f32 %v5418_v5, %v5415_v4  ;;  %v4804_v10 = vld [vmem:[%s9250_s4 + $0x18] sm:$0xff]   ;;  %v5433_v11 = vld [vmem:[%s5392_s23 + $0x20] sm:$0xff]  ;;  %v5437_v13 = vld [vmem:[%s5392_s23 + $0x28] sm:$0xff]  ;;  %s675_s25 = scalar_select %p674_p10, %s5273_s1, 1 }
  0x6f   : > { %v4805_v15 = vld [vmem:[%s9250_s4 + $0x10] sm:$0xff]   ;;  %v4806_v18 = vld [vmem:[%s9250_s4 + $0x8] sm:$0xff]   ;;  %v5451_v19 = vld [vmem:[%s5392_s23 + $0x38] sm:$0xff]  ;;  %s9533_s12 = sld [smem:[#allocation56_spill]]  ;;  %s5038_s0 = scalar_lea.vmem %s9131_s24, 4096 }
  0x70   : > { %v714_v9 = vadd.f32 %v713_v7, %v5421_v6  ;;  %v5444_v16 = vld [vmem:[%s5392_s23 + $0x30] sm:$0xff]  ;;  %v5454_v20 = vld [vmem:[%s5392_s23 + $0x40] sm:$0xff]  ;;  %v5458_v22 = vld [vmem:[%s5392_s23 + $0x48] sm:$0xff]  ;;  %s4250_s2 = sshll.u32 %s675_s25, 1  ;;  %s9134_s25 = scalar_lea.vmem [#allocation9], %s5388_s18 }
  0x71   : > { %4618 = vmatpush3.bf16.msra.mxu0 %v4801_v1  ;;  %v4807_v24 = vld [vmem:[%s9250_s4] sm:$0xff]   ;;  %v5465_v25 = vld [vmem:[%s5392_s23 + $0x50] sm:$0xff]  ;;  %v5469_v27 = vld [vmem:[%s5392_s23 + $0x58] sm:$0xff]  ;;  %p5039_p2 = scmp.ne.s32.totalorder %s9131_s24, %s5038_s0  ;;  %p9534_p7 = scmp.ne.s32.totalorder %s9391_s19, 0 }
  0x72   : > { %4619 = vmatprep.subr.bf16.mxu0 %v4802_v2  ;;  %v715_v12 = vadd.f32 %v714_v9, %v5426_v8  ;;  %v5473_v29 = vld [vmem:[%s5392_s23 + $0x60] sm:$0xff]  ;;  %v5477_v31 = vld [vmem:[%s5392_s23 + $0x68] sm:$0xff]  ;;  %v5481_v33 = vld [vmem:[%s5392_s23 + $0x70] sm:$0xff] }
  0x73   : > { %v5485_v35 = vld [vmem:[%s5392_s23 + $0x78] sm:$0xff]  ;;  %v5489_v37 = vld [vmem:[%s5392_s23 + $0x80] sm:$0xff]  ;;  %v5494_v40 = vld [vmem:[%s5392_s23 + $0x88] sm:$0xff]  ;;  %s677_s28 = scalar_lea.vmem %s9485_s22, %s4250_s2  ;;  %s4066_s2 = scalar_lea.sflag [#allocation4], %s5385_s3 }
  0x74   : > { %v716_v14 = vadd.f32 %v715_v12, %v5433_v11  ;;  %v5498_v42 = vld [vmem:[%s5392_s23 + $0x90] sm:$0xff]  ;;  %v5502_v44 = vld [vmem:[%s5392_s23 + $0x98] sm:$0xff]  ;;  %v5506_v46 = vld [vmem:[%s5392_s23 + $0xa0] sm:$0xff]  ;;  %p5040_p12 = pnand %p5039_p2, %p9534_p7 }
  0x75   : > { %4620 = vmatpush3.bf16.msra.mxu0 %v4802_v2  ;;  %v5510_v48 = vld [vmem:[%s5392_s23 + $0xa8] sm:$0xff]  ;;  %v5514_v50 = vld [vmem:[%s5392_s23 + $0xb0] sm:$0xff]  ;;  %v5518_v52 = vld [vmem:[%s5392_s23 + $0xb8] sm:$0xff] }
  0x76   : > { %4621 = vmatprep.subr.bf16.mxu0 %v4803_v3  ;;  %v717_v17 = vadd.f32 %v716_v14, %v5437_v13  ;;  %v5522_v54 = vld [vmem:[%s5392_s23 + $0xc0] sm:$0xff]  ;;  %v5526_v56 = vld [vmem:[%s5392_s23 + $0xc8] sm:$0xff]  ;;  %v5530_v58 = vld [vmem:[%s5392_s23 + $0xd0] sm:$0xff]  ;;  %p5041_p13 = pneg %p5040_p12 }
  0x77   : > { %v5534_v60 = vld [vmem:[%s5392_s23 + $0xd8] sm:$0xff]  ;;  %v5538_v62 = vld [vmem:[%s5392_s23 + $0xe0] sm:$0xff]  ;;  %v5542_v0 = vld [vmem:[%s5392_s23 + $0xe8] sm:$0xff] }
  0x78   : > { %v718_v21 = vadd.f32 %v717_v17, %v5444_v16  ;;  %v5546_v2 = vld [vmem:[%s5392_s23 + $0xf0] sm:$0xff]  ;;  %v5550_v7 = vld [vmem:[%s5392_s23 + $0xf8] sm:$0xff] }
  0x79   : > { %4622 = vmatpush3.bf16.msra.mxu0 %v4803_v3 }
  0x7a   : > { %4623 = vmatprep.subr.bf16.mxu0 %v4804_v10  ;;  %v719_v23 = vadd.f32 %v718_v21, %v5451_v19 }
  0x7c   : > { %v720_v26 = vadd.f32 %v719_v23, %v5454_v20 }
  0x7d   : > { %4624 = vmatpush3.bf16.msra.mxu0 %v4804_v10 }
  0x7e   : > { %4625 = vmatprep.subr.bf16.mxu0 %v4805_v15  ;;  %v721_v28 = vadd.f32 %v720_v26, %v5458_v22 }
  0x80   : > { %v722_v30 = vadd.f32 %v721_v28, %v5465_v25 }
  0x81   : > { %4626 = vmatpush3.bf16.msra.mxu0 %v4805_v15 }
  0x82   : > { %4627 = vmatprep.subr.bf16.mxu0 %v4806_v18  ;;  %v723_v32 = vadd.f32 %v722_v30, %v5469_v27 }
  0x84   : > { %v724_v34 = vadd.f32 %v723_v32, %v5473_v29 }
  0x85   : > { %4628 = vmatpush3.bf16.msra.mxu0 %v4806_v18 }
  0x86   : > { %4629 = vmatprep.subr.bf16.mxu0 %v4807_v24  ;;  %v725_v36 = vadd.f32 %v724_v34, %v5477_v31 }
  0x88   : > { %v726_v38 = vadd.f32 %v725_v36, %v5481_v33 }
  0x89   : > { %4630 = vmatpush3.bf16.msra.mxu0 %v4807_v24 }
  0x8a   : > { %v727_v39 = vadd.f32 %v726_v38, %v5485_v35 }
  0x8c   : > { %v728_v41 = vadd.f32 %v727_v39, %v5489_v37 }
  0x8e   : > { %v729_v43 = vadd.f32 %v728_v41, %v5494_v40 }
  0x90   : > { %v730_v45 = vadd.f32 %v729_v43, %v5498_v42 }
  0x92   : > { %v731_v47 = vadd.f32 %v730_v45, %v5502_v44 }
  0x94   : > { %v732_v49 = vadd.f32 %v731_v47, %v5506_v46 }
  0x96   : > { %v733_v51 = vadd.f32 %v732_v49, %v5510_v48 }
  0x98   : > { %v734_v53 = vadd.f32 %v733_v51, %v5514_v50 }
  0x9a   : > { %v735_v55 = vadd.f32 %v734_v53, %v5518_v52 }
  0x9c   : > { %v736_v57 = vadd.f32 %v735_v55, %v5522_v54 }
  0x9e   : > { %v737_v59 = vadd.f32 %v736_v57, %v5526_v56 }
  0xa0   : > { %v738_v61 = vadd.f32 %v737_v59, %v5530_v58 }
  0xa2   : > { %v739_v63 = vadd.f32 %v738_v61, %v5534_v60 }
  0xa4   : > { %v740_v1 = vadd.f32 %v739_v63, %v5538_v62 }
  0xa6   : > { %v741_v3 = vadd.f32 %v740_v1, %v5542_v0 }
  0xa8   : > { %v742_v9 = vadd.f32 %v741_v3, %v5546_v2 }
  0xaa   : > { %v743_v10 = vadd.f32 %v742_v9, %v5550_v7 }
  0xac   : > { %v744_v12 = vrot.slane %v743_v10, 4 }
  0xae   : > { %v745_v14 = vadd.f32 %v744_v12, %v743_v10 }
  0xb0   : > { %v746_v15 = vrot.slane %v745_v14, 2 }
  0xb2   : > { %v747_v17 = vadd.f32 %v746_v15, %v745_v14 }
  0xb4   : > { %v748_v18 = vrot.slane %v747_v17, 1 }
  0xb6   : > { %v749_v21 = vadd.f32 %v748_v18, %v747_v17 }
  0xb8   : > { %v5554_v23 = vmul.f32 0.00390625, %v749_v21 }
  0xba   : > { %v5558_v24 = vsub.f32 %v5415_v4, %v5554_v23  ;;  %v5562_v26 = vsub.f32 %v5418_v5, %v5554_v23  ;;  %v5566_v28 = vsub.f32 %v5421_v6, %v5554_v23  ;;  %v5570_v30 = vsub.f32 %v5426_v8, %v5554_v23 }
  0xbb   : > { %v5578_v4 = vsub.f32 %v5433_v11, %v5554_v23  ;;  %v5584_v6 = vsub.f32 %v5437_v13, %v5554_v23  ;;  %v5590_v38 = vsub.f32 %v5444_v16, %v5554_v23  ;;  %v5596_v41 = vsub.f32 %v5451_v19, %v5554_v23 }
  0xbc   : > { %v784_v32 = vmul.f32 %v5558_v24, %v5558_v24  ;;  %v785_v34 = vmul.f32 %v5562_v26, %v5562_v26  ;;  %v786_v5 = vmul.f32 %v5566_v28, %v5566_v28  ;;  %v787_v8 = vmul.f32 %v5570_v30, %v5570_v30 }
  0xbd   : > { %v788_v39 = vmul.f32 %v5578_v4, %v5578_v4  ;;  %v789_v13 = vmul.f32 %v5584_v6, %v5584_v6  ;;  %v5602_v45 = vsub.f32 %v5454_v20, %v5554_v23  ;;  %v790_v16 = vmul.f32 %v5590_v38, %v5590_v38 }
  0xbe   : > { %v816_v36 = vadd.f32 %v785_v34, %v784_v32  ;;  %v5608_v49 = vsub.f32 %v5458_v22, %v5554_v23  ;;  %v791_v19 = vmul.f32 %v5596_v41, %v5596_v41  ;;  %v5614_v53 = vsub.f32 %v5465_v25, %v5554_v23 }
  0xbf   : > { %v792_v20 = vmul.f32 %v5602_v45, %v5602_v45  ;;  %v5620_v57 = vsub.f32 %v5469_v27, %v5554_v23  ;;  %v5626_v61 = vsub.f32 %v5473_v29, %v5554_v23  ;;  %v5632_v1 = vsub.f32 %v5477_v31, %v5554_v23 }
  0xc0   : > { %v817_v11 = vadd.f32 %v816_v36, %v786_v5  ;;  %v793_v22 = vmul.f32 %v5608_v49, %v5608_v49  ;;  %v794_v25 = vmul.f32 %v5614_v53, %v5614_v53  ;;  %v5638_v9 = vsub.f32 %v5481_v33, %v5554_v23 }
  0xc1   : > { %v795_v27 = vmul.f32 %v5620_v57, %v5620_v57  ;;  %v796_v29 = vmul.f32 %v5626_v61, %v5626_v61  ;;  %v5644_v12 = vsub.f32 %v5485_v35, %v5554_v23  ;;  %v797_v31 = vmul.f32 %v5632_v1, %v5632_v1 }
  0xc2   : > { %v818_v43 = vadd.f32 %v817_v11, %v787_v8  ;;  %v5650_v15 = vsub.f32 %v5489_v37, %v5554_v23  ;;  %v798_v33 = vmul.f32 %v5638_v9, %v5638_v9  ;;  %v5656_v18 = vsub.f32 %v5494_v40, %v5554_v23 }
  0xc3   : > { %v799_v35 = vmul.f32 %v5644_v12, %v5644_v12  ;;  %v5662_v32 = vsub.f32 %v5498_v42, %v5554_v23  ;;  %v5668_v5 = vsub.f32 %v5502_v44, %v5554_v23  ;;  %v5674_v36 = vsub.f32 %v5506_v46, %v5554_v23 }
  0xc4   : > { %v819_v47 = vadd.f32 %v818_v43, %v788_v39  ;;  %v800_v37 = vmul.f32 %v5650_v15, %v5650_v15  ;;  %v801_v40 = vmul.f32 %v5656_v18, %v5656_v18  ;;  %v5680_v11 = vsub.f32 %v5510_v48, %v5554_v23 }
  0xc5   : > { %v802_v42 = vmul.f32 %v5662_v32, %v5662_v32  ;;  %v803_v44 = vmul.f32 %v5668_v5, %v5668_v5  ;;  %v5686_v43 = vsub.f32 %v5514_v50, %v5554_v23  ;;  %v804_v46 = vmul.f32 %v5674_v36, %v5674_v36 }
  0xc6   : > { %v820_v51 = vadd.f32 %v819_v47, %v789_v13  ;;  %v5692_v47 = vsub.f32 %v5518_v52, %v5554_v23  ;;  %v805_v48 = vmul.f32 %v5680_v11, %v5680_v11 }
  0xc7   : > { %v806_v50 = vmul.f32 %v5686_v43, %v5686_v43 }
  0xc8   : > { %v821_v55 = vadd.f32 %v820_v51, %v790_v16  ;;  %v5698_v51 = vsub.f32 %v5522_v54, %v5554_v23  ;;  %v807_v52 = vmul.f32 %v5692_v47, %v5692_v47 }
  0xca   : > { %v822_v59 = vadd.f32 %v821_v55, %v791_v19  ;;  %v5704_v55 = vsub.f32 %v5526_v56, %v5554_v23  ;;  %v808_v54 = vmul.f32 %v5698_v51, %v5698_v51 }
  0xcc   : > { %v823_v63 = vadd.f32 %v822_v59, %v792_v20  ;;  %v5710_v59 = vsub.f32 %v5530_v58, %v5554_v23  ;;  %v809_v56 = vmul.f32 %v5704_v55, %v5704_v55 }
  0xce   : > { %v824_v3 = vadd.f32 %v823_v63, %v793_v22  ;;  %v5716_v63 = vsub.f32 %v5534_v60, %v5554_v23  ;;  %v810_v58 = vmul.f32 %v5710_v59, %v5710_v59 }
  0xd0   : > { %v825_v10 = vadd.f32 %v824_v3, %v794_v25  ;;  %v5722_v3 = vsub.f32 %v5538_v62, %v5554_v23  ;;  %v811_v60 = vmul.f32 %v5716_v63, %v5716_v63 }
  0xd2   : > { %v826_v14 = vadd.f32 %v825_v10, %v795_v27  ;;  %v5728_v10 = vsub.f32 %v5542_v0, %v5554_v23  ;;  %v812_v62 = vmul.f32 %v5722_v3, %v5722_v3 }
  0xd4   : > { %v827_v17 = vadd.f32 %v826_v14, %v796_v29  ;;  %v5734_v14 = vsub.f32 %v5546_v2, %v5554_v23  ;;  %v813_v0 = vmul.f32 %v5728_v10, %v5728_v10 }
  0xd6   : > { %v828_v21 = vadd.f32 %v827_v17, %v797_v31  ;;  %v5740_v17 = vsub.f32 %v5550_v7, %v5554_v23 }
  0xd8   : > { %v829_v34 = vadd.f32 %v828_v21, %v798_v33  ;;  %v814_v21 = vmul.f32 %v5734_v14, %v5734_v14  ;;  %v815_v2 = vmul.f32 %v5740_v17, %v5740_v17 }
  0xda   : > { %v830_v8 = vadd.f32 %v829_v34, %v799_v35 }
  0xdc   : > { %v831_v39 = vadd.f32 %v830_v8, %v800_v37 }
  0xde   : > { %v832_v13 = vadd.f32 %v831_v39, %v801_v40 }
  0xe0   : > { %v833_v16 = vadd.f32 %v832_v13, %v802_v42 }
  0xe2   : > { %v834_v19 = vadd.f32 %v833_v16, %v803_v44 }
  0xe4   : > { %v835_v20 = vadd.f32 %v834_v19, %v804_v46  ;;  %v5753_v19 = vld [vmem:[%s9401_s26] ss:$0 sm:$0xff] }
  0xe6   : > { %v836_v22 = vadd.f32 %v835_v20, %v805_v48 }
  0xe8   : > { %v837_v25 = vadd.f32 %v836_v22, %v806_v50 }
  0xea   : > { %v838_v27 = vadd.f32 %v837_v25, %v807_v52 }
  0xec   : > { %v839_v29 = vadd.f32 %v838_v27, %v808_v54  ;;  %v5766_v54 = vld [vmem:[%s9402_s21] ss:$0 sm:$0xff] }
  0xee   : > { %v840_v31 = vadd.f32 %v839_v29, %v809_v56 }
  0xf0   : > { %v841_v33 = vadd.f32 %v840_v31, %v810_v58 }
  0xf2   : > { %v842_v35 = vadd.f32 %v841_v33, %v811_v60 }
  0xf4   : > { %v843_v37 = vadd.f32 %v842_v35, %v812_v62 }
  0xf6   : > { %v844_v34 = vadd.f32 %v843_v37, %v813_v0 }
  0xf8   : > { %v845_v40 = vadd.f32 %v844_v34, %v814_v21 }
  0xfa   : > { %v846_v8 = vadd.f32 %v845_v40, %v815_v2 }
  0xfc   : > { %v847_v42 = vrot.slane %v846_v8, 4 }
  0xfe   : > { %v848_v39 = vadd.f32 %v847_v42, %v846_v8 }
 0x100   : > { %v849_v44 = vrot.slane %v848_v39, 2 }
 0x102   : > { %v850_v13 = vadd.f32 %v849_v44, %v848_v39 }
 0x104   : > { %v851_v7 = vrot.slane %v850_v13, 1 }
 0x106   : > { %v852_v23 = vadd.f32 %v851_v7, %v850_v13 }
 0x108   : > { %v853_v46 = vmul.f32 0.00390625, %v852_v23 }
 0x10a   : > { %v854_v16 = vadd.f32 0.001, %v853_v46 }
 0x10c   : > { %4852 = vrsqrt.f32 %v854_v16 }
 0x119   : > { %v5748_v48 = vpop.eup %4852 }
 0x11a   : > { %v856_v50 = vmul.f32 %v5748_v48, %v5558_v24  ;;  %v857_v20 = vmul.f32 %v5748_v48, %v5562_v26  ;;  %v858_v52 = vmul.f32 %v5748_v48, %v5566_v28  ;;  %v859_v22 = vmul.f32 %v5748_v48, %v5570_v30 }
 0x11b   : > { %v860_v25 = vmul.f32 %v5748_v48, %v5578_v4  ;;  %v861_v24 = vmul.f32 %v5748_v48, %v5584_v6  ;;  %v862_v26 = vmul.f32 %v5748_v48, %v5590_v38  ;;  %v863_v28 = vmul.f32 %v5748_v48, %v5596_v41 }
 0x11c   : > { %v894_v56 = vmul.f32 %v5753_v19, %v856_v50  ;;  %v895_v30 = vmul.f32 %v5753_v19, %v857_v20  ;;  %v896_v27 = vmul.f32 %v5753_v19, %v858_v52  ;;  %v897_v58 = vmul.f32 %v5753_v19, %v859_v22 }
 0x11d   : > { %v898_v29 = vmul.f32 %v5753_v19, %v860_v25  ;;  %v899_v4 = vmul.f32 %v5753_v19, %v861_v24  ;;  %v900_v33 = vmul.f32 %v5753_v19, %v862_v26  ;;  %v901_v0 = vmul.f32 %v5753_v19, %v863_v28 }
 0x11e   : > { %v932_v6 = vadd.f32 %v5766_v54, %v894_v56  ;;  %v933_v60 = vadd.f32 %v5766_v54, %v895_v30  ;;  %v934_v38 = vadd.f32 %v5766_v54, %v896_v27  ;;  %v935_v41 = vadd.f32 %v5766_v54, %v897_v58 }
 0x11f   : > { %v936_v31 = vadd.f32 %v5766_v54, %v898_v29  ;;  %v937_v62 = vadd.f32 %v5766_v54, %v899_v4  ;;  %v864_v37 = vmul.f32 %v5748_v48, %v5602_v45  ;;  %v865_v2 = vmul.f32 %v5748_v48, %v5608_v49 }
 0x120   : > { %v980_v35 = vpack.c.bf16 %v933_v60, %v932_v6  ;;  %v981_v21 = vpack.c.bf16 %v935_v41, %v934_v38  ;;  %v938_v42 = vadd.f32 %v5766_v54, %v900_v33  ;;  %v939_v39 = vadd.f32 %v5766_v54, %v901_v0 }
 0x121   : > { %v982_v34 = vpack.c.bf16 %v937_v62, %v936_v31  ;;  %v902_v40 = vmul.f32 %v5753_v19, %v864_v37  ;;  %v903_v8 = vmul.f32 %v5753_v19, %v865_v2  ;;  %v866_v44 = vmul.f32 %v5748_v48, %v5614_v53 }
 0x122   : > { %4631 = vmatprep.mubr.bf16.mxu0 %v980_v35  ;;  %v867_v45 = vmul.f32 %v5748_v48, %v5620_v57  ;;  %v868_v7 = vmul.f32 %v5748_v48, %v5626_v61  ;;  %v869_v23 = vmul.f32 %v5748_v48, %v5632_v1  ;;  %v983_v46 = vpack.c.bf16 %v939_v39, %v938_v42 }
 0x123   : > { %4632 = vmatmul.mubr.bf16.vlgmr.msra.gmra.mxu0 %v981_v21  ;;  %v940_v49 = vadd.f32 %v5766_v54, %v902_v40  ;;  %v941_v13 = vadd.f32 %v5766_v54, %v903_v8  ;;  %v904_v16 = vmul.f32 %v5753_v19, %v866_v44  ;;  %v870_v61 = vmul.f32 %v5748_v48, %v5638_v9 }
 0x124   : > { %4635 = vmatprep.mubr.bf16.mxu0 %v982_v34  ;;  %v905_v50 = vmul.f32 %v5753_v19, %v867_v45  ;;  %v906_v20 = vmul.f32 %v5753_v19, %v868_v7  ;;  %v907_v57 = vmul.f32 %v5753_v19, %v869_v23  ;;  %v871_v1 = vmul.f32 %v5748_v48, %v5644_v12 }
 0x125   : > { %v984_v53 = vpack.c.bf16 %v941_v13, %v940_v49  ;;  %v942_v52 = vadd.f32 %v5766_v54, %v904_v16  ;;  %v872_v26 = vmul.f32 %v5748_v48, %v5650_v15  ;;  %v873_v28 = vmul.f32 %v5748_v48, %v5656_v18 }
 0x126   : > { %v943_v22 = vadd.f32 %v5766_v54, %v905_v50  ;;  %v944_v25 = vadd.f32 %v5766_v54, %v906_v20  ;;  %v945_v24 = vadd.f32 %v5766_v54, %v907_v57  ;;  %v908_v30 = vmul.f32 %v5753_v19, %v870_v61 }
 0x127   : > { %v909_v27 = vmul.f32 %v5753_v19, %v871_v1  ;;  %v910_v58 = vmul.f32 %v5753_v19, %v872_v26  ;;  %v911_v12 = vmul.f32 %v5753_v19, %v873_v28  ;;  %v874_v15 = vmul.f32 %v5748_v48, %v5662_v32 }
 0x128   : > { %v985_v56 = vpack.c.bf16 %v943_v22, %v942_v52  ;;  %v986_v9 = vpack.c.bf16 %v945_v24, %v944_v25  ;;  %v946_v29 = vadd.f32 %v5766_v54, %v908_v30  ;;  %v875_v18 = vmul.f32 %v5748_v48, %v5668_v5  ;;  %v5891_v30 = vld [vmem:[%s9251_s5] ss:$0 sm:$0xff] }
 0x129   : > { %v947_v4 = vadd.f32 %v5766_v54, %v909_v27  ;;  %v948_v6 = vadd.f32 %v5766_v54, %v910_v58  ;;  %v949_v60 = vadd.f32 %v5766_v54, %v911_v12  ;;  %v876_v38 = vmul.f32 %v5748_v48, %v5674_v36 }
 0x12a   : > { %v877_v41 = vmul.f32 %v5748_v48, %v5680_v11  ;;  %v912_v62 = vmul.f32 %v5753_v19, %v874_v15  ;;  %v913_v33 = vmul.f32 %v5753_v19, %v875_v18  ;;  %v878_v36 = vmul.f32 %v5748_v48, %v5686_v43 }
 0x12b   : > { %4636 = vmatmul.mubr.bf16.gmra.mxu0 %v983_v46  ;;  %v987_v31 = vpack.c.bf16 %v947_v4, %v946_v29  ;;  %v988_v32 = vpack.c.bf16 %v949_v60, %v948_v6  ;;  %v914_v0 = vmul.f32 %v5753_v19, %v876_v38  ;;  %v879_v11 = vmul.f32 %v5748_v48, %v5692_v47 }
 0x12c   : > { %4639 = vmatprep.mubr.bf16.mxu0 %v984_v53  ;;  %v915_v5 = vmul.f32 %v5753_v19, %v877_v41  ;;  %v950_v35 = vadd.f32 %v5766_v54, %v912_v62  ;;  %v951_v21 = vadd.f32 %v5766_v54, %v913_v33  ;;  %v880_v34 = vmul.f32 %v5748_v48, %v5698_v51 }
 0x12d   : > { %v952_v37 = vadd.f32 %v5766_v54, %v914_v0  ;;  %v881_v40 = vmul.f32 %v5748_v48, %v5704_v55  ;;  %v916_v42 = vmul.f32 %v5753_v19, %v878_v36  ;;  %v917_v39 = vmul.f32 %v5753_v19, %v879_v11 }
 0x12e   : > { %v953_v2 = vadd.f32 %v5766_v54, %v915_v5  ;;  %v989_v8 = vpack.c.bf16 %v951_v21, %v950_v35  ;;  %v918_v44 = vmul.f32 %v5753_v19, %v880_v34  ;;  %v882_v51 = vmul.f32 %v5748_v48, %v5710_v59 }
 0x12f   : > { %v919_v47 = vmul.f32 %v5753_v19, %v881_v40  ;;  %v954_v45 = vadd.f32 %v5766_v54, %v916_v42  ;;  %v955_v49 = vadd.f32 %v5766_v54, %v917_v39  ;;  %v883_v55 = vmul.f32 %v5748_v48, %v5716_v63 }
 0x130   : > { %v990_v43 = vpack.c.bf16 %v953_v2, %v952_v37  ;;  %v956_v13 = vadd.f32 %v5766_v54, %v918_v44  ;;  %v884_v23 = vmul.f32 %v5748_v48, %v5722_v3  ;;  %v885_v46 = vmul.f32 %v5748_v48, %v5728_v10 }
 0x131   : > { %v957_v7 = vadd.f32 %v5766_v54, %v919_v47  ;;  %v991_v16 = vpack.c.bf16 %v955_v49, %v954_v45  ;;  %v920_v50 = vmul.f32 %v5753_v19, %v882_v51  ;;  %v921_v53 = vmul.f32 %v5753_v19, %v883_v55 }
 0x132   : > { %v922_v20 = vmul.f32 %v5753_v19, %v884_v23  ;;  %v923_v63 = vmul.f32 %v5753_v19, %v885_v46  ;;  %v886_v3 = vmul.f32 %v5748_v48, %v5734_v14  ;;  %v887_v10 = vmul.f32 %v5748_v48, %v5740_v17 }
 0x133   : > { %4640 = vmatmul.mubr.bf16.gmra.mxu0 %v985_v56  ;;  %v992_v59 = vpack.c.bf16 %v957_v7, %v956_v13  ;;  %v958_v57 = vadd.f32 %v5766_v54, %v920_v50  ;;  %v959_v52 = vadd.f32 %v5766_v54, %v921_v53 }
 0x134   : > { %4643 = vmatprep.mubr.bf16.mxu0 %v986_v9  ;;  %v960_v22 = vadd.f32 %v5766_v54, %v922_v20  ;;  %v961_v61 = vadd.f32 %v5766_v54, %v923_v63  ;;  %v924_v25 = vmul.f32 %v5753_v19, %v886_v3  ;;  %v925_v24 = vmul.f32 %v5753_v19, %v887_v10 }
 0x135   : > { %v993_v1 = vpack.c.bf16 %v959_v52, %v958_v57 }
 0x136   : > { %v994_v26 = vpack.c.bf16 %v961_v61, %v960_v22  ;;  %v962_v28 = vadd.f32 %v5766_v54, %v924_v25  ;;  %v963_v56 = vadd.f32 %v5766_v54, %v925_v24 }
 0x138   : > { %v995_v14 = vpack.c.bf16 %v963_v56, %v962_v28 }
 0x13b   : > { %4644 = vmatmul.mubr.bf16.gmra.mxu0 %v987_v31 }
 0x13c   : > { %4647 = vmatprep.mubr.bf16.mxu0 %v988_v32 }
 0x143   : > { %4648 = vmatmul.mubr.bf16.gmra.mxu0 %v989_v8 }
 0x144   : > { %4651 = vmatprep.mubr.bf16.mxu0 %v990_v43 }
 0x14b   : > { %4652 = vmatmul.mubr.bf16.gmra.mxu0 %v991_v16 }
 0x14c   : > { %4655 = vmatprep.mubr.bf16.mxu0 %v992_v59 }
 0x153   : > { %4656 = vmatmul.mubr.bf16.gmra.mxu0 %v993_v1 }
 0x154   : > { %4659 = vmatprep.mubr.bf16.mxu0 %v994_v26 }
 0x15b   : > { %4660 = vmatmul.mubr.bf16.gmra.mxu0 %v995_v14 }
 0x1e3   : > { %v4633_v17 = vpop.f32.mrf.mxu0 }
 0x1e4   : > { %v5897_v58 = vadd.f32 %v4633_v17, %v5891_v30 }
 0x1e5   : > { %v1085_v48 = vpop.f32.mrf.mxu0 }
 0x1e6   : > { %v5894_v9 = vadd.f32 %v5891_v30, %v1085_v48  ;;  %v1218_v60 = vsel %vm1214_vm0, %v5897_v58, 0.0 }
 0x1e7   : > { %v4634_v27 = vpop.f32.mrf.mxu0 }
 0x1e8   : > { %v1215_v29 = vsel %vm1214_vm0, %v5894_v9, 0.0  ;;  %v5905_v4 = vadd.f32 %v4634_v27, %v5891_v30 }
 0x1e9   : > { %v1088_v19 = vpop.f32.mrf.mxu0 }
 0x1ea   : > { %v5900_v54 = vadd.f32 %v5891_v30, %v1088_v19  ;;  %v1220_v62 = vsel %vm1214_vm0, %v5905_v4, 0.0 }
 0x1eb   : > { %v4637_v12 = vpop.f32.mrf.mxu0 }
 0x1ec   : > { %v1216_v15 = vsel %vm1214_vm0, %v5900_v54, 0.0  ;;  %v5917_v0 = vadd.f32 %v4637_v12, %v5891_v30 }
 0x1ed   : > { %v1217_v18 = vadd.f32 %v1216_v15, %v1215_v29  ;;  %v1101_v6 = vpop.f32.mrf.mxu0 }
 0x1ee   : > { %v5912_v38 = vadd.f32 %v5891_v30, %v1101_v6  ;;  %v1226_v40 = vsel %vm1214_vm0, %v5917_v0, 0.0 }
 0x1ef   : > { %v1219_v41 = vadd.f32 %v1218_v60, %v1217_v18  ;;  %v4638_v31 = vpop.f32.mrf.mxu0 }
 0x1f0   : > { %v1222_v5 = vsel %vm1214_vm0, %v5912_v38, 0.0  ;;  %v5925_v11 = vadd.f32 %v4638_v31, %v5891_v30 }
 0x1f1   : > { %v1221_v33 = vadd.f32 %v1220_v62, %v1219_v41  ;;  %v1104_v32 = vpop.f32.mrf.mxu0 }
 0x1f2   : > { %v5922_v35 = vadd.f32 %v5891_v30, %v1104_v32  ;;  %v1228_v43 = vsel %vm1214_vm0, %v5925_v11, 0.0 }
 0x1f3   : > { %v1223_v21 = vadd.f32 %v1222_v5, %v1221_v33  ;;  %v4641_v36 = vpop.f32.mrf.mxu0 }
 0x1f4   : > { %v1224_v37 = vsel %vm1214_vm0, %v5922_v35, 0.0  ;;  %v5937_v45 = vadd.f32 %v4641_v36, %v5891_v30 }
 0x1f5   : > { %v1225_v2 = vadd.f32 %v1224_v37, %v1223_v21  ;;  %v1117_v34 = vpop.f32.mrf.mxu0 }
 0x1f6   : > { %v5932_v8 = vadd.f32 %v5891_v30, %v1117_v34  ;;  %v1234_v50 = vsel %vm1214_vm0, %v5937_v45, 0.0 }
 0x1f7   : > { %v1227_v42 = vadd.f32 %v1226_v40, %v1225_v2  ;;  %v4642_v39 = vpop.f32.mrf.mxu0 }
 0x1f8   : > { %v1230_v49 = vsel %vm1214_vm0, %v5932_v8, 0.0  ;;  %v5945_v7 = vadd.f32 %v4642_v39, %v5891_v30 }
 0x1f9   : > { %v1229_v44 = vadd.f32 %v1228_v43, %v1227_v42  ;;  %v1120_v47 = vpop.f32.mrf.mxu0 }
 0x1fa   : > { %v5942_v51 = vadd.f32 %v5891_v30, %v1120_v47  ;;  %v1236_v63 = vsel %vm1214_vm0, %v5945_v7, 0.0 }
 0x1fb   : > { %v1231_v55 = vadd.f32 %v1230_v49, %v1229_v44  ;;  %v4645_v13 = vpop.f32.mrf.mxu0 }
 0x1fc   : > { %v1232_v23 = vsel %vm1214_vm0, %v5942_v51, 0.0  ;;  %v5957_v3 = vadd.f32 %v4645_v13, %v5891_v30 }
 0x1fd   : > { %v1233_v46 = vadd.f32 %v1232_v23, %v1231_v55  ;;  %v1133_v16 = vpop.f32.mrf.mxu0 }
 0x1fe   : > { %v5952_v53 = vadd.f32 %v5891_v30, %v1133_v16  ;;  %v1242_v56 = vsel %vm1214_vm0, %v5957_v3, 0.0 }
 0x1ff   : > { %v1235_v59 = vadd.f32 %v1234_v50, %v1233_v46  ;;  %v4646_v20 = vpop.f32.mrf.mxu0 }
 0x200   : > { %v1238_v10 = vsel %vm1214_vm0, %v5952_v53, 0.0  ;;  %v5965_v25 = vadd.f32 %v4646_v20, %v5891_v30 }
 0x201   : > { %v1237_v57 = vadd.f32 %v1236_v63, %v1235_v59  ;;  %v1136_v52 = vpop.f32.mrf.mxu0 }
 0x202   : > { %v5962_v22 = vadd.f32 %v5891_v30, %v1136_v52  ;;  %v1244_v27 = vsel %vm1214_vm0, %v5965_v25, 0.0 }
 0x203   : > { %v1239_v61 = vadd.f32 %v1238_v10, %v1237_v57  ;;  %v4649_v1 = vpop.f32.mrf.mxu0 }
 0x204   : > { %v1240_v24 = vsel %vm1214_vm0, %v5962_v22, 0.0  ;;  %v5977_v29 = vadd.f32 %v4649_v1, %v5891_v30 }
 0x205   : > { %v1241_v26 = vadd.f32 %v1240_v24, %v1239_v61  ;;  %v1149_v28 = vpop.f32.mrf.mxu0 }
 0x206   : > { %v5972_v14 = vadd.f32 %v5891_v30, %v1149_v28  ;;  %v1250_v32 = vsel %vm1214_vm0, %v5977_v29, 0.0 }
 0x207   : > { %v1243_v17 = vadd.f32 %v1242_v56, %v1241_v26  ;;  %v4650_v48 = vpop.f32.mrf.mxu0 }
 0x208   : > { %v1246_v15 = vsel %vm1214_vm0, %v5972_v14, 0.0  ;;  %v5985_v41 = vadd.f32 %v4650_v48, %v5891_v30 }
 0x209   : > { %v1245_v19 = vadd.f32 %v1244_v27, %v1243_v17  ;;  %v1152_v12 = vpop.f32.mrf.mxu0 }
 0x20a   : > { %v5982_v18 = vadd.f32 %v5891_v30, %v1152_v12  ;;  %v1252_v37 = vsel %vm1214_vm0, %v5985_v41, 0.0 }
 0x20b   : > { %v1247_v6 = vadd.f32 %v1246_v15, %v1245_v19  ;;  %v4653_v60 = vpop.f32.mrf.mxu0 }
 0x20c   : > { %v1248_v31 = vsel %vm1214_vm0, %v5982_v18, 0.0  ;;  %v5997_v40 = vadd.f32 %v4653_v60, %v5891_v30 }
 0x20d   : > { %v1249_v62 = vadd.f32 %v1248_v31, %v1247_v6  ;;  %v1165_v33 = vpop.f32.mrf.mxu0 }
 0x20e   : > { %v5992_v5 = vadd.f32 %v5891_v30, %v1165_v33  ;;  %v1258_v23 = vsel %vm1214_vm0, %v5997_v40, 0.0 }
 0x20f   : > { %v1251_v21 = vadd.f32 %v1250_v32, %v1249_v62  ;;  %v4654_v36 = vpop.f32.mrf.mxu0 }
 0x210   : > { %v1254_v42 = vsel %vm1214_vm0, %v5992_v5, 0.0  ;;  %v6005_v47 = vadd.f32 %v4654_v36, %v5891_v30 }
 0x211   : > { %v1253_v2 = vadd.f32 %v1252_v37, %v1251_v21  ;;  %v1168_v34 = vpop.f32.mrf.mxu0 }
 0x212   : > { %v6002_v39 = vadd.f32 %v5891_v30, %v1168_v34  ;;  %v1260_v59 = vsel %vm1214_vm0, %v6005_v47, 0.0 }
 0x213   : > { %v1255_v43 = vadd.f32 %v1254_v42, %v1253_v2  ;;  %v4657_v44 = vpop.f32.mrf.mxu0 }
 0x214   : > { %v1256_v49 = vsel %vm1214_vm0, %v6002_v39, 0.0  ;;  %v6017_v57 = vadd.f32 %v4657_v44, %v5891_v30 }
 0x215   : > { %v1257_v55 = vadd.f32 %v1256_v49, %v1255_v43  ;;  %v1181_v13 = vpop.f32.mrf.mxu0 }
 0x216   : > { %v6012_v46 = vadd.f32 %v5891_v30, %v1181_v13  ;;  %v1266_v17 = vsel %vm1214_vm0, %v6017_v57, 0.0 }
 0x217   : > { %v1259_v16 = vadd.f32 %v1258_v23, %v1257_v55  ;;  %v4658_v50 = vpop.f32.mrf.mxu0 }
 0x218   : > { %v1262_v52 = vsel %vm1214_vm0, %v6012_v46, 0.0  ;;  %v6025_v24 = vadd.f32 %v4658_v50, %v5891_v30 }
 0x219   : > { %v1261_v20 = vadd.f32 %v1260_v59, %v1259_v16  ;;  %v1184_v63 = vpop.f32.mrf.mxu0  ;;  %v4809_v16 = vld [vmem:[%s9254_s8 + $0x10] sm:$0xff]   ;;  %v4810_v59 = vld [vmem:[%s9254_s8 + $0x8] sm:$0xff]  }
 0x21a   : > { %v6022_v10 = vadd.f32 %v5891_v30, %v1184_v63  ;;  %v1268_v12 = vsel %vm1214_vm0, %v6025_v24, 0.0 }
 0x21b   : > { %v1263_v61 = vadd.f32 %v1262_v52, %v1261_v20  ;;  %v4661_v1 = vpop.f32.mrf.mxu0  ;;  %v4811_v52 = vld [vmem:[%s9254_s8] sm:$0xff]  }
 0x21c   : > { %v1264_v26 = vsel %vm1214_vm0, %v6022_v10, 0.0  ;;  %v6037_v60 = vadd.f32 %v4661_v1, %v5891_v30 }
 0x21d   : > { %v1265_v28 = vadd.f32 %v1264_v26, %v1263_v61  ;;  %v1197_v56 = vpop.f32.mrf.mxu0 }
 0x21e   : > { %v6032_v48 = vadd.f32 %v5891_v30, %v1197_v56  ;;  %v1274_v37 = vsel %vm1214_vm0, %v6037_v60, 0.0 }
 0x21f   : > { %v1267_v27 = vadd.f32 %v1266_v17, %v1265_v28  ;;  %v4662_v19 = vpop.f32.mrf.mxu0 }
 0x220   : > { %v1270_v31 = vsel %vm1214_vm0, %v6032_v48, 0.0  ;;  %v6045_v32 = vadd.f32 %v4662_v19, %v5891_v30 }
 0x221   : > { %v1269_v15 = vadd.f32 %v1268_v12, %v1267_v27  ;;  %v1200_v6 = vpop.f32.mrf.mxu0 }
 0x222   : > { %v6042_v62 = vadd.f32 %v5891_v30, %v1200_v6  ;;  %v1276_v34 = vsel %vm1214_vm0, %v6045_v32, 0.0  ;;  %v4808_v30 = vld [vmem:[%s9254_s8 + $0x18] sm:$0xff]  }
 0x223   : > { %v1271_v33 = vadd.f32 %v1270_v31, %v1269_v15  ;;  %4663 = vmatprep.subr.bf16.mxu1 %v4808_v30 }
 0x224   : > { %v1272_v21 = vsel %vm1214_vm0, %v6042_v62, 0.0  ;;  %4664 = vmatpush3.bf16.msra.mxu1 %v4808_v30 }
 0x225   : > { %v1273_v36 = vadd.f32 %v1272_v21, %v1271_v33  ;;  %4665 = vmatprep.subr.bf16.mxu1 %v4809_v16 }
 0x227   : > { %v1275_v2 = vadd.f32 %v1274_v37, %v1273_v36 }
 0x228   : > { %4666 = vmatpush3.bf16.msra.mxu1 %v4809_v16 }
 0x229   : > { %v1277_v42 = vadd.f32 %v1276_v34, %v1275_v2  ;;  %4667 = vmatprep.subr.bf16.mxu1 %v4810_v59 }
 0x22b   : > { %v1278_v43 = vrot.slane %v1277_v42, 4 }
 0x22c   : > { %4668 = vmatpush3.bf16.msra.mxu1 %v4810_v59 }
 0x22d   : > { %v1279_v44 = vadd.f32 %v1278_v43, %v1277_v42  ;;  %4669 = vmatprep.subr.bf16.mxu1 %v4811_v52 }
 0x22f   : > { %v1280_v49 = vrot.slane %v1279_v44, 2 }
 0x230   : > { %4670 = vmatpush3.bf16.msra.mxu1 %v4811_v52 }
 0x231   : > { %v1281_v55 = vadd.f32 %v1280_v49, %v1279_v44 }
 0x233   : > { %v1282_v13 = vrot.slane %v1281_v55, 1 }
 0x235   : > { %v1283_v23 = vadd.f32 %v1282_v13, %v1281_v55 }
 0x237   : > { %v6059_v50 = vmul.f32 0.00390625, %v1283_v23 }
 0x239   : > { %v6066_v20 = vsub.f32 %v5894_v9, %v6059_v50  ;;  %v6070_v63 = vsub.f32 %v5900_v54, %v6059_v50  ;;  %v6077_v61 = vsub.f32 %v5897_v58, %v6059_v50  ;;  %v6081_v1 = vsub.f32 %v5905_v4, %v6059_v50 }
 0x23a   : > { %v6089_v26 = vsub.f32 %v5912_v38, %v6059_v50  ;;  %v6095_v28 = vsub.f32 %v5922_v35, %v6059_v50  ;;  %v6103_v19 = vsub.f32 %v5917_v0, %v6059_v50  ;;  %v6110_v35 = vsub.f32 %v5925_v11, %v6059_v50 }
 0x23b   : > { %v1317_v9 = vmul.f32 %v6066_v20, %v6066_v20  ;;  %v1318_v54 = vmul.f32 %v6070_v63, %v6070_v63  ;;  %v1319_v58 = vmul.f32 %v6077_v61, %v6077_v61  ;;  %v1320_v4 = vmul.f32 %v6081_v1, %v6081_v1 }
 0x23c   : > { %v1321_v38 = vmul.f32 %v6089_v26, %v6089_v26  ;;  %v1322_v6 = vmul.f32 %v6095_v28, %v6095_v28  ;;  %v6117_v0 = vsub.f32 %v5932_v8, %v6059_v50  ;;  %v1323_v21 = vmul.f32 %v6103_v19, %v6103_v19 }
 0x23d   : > { %v1349_v56 = vsel %vm1214_vm0, %v1317_v9, 0.0  ;;  %v1350_v17 = vsel %vm1214_vm0, %v1318_v54, 0.0  ;;  %v1352_v12 = vsel %vm1214_vm0, %v1319_v58, 0.0  ;;  %v1354_v31 = vsel %vm1214_vm0, %v1320_v4, 0.0 }
 0x23e   : > { %v1351_v27 = vadd.f32 %v1350_v17, %v1349_v56  ;;  %v1356_v36 = vsel %vm1214_vm0, %v1321_v38, 0.0  ;;  %v6124_v11 = vsub.f32 %v5942_v51, %v6059_v50  ;;  %v1324_v2 = vmul.f32 %v6110_v35, %v6110_v35 }
 0x23f   : > { %v1358_v34 = vsel %vm1214_vm0, %v1322_v6, 0.0  ;;  %v6131_v8 = vsub.f32 %v5937_v45, %v6059_v50  ;;  %v1325_v43 = vmul.f32 %v6117_v0, %v6117_v0  ;;  %v1360_v44 = vsel %vm1214_vm0, %v1323_v21, 0.0 }
 0x240   : > { %v1353_v15 = vadd.f32 %v1352_v12, %v1351_v27  ;;  %v6138_v51 = vsub.f32 %v5945_v7, %v6059_v50  ;;  %v1326_v55 = vmul.f32 %v6124_v11, %v6124_v11  ;;  %v1362_v13 = vsel %vm1214_vm0, %v1324_v2, 0.0 }
 0x241   : > { %v6145_v45 = vsub.f32 %v5952_v53, %v6059_v50  ;;  %v1327_v23 = vmul.f32 %v6131_v8, %v6131_v8  ;;  %v1364_v16 = vsel %vm1214_vm0, %v1325_v43, 0.0  ;;  %v6152_v7 = vsub.f32 %v5962_v22, %v6059_v50 }
 0x242   : > { %v1355_v33 = vadd.f32 %v1354_v31, %v1353_v15  ;;  %v1328_v52 = vmul.f32 %v6138_v51, %v6138_v51  ;;  %v1366_v9 = vsel %vm1214_vm0, %v1326_v55, 0.0  ;;  %v6159_v53 = vsub.f32 %v5957_v3, %v6059_v50 }
 0x243   : > { %v1329_v58 = vmul.f32 %v6145_v45, %v6145_v45  ;;  %v1368_v4 = vsel %vm1214_vm0, %v1327_v23, 0.0  ;;  %v6166_v22 = vsub.f32 %v5965_v25, %v6059_v50  ;;  %v1330_v17 = vmul.f32 %v6152_v7, %v6152_v7 }
 0x244   : > { %v1357_v37 = vadd.f32 %v1356_v36, %v1355_v33  ;;  %v1370_v27 = vsel %vm1214_vm0, %v1328_v52, 0.0  ;;  %v6173_v3 = vsub.f32 %v5972_v14, %v6059_v50  ;;  %v1331_v12 = vmul.f32 %v6159_v53, %v6159_v53 }
 0x245   : > { %v1372_v15 = vsel %vm1214_vm0, %v1329_v58, 0.0  ;;  %v6180_v25 = vsub.f32 %v5982_v18, %v6059_v50  ;;  %v1332_v31 = vmul.f32 %v6166_v22, %v6166_v22  ;;  %v1374_v33 = vsel %vm1214_vm0, %v1330_v17, 0.0 }
 0x246   : > { %v1359_v42 = vadd.f32 %v1358_v34, %v1357_v37  ;;  %v6187_v14 = vsub.f32 %v5977_v29, %v6059_v50  ;;  %v1333_v36 = vmul.f32 %v6173_v3, %v6173_v3  ;;  %v1376_v37 = vsel %vm1214_vm0, %v1331_v12, 0.0 }
 0x247   : > { %v6194_v18 = vsub.f32 %v5985_v41, %v6059_v50  ;;  %v1334_v34 = vmul.f32 %v6180_v25, %v6180_v25  ;;  %v6201_v29 = vsub.f32 %v5992_v5, %v6059_v50  ;;  %v6208_v41 = vsub.f32 %v6002_v39, %v6059_v50 }
 0x248   : > { %v1361_v49 = vadd.f32 %v1360_v44, %v1359_v42  ;;  %v1378_v42 = vsel %vm1214_vm0, %v1332_v31, 0.0  ;;  %v1335_v44 = vmul.f32 %v6187_v14, %v6187_v14  ;;  %v6215_v5 = vsub.f32 %v5997_v40, %v6059_v50 }
 0x249   : > { %v6222_v39 = vsub.f32 %v6005_v47, %v6059_v50  ;;  %v6229_v40 = vsub.f32 %v6012_v46, %v6059_v50  ;;  %v6236_v47 = vsub.f32 %v6022_v10, %v6059_v50  ;;  %v6243_v46 = vsub.f32 %v6017_v57, %v6059_v50 }
 0x24a   : > { %v1363_v30 = vadd.f32 %v1362_v13, %v1361_v49  ;;  %v1380_v49 = vsel %vm1214_vm0, %v1333_v36, 0.0  ;;  %v1336_v13 = vmul.f32 %v6194_v18, %v6194_v18  ;;  %v6250_v10 = vsub.f32 %v6025_v24, %v6059_v50 }
 0x24b   : > { %v6257_v57 = vsub.f32 %v6032_v48, %v6059_v50  ;;  %v6264_v24 = vsub.f32 %v6042_v62, %v6059_v50  ;;  %v6271_v48 = vsub.f32 %v6037_v60, %v6059_v50  ;;  %v6278_v62 = vsub.f32 %v6045_v32, %v6059_v50 }
 0x24c   : > { %v1365_v59 = vadd.f32 %v1364_v16, %v1363_v30  ;;  %v1382_v30 = vsel %vm1214_vm0, %v1334_v34, 0.0  ;;  %v1337_v16 = vmul.f32 %v6201_v29, %v6201_v29 }
 0x24d   : > { %v1347_v60 = vmul.f32 %v6271_v48, %v6271_v48 }
 0x24e   : > { %v1367_v54 = vadd.f32 %v1366_v9, %v1365_v59  ;;  %v1384_v59 = vsel %vm1214_vm0, %v1335_v44, 0.0  ;;  %v1338_v9 = vmul.f32 %v6208_v41, %v6208_v41 }
 0x24f   : > { %v1408_v32 = vsel %vm1214_vm0, %v1347_v60, 0.0 }
 0x250   : > { %v1369_v56 = vadd.f32 %v1368_v4, %v1367_v54  ;;  %v1386_v54 = vsel %vm1214_vm0, %v1336_v13, 0.0  ;;  %v1339_v4 = vmul.f32 %v6215_v5, %v6215_v5 }
 0x252   : > { %v1371_v38 = vadd.f32 %v1370_v27, %v1369_v56  ;;  %v1388_v56 = vsel %vm1214_vm0, %v1337_v16, 0.0  ;;  %v1340_v27 = vmul.f32 %v6222_v39, %v6222_v39 }
 0x254   : > { %v1373_v6 = vadd.f32 %v1372_v15, %v1371_v38  ;;  %v1390_v38 = vsel %vm1214_vm0, %v1338_v9, 0.0  ;;  %v1341_v15 = vmul.f32 %v6229_v40, %v6229_v40  ;;  %v1348_v9 = vmul.f32 %v6278_v62, %v6278_v62 }
 0x256   : > { %v1375_v21 = vadd.f32 %v1374_v33, %v1373_v6  ;;  %v1392_v6 = vsel %vm1214_vm0, %v1339_v4, 0.0  ;;  %v1342_v33 = vmul.f32 %v6236_v47, %v6236_v47  ;;  %v1410_v4 = vsel %vm1214_vm0, %v1348_v9, 0.0 }
 0x258   : > { %v1377_v2 = vadd.f32 %v1376_v37, %v1375_v21  ;;  %v1394_v21 = vsel %vm1214_vm0, %v1340_v27, 0.0  ;;  %v1343_v37 = vmul.f32 %v6243_v46, %v6243_v46 }
 0x25a   : > { %v1379_v43 = vadd.f32 %v1378_v42, %v1377_v2  ;;  %v1396_v2 = vsel %vm1214_vm0, %v1341_v15, 0.0  ;;  %v1344_v42 = vmul.f32 %v6250_v10, %v6250_v10 }
 0x25c   : > { %v1381_v55 = vadd.f32 %v1380_v49, %v1379_v43  ;;  %v1398_v43 = vsel %vm1214_vm0, %v1342_v33, 0.0  ;;  %v1345_v49 = vmul.f32 %v6257_v57, %v6257_v57 }
 0x25e   : > { %v1383_v23 = vadd.f32 %v1382_v30, %v1381_v55  ;;  %v1400_v55 = vsel %vm1214_vm0, %v1343_v37, 0.0  ;;  %v1346_v30 = vmul.f32 %v6264_v24, %v6264_v24 }
 0x260   : > { %v1385_v52 = vadd.f32 %v1384_v59, %v1383_v23  ;;  %v1402_v23 = vsel %vm1214_vm0, %v1344_v42, 0.0  ;;  %v1404_v59 = vsel %vm1214_vm0, %v1345_v49, 0.0 }
 0x262   : > { %v1387_v58 = vadd.f32 %v1386_v54, %v1385_v52  ;;  %v1406_v54 = vsel %vm1214_vm0, %v1346_v30, 0.0 }
 0x264   : > { %v1389_v17 = vadd.f32 %v1388_v56, %v1387_v58 }
 0x266   : > { %v1391_v12 = vadd.f32 %v1390_v38, %v1389_v17 }
 0x268   : > { %v1393_v31 = vadd.f32 %v1392_v6, %v1391_v12 }
 0x26a   : > { %v1395_v36 = vadd.f32 %v1394_v21, %v1393_v31 }
 0x26c   : > { %v1397_v34 = vadd.f32 %v1396_v2, %v1395_v36  ;;  %v6300_v2 = vld [vmem:[%s9252_s6] ss:$0 sm:$0xff] }
 0x26e   : > { %v1399_v44 = vadd.f32 %v1398_v43, %v1397_v34 }
 0x270   : > { %v1401_v13 = vadd.f32 %v1400_v55, %v1399_v44 }
 0x272   : > { %v1403_v16 = vadd.f32 %v1402_v23, %v1401_v13 }
 0x274   : > { %v1405_v52 = vadd.f32 %v1404_v59, %v1403_v16 }
 0x276   : > { %v1407_v58 = vadd.f32 %v1406_v54, %v1405_v52 }
 0x278   : > { %v1409_v50 = vadd.f32 %v1408_v32, %v1407_v58 }
 0x27a   : > { %v1411_v56 = vadd.f32 %v1410_v4, %v1409_v50 }
 0x27c   : > { %v1412_v17 = vrot.slane %v1411_v56, 4 }
 0x27e   : > { %v1413_v27 = vadd.f32 %v1412_v17, %v1411_v56 }
 0x280   : > { %v1414_v38 = vrot.slane %v1413_v27, 2 }
 0x282   : > { %v1415_v12 = vadd.f32 %v1414_v38, %v1413_v27 }
 0x284   : > { %v1416_v15 = vrot.slane %v1415_v12, 1 }
 0x286   : > { %v1417_v6 = vadd.f32 %v1416_v15, %v1415_v12 }
 0x288   : > { %v1418_v31 = vmul.f32 0.00390625, %v1417_v6 }
 0x28a   : > { %v1419_v33 = vadd.f32 0.001, %v1418_v31 }
 0x28c   : > { %4854 = vrsqrt.f32 %v1419_v33 }
 0x299   : > { %v6291_v21 = vpop.eup %4854 }
 0x29a   : > { %v1423_v36 = vmul.f32 %v6291_v21, %v6077_v61  ;;  %v1424_v37 = vmul.f32 %v6291_v21, %v6081_v1  ;;  %v1425_v34 = vmul.f32 %v6291_v21, %v6089_v26  ;;  %v1426_v42 = vmul.f32 %v6291_v21, %v6095_v28  ;;  %v6311_v61 = vld [vmem:[%s9253_s7] ss:$0 sm:$0xff] }
 0x29b   : > { %v1421_v1 = vmul.f32 %v6291_v21, %v6066_v20  ;;  %v1422_v49 = vmul.f32 %v6291_v21, %v6070_v63  ;;  %v1427_v30 = vmul.f32 %v6291_v21, %v6103_v19  ;;  %v1428_v23 = vmul.f32 %v6291_v21, %v6110_v35 }
 0x29c   : > { %v1461_v43 = vmul.f32 %v6300_v2, %v1423_v36  ;;  %v1462_v44 = vmul.f32 %v6300_v2, %v1424_v37  ;;  %v1463_v26 = vmul.f32 %v6300_v2, %v1425_v34  ;;  %v1464_v55 = vmul.f32 %v6300_v2, %v1426_v42 }
 0x29d   : > { %v1429_v20 = vmul.f32 %v6291_v21, %v6117_v0  ;;  %v1430_v63 = vmul.f32 %v6291_v21, %v6124_v11  ;;  %v1459_v59 = vmul.f32 %v6300_v2, %v1421_v1  ;;  %v1460_v52 = vmul.f32 %v6300_v2, %v1422_v49 }
 0x29e   : > { %v1499_v28 = vadd.f32 %v6311_v61, %v1461_v43  ;;  %v1500_v13 = vadd.f32 %v6311_v61, %v1462_v44  ;;  %v1501_v16 = vadd.f32 %v6311_v61, %v1463_v26  ;;  %v1502_v60 = vadd.f32 %v6311_v61, %v1464_v55 }
 0x29f   : > { %v1497_v19 = vadd.f32 %v6311_v61, %v1459_v59  ;;  %v1498_v35 = vadd.f32 %v6311_v61, %v1460_v52  ;;  %v1465_v58 = vmul.f32 %v6300_v2, %v1427_v30  ;;  %v1466_v0 = vmul.f32 %v6300_v2, %v1428_v23 }
 0x2a0   : > { %v1531_v9 = vmax.f32 %v1499_v28, 0.0  ;;  %v1532_v54 = vmax.f32 %v1500_v13, 0.0  ;;  %v1467_v11 = vmul.f32 %v6300_v2, %v1429_v20  ;;  %v1468_v32 = vmul.f32 %v6300_v2, %v1430_v63 }
 0x2a1   : > { %v1533_v50 = vmax.f32 %v1501_v16, 0.0  ;;  %v1529_v4 = vmax.f32 %v1497_v19, 0.0  ;;  %v1530_v56 = vmax.f32 %v1498_v35, 0.0  ;;  %v1534_v17 = vmax.f32 %v1502_v60, 0.0 }
 0x2a2   : > { %v1570_v27 = vpack.c.bf16 %v1532_v54, %v1531_v9  ;;  %v1431_v38 = vmul.f32 %v6291_v21, %v6131_v8  ;;  %v1432_v15 = vmul.f32 %v6291_v21, %v6138_v51  ;;  %v1433_v6 = vmul.f32 %v6291_v21, %v6145_v45 }
 0x2a3   : > { %v1569_v12 = vpack.c.bf16 %v1530_v56, %v1529_v4  ;;  %v1503_v31 = vadd.f32 %v6311_v61, %v1465_v58  ;;  %v1504_v33 = vadd.f32 %v6311_v61, %v1466_v0  ;;  %v1434_v36 = vmul.f32 %v6291_v21, %v6152_v7 }
 0x2a4   : > { %v1505_v37 = vadd.f32 %v6311_v61, %v1467_v11  ;;  %v1506_v34 = vadd.f32 %v6311_v61, %v1468_v32  ;;  %v1571_v8 = vpack.c.bf16 %v1534_v17, %v1533_v50  ;;  %v1469_v51 = vmul.f32 %v6300_v2, %v1431_v38 }
 0x2a5   : > { %4671 = vmatprep.mubr.msk.bf16.mxu1 %vm1214_vm0, %v1569_v12  ;;  %v1470_v45 = vmul.f32 %v6300_v2, %v1432_v15  ;;  %v1535_v42 = vmax.f32 %v1503_v31, 0.0  ;;  %v1536_v43 = vmax.f32 %v1504_v33, 0.0  ;;  %v1471_v44 = vmul.f32 %v6300_v2, %v1433_v6 }
 0x2a6   : > { %4672 = vmatmul.mubr.msk.bf16.vlgmr.msra.gmra.mxu1 %vm1214_vm0, %v1570_v27  ;;  %v1472_v7 = vmul.f32 %v6300_v2, %v1434_v36  ;;  %v1537_v1 = vmax.f32 %v1505_v37, 0.0  ;;  %v1538_v49 = vmax.f32 %v1506_v34, 0.0  ;;  %v1435_v26 = vmul.f32 %v6291_v21, %v6159_v53 }
 0x2a7   : > { %4675 = vmatprep.mubr.msk.bf16.mxu1 %vm1214_vm0, %v1571_v8  ;;  %v1436_v55 = vmul.f32 %v6291_v21, %v6166_v22  ;;  %v1437_v28 = vmul.f32 %v6291_v21, %v6173_v3  ;;  %v1507_v13 = vadd.f32 %v6311_v61, %v1469_v51  ;;  %v1508_v30 = vadd.f32 %v6311_v61, %v1470_v45 }
 0x2a8   : > { %v1572_v23 = vpack.c.bf16 %v1536_v43, %v1535_v42  ;;  %v1438_v20 = vmul.f32 %v6291_v21, %v6180_v25  ;;  %v1509_v63 = vadd.f32 %v6311_v61, %v1471_v44  ;;  %v1510_v16 = vadd.f32 %v6311_v61, %v1472_v7 }
 0x2a9   : > { %v1573_v60 = vpack.c.bf16 %v1538_v49, %v1537_v1  ;;  %v1473_v53 = vmul.f32 %v6300_v2, %v1435_v26  ;;  %v1474_v22 = vmul.f32 %v6300_v2, %v1436_v55  ;;  %v1539_v3 = vmax.f32 %v1507_v13, 0.0 }
 0x2aa   : > { %v1540_v59 = vmax.f32 %v1508_v30, 0.0  ;;  %v1475_v52 = vmul.f32 %v6300_v2, %v1437_v28  ;;  %v1476_v9 = vmul.f32 %v6300_v2, %v1438_v20  ;;  %v1541_v25 = vmax.f32 %v1509_v63, 0.0 }
 0x2ab   : > { %v1542_v54 = vmax.f32 %v1510_v16, 0.0  ;;  %v1439_v19 = vmul.f32 %v6291_v21, %v6187_v14  ;;  %v1440_v35 = vmul.f32 %v6291_v21, %v6194_v18  ;;  %v1441_v58 = vmul.f32 %v6291_v21, %v6201_v29 }
 0x2ac   : > { %v1511_v0 = vadd.f32 %v6311_v61, %v1473_v53  ;;  %v1512_v11 = vadd.f32 %v6311_v61, %v1474_v22  ;;  %v1574_v32 = vpack.c.bf16 %v1540_v59, %v1539_v3  ;;  %v1442_v50 = vmul.f32 %v6291_v21, %v6208_v41 }
 0x2ad   : > { %v1513_v4 = vadd.f32 %v6311_v61, %v1475_v52  ;;  %v1514_v56 = vadd.f32 %v6311_v61, %v1476_v9  ;;  %v1575_v17 = vpack.c.bf16 %v1542_v54, %v1541_v25  ;;  %v1477_v14 = vmul.f32 %v6300_v2, %v1439_v19 }
 0x2ae   : > { %4676 = vmatmul.mubr.msk.bf16.gmra.mxu1 %vm1214_vm0, %v1572_v23  ;;  %v1478_v18 = vmul.f32 %v6300_v2, %v1440_v35  ;;  %v1543_v29 = vmax.f32 %v1511_v0, 0.0  ;;  %v1544_v27 = vmax.f32 %v1512_v11, 0.0  ;;  %v1479_v38 = vmul.f32 %v6300_v2, %v1441_v58 }
 0x2af   : > { %4679 = vmatprep.mubr.msk.bf16.mxu1 %vm1214_vm0, %v1573_v60  ;;  %v1480_v12 = vmul.f32 %v6300_v2, %v1442_v50  ;;  %v1545_v41 = vmax.f32 %v1513_v4, 0.0  ;;  %v1546_v15 = vmax.f32 %v1514_v56, 0.0  ;;  %v1443_v6 = vmul.f32 %v6291_v21, %v6215_v5 }
 0x2b0   : > { %v1444_v31 = vmul.f32 %v6291_v21, %v6222_v39  ;;  %v1445_v33 = vmul.f32 %v6291_v21, %v6229_v40  ;;  %v1515_v36 = vadd.f32 %v6311_v61, %v1477_v14  ;;  %v1516_v37 = vadd.f32 %v6311_v61, %v1478_v18 }
 0x2b1   : > { %v1576_v34 = vpack.c.bf16 %v1544_v27, %v1543_v29  ;;  %v1446_v8 = vmul.f32 %v6291_v21, %v6236_v47  ;;  %v1517_v51 = vadd.f32 %v6311_v61, %v1479_v38  ;;  %v1518_v45 = vadd.f32 %v6311_v61, %v1480_v12  ;;  %v6450_v12 = vld [vmem:[%s9255_s9] ss:$0 sm:$0xff] }
 0x2b2   : > { %v1577_v42 = vpack.c.bf16 %v1546_v15, %v1545_v41  ;;  %v1481_v5 = vmul.f32 %v6300_v2, %v1443_v6  ;;  %v1482_v39 = vmul.f32 %v6300_v2, %v1444_v31  ;;  %v1547_v40 = vmax.f32 %v1515_v36, 0.0 }
 0x2b3   : > { %v1548_v43 = vmax.f32 %v1516_v37, 0.0  ;;  %v1483_v44 = vmul.f32 %v6300_v2, %v1445_v33  ;;  %v1484_v7 = vmul.f32 %v6300_v2, %v1446_v8  ;;  %v1549_v47 = vmax.f32 %v1517_v51, 0.0 }
 0x2b4   : > { %v1550_v1 = vmax.f32 %v1518_v45, 0.0  ;;  %v1450_v49 = vmul.f32 %v6291_v21, %v6264_v24  ;;  %v1447_v26 = vmul.f32 %v6291_v21, %v6243_v46  ;;  %v1448_v55 = vmul.f32 %v6291_v21, %v6250_v10 }
 0x2b5   : > { %v1519_v28 = vadd.f32 %v6311_v61, %v1481_v5  ;;  %v1520_v13 = vadd.f32 %v6311_v61, %v1482_v39  ;;  %v1578_v30 = vpack.c.bf16 %v1548_v43, %v1547_v40  ;;  %v1449_v23 = vmul.f32 %v6291_v21, %v6257_v57 }
 0x2b6   : > { %4680 = vmatmul.mubr.msk.bf16.gmra.mxu1 %vm1214_vm0, %v1574_v32  ;;  %v1521_v20 = vadd.f32 %v6311_v61, %v1483_v44  ;;  %v1522_v63 = vadd.f32 %v6311_v61, %v1484_v7  ;;  %v1579_v16 = vpack.c.bf16 %v1550_v1, %v1549_v47  ;;  %v1485_v46 = vmul.f32 %v6300_v2, %v1447_v26 }
 0x2b7   : > { %4683 = vmatprep.mubr.msk.bf16.mxu1 %vm1214_vm0, %v1575_v17  ;;  %v1486_v10 = vmul.f32 %v6300_v2, %v1448_v55  ;;  %v1551_v24 = vmax.f32 %v1519_v28, 0.0  ;;  %v1552_v60 = vmax.f32 %v1520_v13, 0.0  ;;  %v1488_v53 = vmul.f32 %v6300_v2, %v1450_v49 }
 0x2b8   : > { %v1487_v22 = vmul.f32 %v6300_v2, %v1449_v23  ;;  %v1553_v57 = vmax.f32 %v1521_v20, 0.0  ;;  %v1554_v3 = vmax.f32 %v1522_v63, 0.0  ;;  %v1451_v59 = vmul.f32 %v6291_v21, %v6271_v48 }
 0x2b9   : > { %v1452_v52 = vmul.f32 %v6291_v21, %v6278_v62  ;;  %v1523_v9 = vadd.f32 %v6311_v61, %v1485_v46  ;;  %v1524_v25 = vadd.f32 %v6311_v61, %v1486_v10  ;;  %v1580_v54 = vpack.c.bf16 %v1552_v60, %v1551_v24 }
 0x2ba   : > { %v1526_v19 = vadd.f32 %v6311_v61, %v1488_v53  ;;  %v1525_v35 = vadd.f32 %v6311_v61, %v1487_v22  ;;  %v1581_v58 = vpack.c.bf16 %v1554_v3, %v1553_v57  ;;  %v1489_v0 = vmul.f32 %v6300_v2, %v1451_v59 }
 0x2bb   : > { %v1490_v48 = vmul.f32 %v6300_v2, %v1452_v52  ;;  %v1555_v11 = vmax.f32 %v1523_v9, 0.0  ;;  %v1556_v62 = vmax.f32 %v1524_v25, 0.0 }
 0x2bc   : > { %v1558_v21 = vmax.f32 %v1526_v19, 0.0  ;;  %v1557_v32 = vmax.f32 %v1525_v35, 0.0  ;;  %v1527_v50 = vadd.f32 %v6311_v61, %v1489_v0 }
 0x2bd   : > { %v1528_v4 = vadd.f32 %v6311_v61, %v1490_v48  ;;  %v1582_v56 = vpack.c.bf16 %v1556_v62, %v1555_v11 }
 0x2be   : > { %4684 = vmatmul.mubr.msk.bf16.gmra.mxu1 %vm1214_vm0, %v1576_v34  ;;  %v1583_v17 = vpack.c.bf16 %v1558_v21, %v1557_v32  ;;  %v1559_v14 = vmax.f32 %v1527_v50, 0.0 }
 0x2bf   : > { %4687 = vmatprep.mubr.msk.bf16.mxu1 %vm1214_vm0, %v1577_v42  ;;  %v1560_v18 = vmax.f32 %v1528_v4, 0.0 }
 0x2c1   : > { %v1584_v29 = vpack.c.bf16 %v1560_v18, %v1559_v14 }
 0x2c6   : > { %4688 = vmatmul.mubr.msk.bf16.gmra.mxu1 %vm1214_vm0, %v1578_v30 }
 0x2c7   : > { %4691 = vmatprep.mubr.msk.bf16.mxu1 %vm1214_vm0, %v1579_v16 }
 0x2ce   : > { %4692 = vmatmul.mubr.msk.bf16.gmra.mxu1 %vm1214_vm0, %v1580_v54 }
 0x2cf   : > { %4695 = vmatprep.mubr.msk.bf16.mxu1 %vm1214_vm0, %v1581_v58 }
 0x2d6   : > { %4696 = vmatmul.mubr.msk.bf16.gmra.mxu1 %vm1214_vm0, %v1582_v56 }
 0x2d7   : > { %4699 = vmatprep.mubr.msk.bf16.mxu1 %vm1214_vm0, %v1583_v17 }
 0x2de   : > { %4700 = vmatmul.mubr.msk.bf16.gmra.mxu1 %vm1214_vm0, %v1584_v29 }
 0x366   : > { %v4673_v2 = vpop.f32.mrf.mxu1 }
 0x367   : > { %v6459_v31 = vadd.f32 %v4673_v2, %v6450_v12 }
 0x368   : > { %v1698_v27 = vpop.f32.mrf.mxu1 }
 0x369   : > { %v6453_v41 = vadd.f32 %v6450_v12, %v1698_v27 }
 0x36a   : > { %v4674_v38 = vpop.f32.mrf.mxu1 }
 0x36b   : > { %v6464_v37 = vadd.f32 %v4674_v38, %v6450_v12 }
 0x36c   : > { %v1701_v61 = vpop.f32.mrf.mxu1 }
 0x36d   : > { %v6456_v15 = vadd.f32 %v6450_v12, %v1701_v61 }
 0x36e   : > { %v4677_v6 = vpop.f32.mrf.mxu1 }
 0x36f   : > { %v1827_v33 = vadd.f32 %v6456_v15, %v6453_v41  ;;  %v6476_v43 = vadd.f32 %v4677_v6, %v6450_v12 }
 0x370   : > { %v1714_v36 = vpop.f32.mrf.mxu1 }
 0x371   : > { %v1828_v34 = vadd.f32 %v1827_v33, %v6459_v31  ;;  %v6468_v51 = vadd.f32 %v6450_v12, %v1714_v36 }
 0x372   : > { %v4678_v8 = vpop.f32.mrf.mxu1 }
 0x373   : > { %v1829_v45 = vadd.f32 %v1828_v34, %v6464_v37  ;;  %v6480_v47 = vadd.f32 %v4678_v8, %v6450_v12 }
 0x374   : > { %v1717_v42 = vpop.f32.mrf.mxu1 }
 0x375   : > { %v1830_v5 = vadd.f32 %v1829_v45, %v6468_v51  ;;  %v6473_v39 = vadd.f32 %v6450_v12, %v1717_v42 }
 0x376   : > { %v4681_v40 = vpop.f32.mrf.mxu1 }
 0x377   : > { %v1831_v44 = vadd.f32 %v1830_v5, %v6473_v39  ;;  %v6492_v20 = vadd.f32 %v4681_v40, %v6450_v12 }
 0x378   : > { %v1730_v7 = vpop.f32.mrf.mxu1 }
 0x379   : > { %v1832_v1 = vadd.f32 %v1831_v44, %v6476_v43  ;;  %v6484_v26 = vadd.f32 %v6450_v12, %v1730_v7  ;;  %v4814_v44 = vld [vmem:[#allocation5 + $0x74] ss:$8 sps:$4 sm:$0xff]  }
 0x37a   : > { %v4682_v49 = vpop.f32.mrf.mxu1  ;;  %2233 = vmatprep.subr.bf16.mxu0 %v4814_v44  ;;  %4703 = vmatprep.subr.bf16.mxu1 %v4814_v44  ;;  %v4833_v44 = vld [vmem:[#allocation5] ss:$8 sps:$4 sm:$0xff]  }
 0x37b   : > { %v1833_v55 = vadd.f32 %v1832_v1, %v6480_v47  ;;  %v6496_v46 = vadd.f32 %v4682_v49, %v6450_v12  ;;  %v4812_v49 = vld [vmem:[#allocation5 + $0x70] ss:$8 sps:$4 sm:$0xff]  }
 0x37c   : > { %v1733_v28 = vpop.f32.mrf.mxu1  ;;  %2234 = vmatpush1.bf16.msra.mxu0 %v4812_v49  ;;  %4711 = vmatpush1.bf16.msra.mxu1 %v4812_v49 }
 0x37d   : > { %v1834_v13 = vadd.f32 %v1833_v55, %v6484_v26  ;;  %v6489_v30 = vadd.f32 %v6450_v12, %v1733_v28 }
 0x37e   : > { %v4685_v23 = vpop.f32.mrf.mxu1 }
 0x37f   : > { %v1835_v63 = vadd.f32 %v1834_v13, %v6489_v30  ;;  %v6508_v52 = vadd.f32 %v4685_v23, %v6450_v12 }
 0x380   : > { %v1746_v16 = vpop.f32.mrf.mxu1 }
 0x381   : > { %v1836_v10 = vadd.f32 %v1835_v63, %v6492_v20  ;;  %v6500_v60 = vadd.f32 %v6450_v12, %v1746_v16  ;;  %v4817_v63 = vld [vmem:[#allocation5 + $0x64] ss:$8 sps:$4 sm:$0xff]  }
 0x382   : > { %v4686_v24 = vpop.f32.mrf.mxu1  ;;  %2235 = vmatprep.subr.bf16.mxu0 %v4817_v63  ;;  %4704 = vmatprep.subr.bf16.mxu1 %v4817_v63 }
 0x383   : > { %v1837_v53 = vadd.f32 %v1836_v10, %v6496_v46  ;;  %v6512_v54 = vadd.f32 %v4686_v24, %v6450_v12  ;;  %v4815_v24 = vld [vmem:[#allocation5 + $0x60] ss:$8 sps:$4 sm:$0xff]  }
 0x384   : > { %v1749_v22 = vpop.f32.mrf.mxu1  ;;  %2236 = vmatpush1.bf16.msra.mxu0 %v4815_v24  ;;  %4712 = vmatpush1.bf16.msra.mxu1 %v4815_v24 }
 0x385   : > { %v1838_v57 = vadd.f32 %v1837_v53, %v6500_v60  ;;  %v6505_v3 = vadd.f32 %v6450_v12, %v1749_v22 }
 0x386   : > { %v4689_v59 = vpop.f32.mrf.mxu1 }
 0x387   : > { %v1839_v9 = vadd.f32 %v1838_v57, %v6505_v3  ;;  %v6524_v32 = vadd.f32 %v4689_v59, %v6450_v12 }
 0x388   : > { %v1762_v25 = vpop.f32.mrf.mxu1 }
 0x389   : > { %v1840_v19 = vadd.f32 %v1839_v9, %v6508_v52  ;;  %v6516_v58 = vadd.f32 %v6450_v12, %v1762_v25  ;;  %v4820_v9 = vld [vmem:[#allocation5 + $0x54] ss:$8 sps:$4 sm:$0xff]  }
 0x38a   : > { %v4690_v35 = vpop.f32.mrf.mxu1  ;;  %2237 = vmatprep.subr.bf16.mxu0 %v4820_v9  ;;  %4705 = vmatprep.subr.bf16.mxu1 %v4820_v9 }
 0x38b   : > { %v1841_v0 = vadd.f32 %v1840_v19, %v6512_v54  ;;  %v6528_v56 = vadd.f32 %v4690_v35, %v6450_v12  ;;  %v4818_v35 = vld [vmem:[#allocation5 + $0x50] ss:$8 sps:$4 sm:$0xff]  }
 0x38c   : > { %v1765_v48 = vpop.f32.mrf.mxu1  ;;  %2238 = vmatpush1.bf16.msra.mxu0 %v4818_v35  ;;  %4713 = vmatpush1.bf16.msra.mxu1 %v4818_v35 }
 0x38d   : > { %v1842_v11 = vadd.f32 %v1841_v0, %v6516_v58  ;;  %v6521_v62 = vadd.f32 %v6450_v12, %v1765_v48 }
 0x38e   : > { %v4693_v21 = vpop.f32.mrf.mxu1 }
 0x38f   : > { %v1843_v50 = vadd.f32 %v1842_v11, %v6521_v62  ;;  %v6540_v6 = vadd.f32 %v4693_v21, %v6450_v12  ;;  %v4823_v11 = vld [vmem:[#allocation5 + $0x44] ss:$8 sps:$4 sm:$0xff]  }
 0x390   : > { %v1778_v4 = vpop.f32.mrf.mxu1  ;;  %2239 = vmatprep.subr.bf16.mxu0 %v4823_v11  ;;  %4706 = vmatprep.subr.bf16.mxu1 %v4823_v11 }
 0x391   : > { %v1844_v17 = vadd.f32 %v1843_v50, %v6524_v32  ;;  %v6532_v18 = vadd.f32 %v6450_v12, %v1778_v4  ;;  %v4821_v4 = vld [vmem:[#allocation5 + $0x40] ss:$8 sps:$4 sm:$0xff]  }
 0x392   : > { %v4694_v14 = vpop.f32.mrf.mxu1  ;;  %2240 = vmatpush1.bf16.msra.mxu0 %v4821_v4  ;;  %4714 = vmatpush1.bf16.msra.mxu1 %v4821_v4 }
 0x393   : > { %v1845_v29 = vadd.f32 %v1844_v17, %v6528_v56  ;;  %v6544_v34 = vadd.f32 %v4694_v14, %v6450_v12  ;;  %v4826_v14 = vld [vmem:[#allocation5 + $0x34] ss:$8 sps:$4 sm:$0xff]  }
 0x394   : > { %v1781_v2 = vpop.f32.mrf.mxu1  ;;  %2241 = vmatprep.subr.bf16.mxu0 %v4826_v14  ;;  %4707 = vmatprep.subr.bf16.mxu1 %v4826_v14 }
 0x395   : > { %v1846_v27 = vadd.f32 %v1845_v29, %v6532_v18  ;;  %v6537_v38 = vadd.f32 %v6450_v12, %v1781_v2  ;;  %v4824_v2 = vld [vmem:[#allocation5 + $0x30] ss:$8 sps:$4 sm:$0xff]  }
 0x396   : > { %v4697_v61 = vpop.f32.mrf.mxu1  ;;  %2242 = vmatpush1.bf16.msra.mxu0 %v4824_v2  ;;  %4715 = vmatpush1.bf16.msra.mxu1 %v4824_v2 }
 0x397   : > { %v1847_v33 = vadd.f32 %v1846_v27, %v6537_v38  ;;  %v6556_v28 = vadd.f32 %v4697_v61, %v6450_v12  ;;  %v4829_v61 = vld [vmem:[#allocation5 + $0x24] ss:$8 sps:$4 sm:$0xff]  }
 0x398   : > { %v1794_v36 = vpop.f32.mrf.mxu1  ;;  %2243 = vmatprep.subr.bf16.mxu0 %v4829_v61  ;;  %4708 = vmatprep.subr.bf16.mxu1 %v4829_v61 }
 0x399   : > { %v1848_v8 = vadd.f32 %v1847_v33, %v6540_v6  ;;  %v6548_v42 = vadd.f32 %v6450_v12, %v1794_v36  ;;  %v4827_v33 = vld [vmem:[#allocation5 + $0x20] ss:$8 sps:$4 sm:$0xff]  }
 0x39a   : > { %v4698_v45 = vpop.f32.mrf.mxu1  ;;  %2244 = vmatpush1.bf16.msra.mxu0 %v4827_v33  ;;  %4716 = vmatpush1.bf16.msra.mxu1 %v4827_v33 }
 0x39b   : > { %v1849_v5 = vadd.f32 %v1848_v8, %v6544_v34  ;;  %v6560_v16 = vadd.f32 %v4698_v45, %v6450_v12  ;;  %v4832_v8 = vld [vmem:[#allocation5 + $0x14] ss:$8 sps:$4 sm:$0xff]   ;;  %v4830_v45 = vld [vmem:[#allocation5 + $0x10] ss:$8 sps:$4 sm:$0xff]  }
 0x39c   : > { %v1797_v40 = vpop.f32.mrf.mxu1  ;;  %2245 = vmatprep.subr.bf16.mxu0 %v4832_v8  ;;  %4709 = vmatprep.subr.bf16.mxu1 %v4832_v8 }
 0x39d   : > { %v1850_v7 = vadd.f32 %v1849_v5, %v6548_v42  ;;  %v6553_v1 = vadd.f32 %v6450_v12, %v1797_v40  ;;  %v4835_v40 = vld [vmem:[#allocation5 + $0x4] ss:$8 sps:$4 sm:$0xff]  }
 0x39e   : > { %v4701_v55 = vpop.f32.mrf.mxu1  ;;  %2246 = vmatpush1.bf16.msra.mxu0 %v4830_v45  ;;  %4717 = vmatpush1.bf16.msra.mxu1 %v4830_v45 }
 0x39f   : > { %v1851_v13 = vadd.f32 %v1850_v7, %v6553_v1  ;;  %v6572_v0 = vadd.f32 %v4701_v55, %v6450_v12  ;;  %2247 = vmatprep.subr.bf16.mxu0 %v4835_v40  ;;  %4710 = vmatprep.subr.bf16.mxu1 %v4835_v40 }
 0x3a0   : > { %v1810_v23 = vpop.f32.mrf.mxu1 }
 0x3a1   : > { %v1852_v10 = vadd.f32 %v1851_v13, %v6556_v28  ;;  %v6564_v22 = vadd.f32 %v6450_v12, %v1810_v23 }
 0x3a2   : > { %v4702_v53 = vpop.f32.mrf.mxu1  ;;  %2248 = vmatpush1.bf16.msra.mxu0 %v4833_v44  ;;  %4718 = vmatpush1.bf16.msra.mxu1 %v4833_v44 }
 0x3a3   : > { %v1853_v57 = vadd.f32 %v1852_v10, %v6560_v16  ;;  %v6576_v21 = vadd.f32 %v4702_v53, %v6450_v12 }
 0x3a4   : > { %v1813_v59 = vpop.f32.mrf.mxu1 }
 0x3a5   : > { %v1854_v25 = vadd.f32 %v1853_v57, %v6564_v22  ;;  %v6569_v19 = vadd.f32 %v6450_v12, %v1813_v59 }
 0x3a7   : > { %v1855_v48 = vadd.f32 %v1854_v25, %v6569_v19 }
 0x3a9   : > { %v1856_v50 = vadd.f32 %v1855_v48, %v6572_v0 }
 0x3ab   : > { %v1857_v17 = vadd.f32 %v1856_v50, %v6576_v21 }
 0x3ad   : > { %v1858_v29 = vrot.slane %v1857_v17, 4 }
 0x3af   : > { %v1859_v27 = vadd.f32 %v1858_v29, %v1857_v17 }
 0x3b1   : > { %v1860_v12 = vrot.slane %v1859_v27, 2 }
 0x3b3   : > { %v1861_v36 = vadd.f32 %v1860_v12, %v1859_v27 }
 0x3b5   : > { %v1862_v5 = vrot.slane %v1861_v36, 1 }
 0x3b7   : > { %v1863_v7 = vadd.f32 %v1862_v5, %v1861_v36 }
 0x3b9   : > { %v6580_v49 = vmul.f32 0.00390625, %v1863_v7 }
 0x3bb   : > { %v6584_v55 = vsub.f32 %v6453_v41, %v6580_v49  ;;  %v6588_v13 = vsub.f32 %v6456_v15, %v6580_v49  ;;  %v6592_v23 = vsub.f32 %v6459_v31, %v6580_v49  ;;  %v6600_v24 = vsub.f32 %v6464_v37, %v6580_v49 }
 0x3bc   : > { %v6604_v41 = vsub.f32 %v6468_v51, %v6580_v49  ;;  %v5145_v31 = vmov 0   ;;  %v6612_v57 = vsub.f32 %v6473_v39, %v6580_v49  ;;  %v6618_v51 = vsub.f32 %v6476_v43, %v6580_v49 }
 0x3bd   : > { %v1897_v63 = vmul.f32 %v6584_v55, %v6584_v55  ;;  %v1898_v10 = vmul.f32 %v6588_v13, %v6588_v13  ;;  %v1899_v15 = vmul.f32 %v6592_v23, %v6592_v23  ;;  %2265 = vmatprep.mubr.bf16.mxu0 %v5145_v31  ;;  %2335 = vmatprep.mubr.bf16.mxu1 %v5145_v31 }
 0x3be   : > { %v1900_v37 = vmul.f32 %v6600_v24, %v6600_v24  ;;  %v1901_v9 = vmul.f32 %v6604_v41, %v6604_v41  ;;  %v6624_v35 = vsub.f32 %v6480_v47, %v6580_v49  ;;  %v1902_v39 = vmul.f32 %v6612_v57, %v6612_v57 }
 0x3bf   : > { %v1929_v53 = vadd.f32 %v1898_v10, %v1897_v63  ;;  %v6630_v11 = vsub.f32 %v6484_v26, %v6580_v49  ;;  %v1903_v43 = vmul.f32 %v6618_v51, %v6618_v51  ;;  %v6636_v4 = vsub.f32 %v6489_v30, %v6580_v49 }
 0x3c0   : > { %v1904_v47 = vmul.f32 %v6624_v35, %v6624_v35  ;;  %v6642_v14 = vsub.f32 %v6492_v20, %v6580_v49  ;;  %v6648_v2 = vsub.f32 %v6496_v46, %v6580_v49  ;;  %v6654_v61 = vsub.f32 %v6500_v60, %v6580_v49 }
 0x3c1   : > { %v1930_v59 = vadd.f32 %v1929_v53, %v1899_v15  ;;  %v1905_v26 = vmul.f32 %v6630_v11, %v6630_v11  ;;  %v1906_v30 = vmul.f32 %v6636_v4, %v6636_v4  ;;  %v6660_v33 = vsub.f32 %v6505_v3, %v6580_v49 }
 0x3c2   : > { %v1907_v20 = vmul.f32 %v6642_v14, %v6642_v14  ;;  %v1908_v46 = vmul.f32 %v6648_v2, %v6648_v2  ;;  %v6666_v8 = vsub.f32 %v6508_v52, %v6580_v49  ;;  %v1909_v60 = vmul.f32 %v6654_v61, %v6654_v61 }
 0x3c3   : > { %v1931_v25 = vadd.f32 %v1930_v59, %v1900_v37  ;;  %v6672_v5 = vsub.f32 %v6512_v54, %v6580_v49  ;;  %v1910_v3 = vmul.f32 %v6660_v33, %v6660_v33  ;;  %v6678_v44 = vsub.f32 %v6516_v58, %v6580_v49 }
 0x3c4   : > { %v1911_v52 = vmul.f32 %v6666_v8, %v6666_v8  ;;  %v6684_v63 = vsub.f32 %v6521_v62, %v6580_v49  ;;  %v6690_v15 = vsub.f32 %v6524_v32, %v6580_v49  ;;  %v6696_v37 = vsub.f32 %v6528_v56, %v6580_v49 }
 0x3c5   : > { %v1932_v48 = vadd.f32 %v1931_v25, %v1901_v9  ;;  %v1912_v54 = vmul.f32 %v6672_v5, %v6672_v5  ;;  %v1913_v58 = vmul.f32 %v6678_v44, %v6678_v44  ;;  %v6702_v9 = vsub.f32 %v6532_v18, %v6580_v49 }
 0x3c6   : > { %v1914_v62 = vmul.f32 %v6684_v63, %v6684_v63  ;;  %v1915_v32 = vmul.f32 %v6690_v15, %v6690_v15  ;;  %v1916_v56 = vmul.f32 %v6696_v37, %v6696_v37 }
 0x3c7   : > { %v1933_v50 = vadd.f32 %v1932_v48, %v1902_v39  ;;  %v6708_v39 = vsub.f32 %v6537_v38, %v6580_v49  ;;  %v1917_v18 = vmul.f32 %v6702_v9, %v6702_v9 }
 0x3c9   : > { %v1934_v17 = vadd.f32 %v1933_v50, %v1903_v43  ;;  %v6714_v43 = vsub.f32 %v6540_v6, %v6580_v49  ;;  %v1918_v38 = vmul.f32 %v6708_v39, %v6708_v39 }
 0x3cb   : > { %v1935_v29 = vadd.f32 %v1934_v17, %v1904_v47  ;;  %v6720_v47 = vsub.f32 %v6544_v34, %v6580_v49  ;;  %v1919_v6 = vmul.f32 %v6714_v43, %v6714_v43 }
 0x3cd   : > { %v1936_v27 = vadd.f32 %v1935_v29, %v1905_v26  ;;  %v6726_v26 = vsub.f32 %v6548_v42, %v6580_v49  ;;  %v1920_v34 = vmul.f32 %v6720_v47, %v6720_v47 }
 0x3cf   : > { %v1937_v12 = vadd.f32 %v1936_v27, %v1906_v30  ;;  %v6732_v30 = vsub.f32 %v6553_v1, %v6580_v49  ;;  %v1921_v42 = vmul.f32 %v6726_v26, %v6726_v26 }
 0x3d1   : > { %v1938_v36 = vadd.f32 %v1937_v12, %v1907_v20  ;;  %v6738_v20 = vsub.f32 %v6556_v28, %v6580_v49  ;;  %v1922_v1 = vmul.f32 %v6732_v30, %v6732_v30 }
 0x3d3   : > { %v1939_v45 = vadd.f32 %v1938_v36, %v1908_v46  ;;  %v6744_v46 = vsub.f32 %v6560_v16, %v6580_v49  ;;  %v1923_v28 = vmul.f32 %v6738_v20, %v6738_v20 }
 0x3d5   : > { %v1940_v40 = vadd.f32 %v1939_v45, %v1909_v60  ;;  %v6750_v60 = vsub.f32 %v6564_v22, %v6580_v49  ;;  %v1924_v16 = vmul.f32 %v6744_v46, %v6744_v46 }
 0x3d7   : > { %v1941_v7 = vadd.f32 %v1940_v40, %v1910_v3  ;;  %v6756_v3 = vsub.f32 %v6569_v19, %v6580_v49 }
 0x3d9   : > { %v1942_v10 = vadd.f32 %v1941_v7, %v1911_v52  ;;  %v1895_v52 = vsub.f32 %v6572_v0, %v6580_v49  ;;  %v1925_v7 = vmul.f32 %v6750_v60, %v6750_v60 }
 0x3db   : > { %v1943_v53 = vadd.f32 %v1942_v10, %v1912_v54  ;;  %v1896_v54 = vsub.f32 %v6576_v21, %v6580_v49  ;;  %v1926_v10 = vmul.f32 %v6756_v3, %v6756_v3  ;;  %v1927_v19 = vmul.f32 %v1895_v52, %v1895_v52 }
 0x3dd   : > { %v1944_v59 = vadd.f32 %v1943_v53, %v1913_v58 }
 0x3df   : > { %v1945_v25 = vadd.f32 %v1944_v59, %v1914_v62  ;;  %v1928_v62 = vmul.f32 %v1896_v54, %v1896_v54 }
 0x3e1   : > { %v1946_v48 = vadd.f32 %v1945_v25, %v1915_v32 }
 0x3e3   : > { %v1947_v50 = vadd.f32 %v1946_v48, %v1916_v56 }
 0x3e5   : > { %v1948_v17 = vadd.f32 %v1947_v50, %v1917_v18 }
 0x3e7   : > { %v1949_v29 = vadd.f32 %v1948_v17, %v1918_v38 }
 0x3e9   : > { %v1950_v27 = vadd.f32 %v1949_v29, %v1919_v6 }
 0x3eb   : > { %v1951_v12 = vadd.f32 %v1950_v27, %v1920_v34  ;;  %v6781_v27 = vld [vmem:[%s9256_s10] ss:$0 sm:$0xff] }
 0x3ed   : > { %v1952_v36 = vadd.f32 %v1951_v12, %v1921_v42 }
 0x3ef   : > { %v1953_v45 = vadd.f32 %v1952_v36, %v1922_v1 }
 0x3f1   : > { %v1954_v40 = vadd.f32 %v1953_v45, %v1923_v28 }
 0x3f3   : > { %v1955_v22 = vadd.f32 %v1954_v40, %v1924_v16 }
 0x3f5   : > { %v1956_v58 = vadd.f32 %v1955_v22, %v1925_v7 }
 0x3f7   : > { %v1957_v53 = vadd.f32 %v1956_v58, %v1926_v10 }
 0x3f9   : > { %v1958_v59 = vadd.f32 %v1957_v53, %v1927_v19 }
 0x3fb   : > { %v1959_v32 = vadd.f32 %v1958_v59, %v1928_v62 }
 0x3fd   : > { %v1960_v25 = vrot.slane %v1959_v32, 4 }
 0x3ff   : > { %v1961_v56 = vadd.f32 %v1960_v25, %v1959_v32 }
 0x401   : > { %v1962_v48 = vrot.slane %v1961_v56, 2 }
 0x403   : > { %v1963_v0 = vadd.f32 %v1962_v48, %v1961_v56 }
 0x405   : > { %v1964_v18 = vrot.slane %v1963_v0, 1 }
 0x407   : > { %v1965_v50 = vadd.f32 %v1964_v18, %v1963_v0 }
 0x409   : > { %v1966_v38 = vmul.f32 0.00390625, %v1965_v50 }
 0x40b   : > { %v1967_v17 = vadd.f32 0.001, %v1966_v38 }
 0x40d   : > { %4856 = vrsqrt.f32 %v1967_v17 }
 0x41a   : > { %v6768_v6 = vpop.eup %4856 }
 0x41b   : > { %v1969_v21 = vmul.f32 %v6768_v6, %v6584_v55  ;;  %v1970_v49 = vmul.f32 %v6768_v6, %v6588_v13  ;;  %v1983_v29 = vmul.f32 %v6768_v6, %v6666_v8  ;;  %v1984_v34 = vmul.f32 %v6768_v6, %v6672_v5 }
 0x41c   : > { %v1971_v42 = vmul.f32 %v6768_v6, %v6592_v23  ;;  %v1972_v55 = vmul.f32 %v6768_v6, %v6600_v24  ;;  %v1985_v13 = vmul.f32 %v6768_v6, %v6678_v44  ;;  %v1986_v8 = vmul.f32 %v6768_v6, %v6684_v63  ;;  %v6800_v24 = vld [vmem:[%s9257_s11] ss:$0 sm:$0xff] }
 0x41d   : > { %v1999_v12 = vmul.f32 %v6768_v6, %v1895_v52  ;;  %v2000_v5 = vmul.f32 %v6768_v6, %v1896_v54  ;;  %v2007_v1 = vmul.f32 %v6781_v27, %v1969_v21  ;;  %v2008_v36 = vmul.f32 %v6781_v27, %v1970_v49 }
 0x41e   : > { %v2021_v28 = vmul.f32 %v6781_v27, %v1983_v29  ;;  %v2022_v23 = vmul.f32 %v6781_v27, %v1984_v34  ;;  %v2009_v44 = vmul.f32 %v6781_v27, %v1971_v42  ;;  %v2010_v63 = vmul.f32 %v6781_v27, %v1972_v55 }
 0x41f   : > { %v2023_v45 = vmul.f32 %v6781_v27, %v1985_v13  ;;  %v2024_v16 = vmul.f32 %v6781_v27, %v1986_v8  ;;  %v2037_v40 = vmul.f32 %v6781_v27, %v1999_v12  ;;  %v2038_v52 = vmul.f32 %v6781_v27, %v2000_v5 }
 0x420   : > { %v2045_v7 = vadd.f32 %v6800_v24, %v2007_v1  ;;  %v2046_v22 = vadd.f32 %v6800_v24, %v2008_v36  ;;  %v2059_v54 = vadd.f32 %v6800_v24, %v2021_v28  ;;  %v2060_v10 = vadd.f32 %v6800_v24, %v2022_v23 }
 0x421   : > { %v1973_v58 = vmul.f32 %v6768_v6, %v6604_v41  ;;  %v1974_v19 = vmul.f32 %v6768_v6, %v6612_v57  ;;  %v1987_v25 = vmul.f32 %v6768_v6, %v6690_v15  ;;  %v1988_v56 = vmul.f32 %v6768_v6, %v6696_v37 }
 0x422   : > { %v2077_v53 = vmax.f32 %v2045_v7, 0.0  ;;  %v2078_v62 = vmax.f32 %v2046_v22, 0.0  ;;  %v2091_v59 = vmax.f32 %v2059_v54, 0.0  ;;  %v2092_v32 = vmax.f32 %v2060_v10, 0.0 }
 0x423   : > { %v2047_v48 = vadd.f32 %v6800_v24, %v2009_v44  ;;  %v2048_v0 = vadd.f32 %v6800_v24, %v2010_v63  ;;  %v2061_v41 = vadd.f32 %v6800_v24, %v2023_v45  ;;  %v2062_v57 = vadd.f32 %v6800_v24, %v2024_v16 }
 0x424   : > { %v2132_v18 = vpack.c.bf16 %v2092_v32, %v2091_v59  ;;  %v2125_v50 = vpack.c.bf16 %v2078_v62, %v2077_v53  ;;  %v2011_v38 = vmul.f32 %v6781_v27, %v1973_v58  ;;  %v2012_v17 = vmul.f32 %v6781_v27, %v1974_v19 }
 0x425   : > { %v2025_v15 = vmul.f32 %v6781_v27, %v1987_v25  ;;  %v2026_v37 = vmul.f32 %v6781_v27, %v1988_v56  ;;  %v2079_v21 = vmax.f32 %v2047_v48, 0.0  ;;  %v2080_v49 = vmax.f32 %v2048_v0, 0.0 }
 0x426   : > { %2266 = vmatmul.mubr.bf16.vlgmr.msra.gmra.mxu0 %v2125_v50  ;;  %2336 = vmatmul.mubr.bf16.vlgmr.msra.gmra.mxu1 %v2132_v18  ;;  %v2093_v29 = vmax.f32 %v2061_v41, 0.0  ;;  %v2094_v34 = vmax.f32 %v2062_v57, 0.0  ;;  %v1975_v42 = vmul.f32 %v6768_v6, %v6618_v51  ;;  %v1976_v55 = vmul.f32 %v6768_v6, %v6624_v35 }
 0x427   : > { %2275 = vmatprep.mubr.bf16.mxu0 %v5145_v31  ;;  %2345 = vmatprep.mubr.bf16.mxu1 %v5145_v31  ;;  %v1989_v13 = vmul.f32 %v6768_v6, %v6702_v9  ;;  %v1990_v8 = vmul.f32 %v6768_v6, %v6708_v39  ;;  %v2049_v12 = vadd.f32 %v6800_v24, %v2011_v38 }
 0x428   : > { %v2050_v5 = vadd.f32 %v6800_v24, %v2012_v17  ;;  %v2126_v1 = vpack.c.bf16 %v2080_v49, %v2079_v21  ;;  %v2133_v36 = vpack.c.bf16 %v2094_v34, %v2093_v29  ;;  %v2063_v28 = vadd.f32 %v6800_v24, %v2025_v15 }
 0x429   : > { %v2064_v23 = vadd.f32 %v6800_v24, %v2026_v37  ;;  %v2013_v51 = vmul.f32 %v6781_v27, %v1975_v42  ;;  %v2014_v35 = vmul.f32 %v6781_v27, %v1976_v55  ;;  %v2027_v9 = vmul.f32 %v6781_v27, %v1989_v13 }
 0x42a   : > { %v2028_v39 = vmul.f32 %v6781_v27, %v1990_v8  ;;  %v2081_v44 = vmax.f32 %v2049_v12, 0.0  ;;  %v2082_v63 = vmax.f32 %v2050_v5, 0.0  ;;  %v2095_v45 = vmax.f32 %v2063_v28, 0.0 }
 0x42b   : > { %v2096_v16 = vmax.f32 %v2064_v23, 0.0  ;;  %v2075_v7 = vadd.f32 %v6800_v24, %v2037_v40  ;;  %v2076_v22 = vadd.f32 %v6800_v24, %v2038_v52  ;;  %v1977_v54 = vmul.f32 %v6768_v6, %v6630_v11 }
 0x42c   : > { %v1978_v10 = vmul.f32 %v6768_v6, %v6636_v4  ;;  %v1991_v58 = vmul.f32 %v6768_v6, %v6714_v43  ;;  %v1992_v19 = vmul.f32 %v6768_v6, %v6720_v47  ;;  %v2051_v53 = vadd.f32 %v6800_v24, %v2013_v51 }
 0x42d   : > { %v2052_v62 = vadd.f32 %v6800_v24, %v2014_v35  ;;  %v2107_v59 = vmax.f32 %v2075_v7, 0.0  ;;  %v2108_v40 = vmax.f32 %v2076_v22, 0.0  ;;  %v2127_v32 = vpack.c.bf16 %v2082_v63, %v2081_v44 }
 0x42e   : > { %2276 = vmatmul.mubr.bf16.gmra.mxu0 %v2126_v1  ;;  %2346 = vmatmul.mubr.bf16.gmra.mxu1 %v2133_v36  ;;  %v2134_v52 = vpack.c.bf16 %v2096_v16, %v2095_v45  ;;  %v2065_v25 = vadd.f32 %v6800_v24, %v2027_v9  ;;  %v2066_v11 = vadd.f32 %v6800_v24, %v2028_v39  ;;  %v2083_v0 = vmax.f32 %v2051_v53, 0.0 }
 0x42f   : > { %2285 = vmatprep.mubr.bf16.mxu0 %v5145_v31  ;;  %2355 = vmatprep.mubr.bf16.mxu1 %v5145_v31  ;;  %v6862_v56 = vpack.c.bf16 %v2108_v40, %v2107_v59  ;;  %v2015_v4 = vmul.f32 %v6781_v27, %v1977_v54  ;;  %v2016_v43 = vmul.f32 %v6781_v27, %v1978_v10  ;;  %v2084_v18 = vmax.f32 %v2052_v62, 0.0 }
 0x430   : > { %v2029_v47 = vmul.f32 %v6781_v27, %v1991_v58  ;;  %v2030_v48 = vmul.f32 %v6781_v27, %v1992_v19  ;;  %v2097_v50 = vmax.f32 %v2065_v25, 0.0  ;;  %v2098_v41 = vmax.f32 %v2066_v11, 0.0 }
 0x431   : > { %v1979_v57 = vmul.f32 %v6768_v6, %v6642_v14  ;;  %v1980_v38 = vmul.f32 %v6768_v6, %v6648_v2  ;;  %v1993_v17 = vmul.f32 %v6768_v6, %v6726_v26  ;;  %v1994_v15 = vmul.f32 %v6768_v6, %v6732_v30 }
 0x432   : > { %v2053_v37 = vadd.f32 %v6800_v24, %v2015_v4  ;;  %v2054_v21 = vadd.f32 %v6800_v24, %v2016_v43  ;;  %v2128_v49 = vpack.c.bf16 %v2084_v18, %v2083_v0  ;;  %v2135_v29 = vpack.c.bf16 %v2098_v41, %v2097_v50 }
 0x433   : > { %v2067_v34 = vadd.f32 %v6800_v24, %v2029_v47  ;;  %v2068_v42 = vadd.f32 %v6800_v24, %v2030_v48  ;;  %v2017_v14 = vmul.f32 %v6781_v27, %v1979_v57  ;;  %v2018_v2 = vmul.f32 %v6781_v27, %v1980_v38 }
 0x434   : > { %v2031_v26 = vmul.f32 %v6781_v27, %v1993_v17  ;;  %v2032_v30 = vmul.f32 %v6781_v27, %v1994_v15  ;;  %v2085_v55 = vmax.f32 %v2053_v37, 0.0  ;;  %v2086_v13 = vmax.f32 %v2054_v21, 0.0 }
 0x435   : > { %v2099_v8 = vmax.f32 %v2067_v34, 0.0  ;;  %v2100_v12 = vmax.f32 %v2068_v42, 0.0  ;;  %v1981_v5 = vmul.f32 %v6768_v6, %v6654_v61  ;;  %v1982_v1 = vmul.f32 %v6768_v6, %v6660_v33 }
 0x436   : > { %2286 = vmatmul.mubr.bf16.gmra.mxu0 %v2127_v32  ;;  %2356 = vmatmul.mubr.bf16.gmra.mxu1 %v2134_v52  ;;  %v1995_v36 = vmul.f32 %v6768_v6, %v6738_v20  ;;  %v1996_v28 = vmul.f32 %v6768_v6, %v6744_v46  ;;  %v2055_v23 = vadd.f32 %v6800_v24, %v2017_v14 }
 0x437   : > { %2295 = vmatprep.mubr.bf16.mxu0 %v5145_v31  ;;  %2365 = vmatprep.mubr.bf16.mxu1 %v5145_v31  ;;  %v2056_v51 = vadd.f32 %v6800_v24, %v2018_v2  ;;  %v2129_v35 = vpack.c.bf16 %v2086_v13, %v2085_v55  ;;  %v2136_v9 = vpack.c.bf16 %v2100_v12, %v2099_v8 }
 0x438   : > { %v2069_v39 = vadd.f32 %v6800_v24, %v2031_v26  ;;  %v2070_v44 = vadd.f32 %v6800_v24, %v2032_v30  ;;  %v2019_v61 = vmul.f32 %v6781_v27, %v1981_v5  ;;  %v2020_v33 = vmul.f32 %v6781_v27, %v1982_v1  ;;  %v2141_v5 = vld [vmem:[%s9259_s13] sm:$0x3] }
 0x439   : > { %v2033_v20 = vmul.f32 %v6781_v27, %v1995_v36  ;;  %v2034_v46 = vmul.f32 %v6781_v27, %v1996_v28  ;;  %v2087_v63 = vmax.f32 %v2055_v23, 0.0  ;;  %v2088_v45 = vmax.f32 %v2056_v51, 0.0 }
 0x43a   : > { %v2101_v16 = vmax.f32 %v2069_v39, 0.0  ;;  %v2102_v7 = vmax.f32 %v2070_v44, 0.0  ;;  %v1998_v22 = vmul.f32 %v6768_v6, %v6756_v3  ;;  %v1997_v54 = vmul.f32 %v6768_v6, %v6750_v60 }
 0x43b   : > { %v2057_v10 = vadd.f32 %v6800_v24, %v2019_v61  ;;  %v2058_v58 = vadd.f32 %v6800_v24, %v2020_v33  ;;  %v2130_v19 = vpack.c.bf16 %v2088_v45, %v2087_v63  ;;  %v2071_v62 = vadd.f32 %v6800_v24, %v2033_v20 }
 0x43c   : > { %v2137_v53 = vpack.c.bf16 %v2102_v7, %v2101_v16  ;;  %v2072_v59 = vadd.f32 %v6800_v24, %v2034_v46  ;;  %v2036_v40 = vmul.f32 %v6781_v27, %v1998_v22  ;;  %v2035_v32 = vmul.f32 %v6781_v27, %v1997_v54 }
 0x43d   : > { %v2089_v60 = vmax.f32 %v2057_v10, 0.0  ;;  %v2090_v3 = vmax.f32 %v2058_v58, 0.0  ;;  %v2103_v6 = vmax.f32 %v2071_v62, 0.0 }
 0x43e   : > { %2296 = vmatmul.mubr.bf16.gmra.mxu0 %v2128_v49  ;;  %2366 = vmatmul.mubr.bf16.gmra.mxu1 %v2135_v29  ;;  %v2104_v52 = vmax.f32 %v2072_v59, 0.0  ;;  %v2073_v4 = vadd.f32 %v6800_v24, %v2035_v32  ;;  %v2074_v43 = vadd.f32 %v6800_v24, %v2036_v40  ;;  %v2143_v29 = vlaneseq }
 0x43f   : > { %2305 = vmatprep.mubr.bf16.mxu0 %v5145_v31  ;;  %2375 = vmatprep.mubr.bf16.mxu1 %v5145_v31  ;;  %v2131_v25 = vpack.c.bf16 %v2090_v3, %v2089_v60 }
 0x440   : > { %v2138_v11 = vpack.c.bf16 %v2104_v52, %v2103_v6  ;;  %v2105_v47 = vmax.f32 %v2073_v4, 0.0  ;;  %v2106_v27 = vmax.f32 %v2074_v43, 0.0  ;;  %v6941_v26 = vshrl.u32 %v2143_v29, 7 }
 0x442   : > { %v2139_v48 = vpack.c.bf16 %v2106_v27, %v2105_v47  ;;  %9403 = vst [vmem:[#allocation21_spill] sm:$0xff] %v6941_v26  ;;  %v6948_v12 = vsub.s32 0, %v6941_v26  ;;  %v6956_v28 = vsub.s32 1, %v6941_v26 }
 0x444   : > { %9404 = vst [vmem:[#allocation22_spill] sm:$0xff] %v6948_v12  ;;  %9405 = vst [vmem:[#allocation23_spill] sm:$0xff] %v6956_v28  ;;  %v6966_v44 = vrot.slane %v2141_v5, %v6956_v28 }
 0x446   : > { %2306 = vmatmul.mubr.bf16.gmra.mxu0 %v2129_v35  ;;  %2376 = vmatmul.mubr.bf16.gmra.mxu1 %v2136_v9  ;;  %v6961_v35 = vrot.slane %v2141_v5, %v6948_v12 }
 0x447   : > { %2315 = vmatprep.mubr.bf16.mxu0 %v5145_v31  ;;  %2385 = vmatprep.mubr.bf16.mxu1 %v5145_v31 }
 0x44e   : > { %2316 = vmatmul.mubr.bf16.gmra.mxu0 %v2130_v19  ;;  %2386 = vmatmul.mubr.bf16.gmra.mxu1 %v2137_v53 }
 0x44f   : > { %2325 = vmatprep.mubr.bf16.mxu0 %v5145_v31  ;;  %2395 = vmatprep.mubr.bf16.mxu1 %v5145_v31 }
 0x456   : > { %2326 = vmatmul.mubr.bf16.gmra.mxu0 %v2131_v25  ;;  %2396 = vmatmul.mubr.bf16.gmra.mxu1 %v2138_v11 }
 0x457   : > { %2405 = vmatprep.mubr.bf16.mxu1 %v5145_v31 }
 0x45e   : > { %2406 = vmatmul.mubr.bf16.gmra.mxu1 %v2139_v48 }
 0x45f   : > { %2415 = vmatprep.mubr.bf16.mxu1 %v5145_v31 }
 0x466   : > { %2416 = vmatmul.mubr.bf16.gmra.mxu1 %v6862_v56 }
 0x4e6   : > { %v2267_v0 = vpop.f32.mrf.mxu0  ;;  %v6923_v18 = vpop.f32.mrf.mxu1 }
 0x4e7   : > { %v6974_v46 = vadd.f32 %v2267_v0, %v6961_v35 }
 0x4e8   : > { %v2269_v50 = vpop.f32.mrf.mxu0  ;;  %v6925_v41 = vpop.f32.mrf.mxu1 }
 0x4e9   : > { %v6985_v22 = vadd.f32 %v2269_v50, %v6966_v44 }
 0x4ea   : > { %v2271_v57 = vpop.f32.mrf.mxu0  ;;  %v6927_v24 = vpop.f32.mrf.mxu1 }
 0x4eb   : > { %v6969_v61 = vadd.f32 %v2271_v57, %v6961_v35 }
 0x4ec   : > { %v2273_v38 = vpop.f32.mrf.mxu0  ;;  %v6929_v17 = vpop.f32.mrf.mxu1 }
 0x4ed   : > { %v6977_v63 = vadd.f32 %v2273_v38, %v6966_v44  ;;  %v2428_v54 = vadd.f32 %v6969_v61, %v6974_v46 }
 0x4ee   : > { %v2277_v15 = vpop.f32.mrf.mxu0  ;;  %v6931_v37 = vpop.f32.mrf.mxu1 }
 0x4ef   : > { %v6980_v45 = vadd.f32 %v2277_v15, %v6961_v35  ;;  %v2465_v62 = vadd.f32 %v6977_v63, %v6985_v22 }
 0x4f0   : > { %v2279_v21 = vpop.f32.mrf.mxu0  ;;  %v6933_v49 = vpop.f32.mrf.mxu1 }
 0x4f1   : > { %v6990_v10 = vadd.f32 %v2279_v21, %v6966_v44  ;;  %v2429_v59 = vadd.f32 %v2428_v54, %v6980_v45 }
 0x4f2   : > { %v2281_v31 = vpop.f32.mrf.mxu0  ;;  %v6935_v56 = vpop.f32.mrf.mxu1 }
 0x4f3   : > { %v6993_v58 = vadd.f32 %v2281_v31, %v6961_v35  ;;  %v2466_v6 = vadd.f32 %v2465_v62, %v6990_v10 }
 0x4f4   : > { %v2283_v34 = vpop.f32.mrf.mxu0  ;;  %v6937_v42 = vpop.f32.mrf.mxu1 }
 0x4f5   : > { %v7001_v40 = vadd.f32 %v2283_v34, %v6966_v44  ;;  %v2430_v52 = vadd.f32 %v2429_v59, %v6993_v58 }
 0x4f6   : > { %v2287_v14 = vpop.f32.mrf.mxu0  ;;  %v6939_v2 = vpop.f32.mrf.mxu1 }
 0x4f7   : > { %v7004_v32 = vadd.f32 %v2287_v14, %v6961_v35  ;;  %v2467_v47 = vadd.f32 %v2466_v6, %v7001_v40 }
 0x4f8   : > { %v2289_v30 = vpop.f32.mrf.mxu0  ;;  %v6943_v55 = vpop.f32.mrf.mxu1 }
 0x4f9   : > { %v7011_v25 = vadd.f32 %v2289_v30, %v6966_v44  ;;  %v2431_v27 = vadd.f32 %v2430_v52, %v7004_v32 }
 0x4fa   : > { %v2291_v13 = vpop.f32.mrf.mxu0  ;;  %v6945_v8 = vpop.f32.mrf.mxu1 }
 0x4fb   : > { %v7014_v11 = vadd.f32 %v2291_v13, %v6961_v35  ;;  %v2468_v38 = vadd.f32 %v2467_v47, %v7011_v25 }
 0x4fc   : > { %v2293_v1 = vpop.f32.mrf.mxu0  ;;  %v6953_v36 = vpop.f32.mrf.mxu1 }
 0x4fd   : > { %v7021_v48 = vadd.f32 %v2293_v1, %v6966_v44  ;;  %v2432_v15 = vadd.f32 %v2431_v27, %v7014_v11 }
 0x4fe   : > { %v2297_v23 = vpop.f32.mrf.mxu0  ;;  %v6958_v51 = vpop.f32.mrf.mxu1 }
 0x4ff   : > { %v7024_v0 = vadd.f32 %v2297_v23, %v6961_v35  ;;  %v2469_v14 = vadd.f32 %v2468_v38, %v7021_v48 }
 0x500   : > { %v2299_v9 = vpop.f32.mrf.mxu0  ;;  %v6963_v39 = vpop.f32.mrf.mxu1 }
 0x501   : > { %v7031_v21 = vadd.f32 %v2299_v9, %v6966_v44  ;;  %v2433_v30 = vadd.f32 %v2432_v15, %v7024_v0 }
 0x502   : > { %v2301_v33 = vpop.f32.mrf.mxu0  ;;  %v6971_v20 = vpop.f32.mrf.mxu1 }
 0x503   : > { %v7034_v31 = vadd.f32 %v2301_v33, %v6961_v35  ;;  %v2470_v9 = vadd.f32 %v2469_v14, %v7031_v21 }
 0x504   : > { %v2303_v16 = vpop.f32.mrf.mxu0  ;;  %v6982_v7 = vpop.f32.mrf.mxu1 }
 0x505   : > { %v7041_v13 = vadd.f32 %v2303_v16, %v6966_v44  ;;  %v2434_v33 = vadd.f32 %v2433_v30, %v7034_v31 }
 0x506   : > { %v2307_v19 = vpop.f32.mrf.mxu0  ;;  %v6995_v53 = vpop.f32.mrf.mxu1 }
 0x507   : > { %v7044_v5 = vadd.f32 %v2307_v19, %v6961_v35  ;;  %v2471_v16 = vadd.f32 %v2470_v9, %v7041_v13 }
 0x508   : > { %v2309_v60 = vpop.f32.mrf.mxu0  ;;  %v7006_v3 = vpop.f32.mrf.mxu1 }
 0x509   : > { %v7051_v54 = vadd.f32 %v2309_v60, %v6966_v44  ;;  %v2435_v19 = vadd.f32 %v2434_v33, %v7044_v5 }
 0x50a   : > { %v2311_v4 = vpop.f32.mrf.mxu0  ;;  %v7016_v43 = vpop.f32.mrf.mxu1 }
 0x50b   : > { %9406 = vst [vmem:[#allocation24_spill] sm:$0xff] %v7051_v54  ;;  %v7054_v62 = vadd.f32 %v2311_v4, %v6961_v35  ;;  %v2472_v60 = vadd.f32 %v2471_v16, %v7051_v54  ;;  %v7100_v54 = vadd.f32 %v6923_v18, %v6961_v35 }
 0x50c   : > { %v2313_v50 = vpop.f32.mrf.mxu0  ;;  %v7026_v57 = vpop.f32.mrf.mxu1 }
 0x50d   : > { %v7061_v52 = vadd.f32 %v2313_v50, %v6966_v44  ;;  %v2436_v4 = vadd.f32 %v2435_v19, %v7054_v62 }
 0x50e   : > { %v2317_v29 = vpop.f32.mrf.mxu0  ;;  %v7036_v34 = vpop.f32.mrf.mxu1 }
 0x50f   : > { %9407 = vst [vmem:[#allocation25_spill] sm:$0xff] %v7061_v52  ;;  %v7064_v47 = vadd.f32 %v2317_v29, %v6961_v35  ;;  %v2473_v50 = vadd.f32 %v2472_v60, %v7061_v52 }
 0x510   : > { %v2319_v1 = vpop.f32.mrf.mxu0  ;;  %v7046_v23 = vpop.f32.mrf.mxu1 }
 0x511   : > { %v7071_v15 = vadd.f32 %v2319_v1, %v6966_v44  ;;  %v2437_v29 = vadd.f32 %v2436_v4, %v7064_v47 }
 0x512   : > { %v2321_v59 = vpop.f32.mrf.mxu0  ;;  %v7056_v6 = vpop.f32.mrf.mxu1 }
 0x513   : > { %v7074_v14 = vadd.f32 %v2321_v59, %v6961_v35  ;;  %v2474_v1 = vadd.f32 %v2473_v50, %v7071_v15 }
 0x514   : > { %v2323_v27 = vpop.f32.mrf.mxu0  ;;  %v7066_v38 = vpop.f32.mrf.mxu1 }
 0x515   : > { %v7081_v33 = vadd.f32 %v2323_v27, %v6966_v44  ;;  %v2438_v59 = vadd.f32 %v2437_v29, %v7074_v14 }
 0x516   : > { %v2327_v30 = vpop.f32.mrf.mxu0  ;;  %v7076_v9 = vpop.f32.mrf.mxu1 }
 0x517   : > { %9408 = vst [vmem:[#allocation26_spill] sm:$0xff] %v7081_v33  ;;  %v7084_v16 = vadd.f32 %v2327_v30, %v6961_v35  ;;  %v2475_v60 = vadd.f32 %v2474_v1, %v7081_v33  ;;  %v7109_v1 = vadd.f32 %v6925_v41, %v6966_v44 }
 0x518   : > { %v2329_v19 = vpop.f32.mrf.mxu0  ;;  %v7086_v26 = vpop.f32.mrf.mxu1 }
 0x519   : > { %v7091_v28 = vadd.f32 %v2329_v19, %v6966_v44  ;;  %v2439_v4 = vadd.f32 %v2438_v59, %v7084_v16 }
 0x51a   : > { %v2331_v12 = vpop.f32.mrf.mxu0  ;;  %v2401_v30 = vpop.f32.mrf.mxu1 }
 0x51b   : > { %v7096_v27 = vadd.f32 %v2331_v12, %v6961_v35  ;;  %v2476_v50 = vadd.f32 %v2475_v60, %v7091_v28  ;;  %v7113_v12 = vadd.f32 %v6927_v24, %v6961_v35  ;;  %v7119_v60 = vadd.f32 %v6929_v17, %v6966_v44 }
 0x51c   : > { %v2333_v52 = vpop.f32.mrf.mxu0  ;;  %v2403_v33 = vpop.f32.mrf.mxu1  ;;  %v7129_v24 = vadd.f32 %v6933_v49, %v6966_v44 }
 0x51d   : > { %v2440_v29 = vadd.f32 %v2439_v4, %v7096_v27  ;;  %v7105_v19 = vadd.f32 %v2333_v52, %v6966_v44  ;;  %9410 = vst [vmem:[#allocation28_spill] sm:$0xff] %v7119_v60  ;;  %v7123_v52 = vadd.f32 %v6931_v37, %v6961_v35  ;;  %v7139_v37 = vadd.f32 %v6937_v42, %v6966_v44 }
 0x51f   : > { %9409 = vst [vmem:[#allocation27_spill] sm:$0xff] %v7105_v19  ;;  %v2441_v59 = vadd.f32 %v2440_v29, %v7100_v54  ;;  %v2477_v18 = vadd.f32 %v2476_v50, %v7105_v19  ;;  %v7133_v50 = vadd.f32 %v6935_v56, %v6961_v35  ;;  %v2407_v19 = vpop.f32.mrf.mxu1  ;;  %9411 = vst [vmem:[#allocation29_spill] sm:$0xff] %v7139_v37 }
 0x520   : > { %v7149_v56 = vadd.f32 %v6943_v55, %v6966_v44 }
 0x521   : > { %v2442_v41 = vadd.f32 %v2441_v59, %v7113_v12  ;;  %v2478_v4 = vadd.f32 %v2477_v18, %v7109_v1  ;;  %v7143_v59 = vadd.f32 %v6939_v2, %v6961_v35  ;;  %v7159_v2 = vadd.f32 %v6953_v36, %v6966_v44 }
 0x523   : > { %v2443_v29 = vadd.f32 %v2442_v41, %v7123_v52  ;;  %v2479_v17 = vadd.f32 %v2478_v4, %v7119_v60  ;;  %v7153_v41 = vadd.f32 %v6945_v8, %v6961_v35  ;;  %v2409_v60 = vpop.f32.mrf.mxu1  ;;  %9412 = vst [vmem:[#allocation30_spill] sm:$0xff] %v7159_v2  ;;  %v7169_v8 = vadd.f32 %v6963_v39, %v6966_v44 }
 0x525   : > { %v2444_v49 = vadd.f32 %v2443_v29, %v7133_v50  ;;  %v2480_v18 = vadd.f32 %v2479_v17, %v7129_v24  ;;  %v7163_v29 = vadd.f32 %v6958_v51, %v6961_v35  ;;  %9413 = vst [vmem:[#allocation31_spill] sm:$0xff] %v7169_v8  ;;  %v7179_v51 = vadd.f32 %v6982_v7, %v6966_v44 }
 0x527   : > { %v2445_v4 = vadd.f32 %v2444_v49, %v7143_v59  ;;  %v2481_v42 = vadd.f32 %v2480_v18, %v7139_v37  ;;  %v7173_v49 = vadd.f32 %v6971_v20, %v6961_v35  ;;  %v2411_v37 = vpop.f32.mrf.mxu1  ;;  %9414 = vst [vmem:[#allocation32_spill] sm:$0xff] %v7179_v51  ;;  %v7189_v20 = vadd.f32 %v7006_v3, %v6966_v44 }
 0x529   : > { %v2446_v55 = vadd.f32 %v2445_v4, %v7153_v41  ;;  %v2482_v17 = vadd.f32 %v2481_v42, %v7149_v56  ;;  %v7183_v4 = vadd.f32 %v6995_v53, %v6961_v35  ;;  %9415 = vst [vmem:[#allocation33_spill] sm:$0xff] %v7189_v20  ;;  %v7199_v53 = vadd.f32 %v7026_v57, %v6966_v44 }
 0x52b   : > { %v2447_v18 = vadd.f32 %v2446_v55, %v7163_v29  ;;  %v2483_v36 = vadd.f32 %v2482_v17, %v7159_v2  ;;  %v7193_v55 = vadd.f32 %v7016_v43, %v6961_v35  ;;  %v2413_v2 = vpop.f32.mrf.mxu1  ;;  %9416 = vst [vmem:[#allocation34_spill] sm:$0xff] %v7199_v53  ;;  %v7209_v43 = vadd.f32 %v7046_v23, %v6966_v44 }
 0x52d   : > { %v2448_v39 = vadd.f32 %v2447_v18, %v7173_v49  ;;  %v2484_v42 = vadd.f32 %v2483_v36, %v7169_v8  ;;  %v7203_v18 = vadd.f32 %v7036_v34, %v6961_v35  ;;  %9417 = vst [vmem:[#allocation35_spill] sm:$0xff] %v7209_v43  ;;  %v7219_v34 = vadd.f32 %v7066_v38, %v6966_v44 }
 0x52f   : > { %v2449_v17 = vadd.f32 %v2448_v39, %v7183_v4  ;;  %v2485_v7 = vadd.f32 %v2484_v42, %v7179_v51  ;;  %v7213_v39 = vadd.f32 %v7056_v6, %v6961_v35  ;;  %v2417_v51 = vpop.f32.mrf.mxu1  ;;  %9418 = vst [vmem:[#allocation36_spill] sm:$0xff] %v7219_v34  ;;  %v7229_v6 = vadd.f32 %v7086_v26, %v6966_v44 }
 0x531   : > { %v2450_v3 = vadd.f32 %v2449_v17, %v7193_v55  ;;  %v2486_v36 = vadd.f32 %v2485_v7, %v7189_v20  ;;  %v7223_v17 = vadd.f32 %v7076_v9, %v6961_v35  ;;  %9419 = vst [vmem:[#allocation37_spill] sm:$0xff] %v7229_v6 }
 0x533   : > { %v2451_v42 = vadd.f32 %v2450_v3, %v7203_v18  ;;  %v2487_v57 = vadd.f32 %v2486_v36, %v7199_v53  ;;  %v7232_v3 = vadd.f32 %v2401_v30, %v6961_v35  ;;  %v2419_v53 = vpop.f32.mrf.mxu1  ;;  %v7246_v30 = vadd.f32 %v2411_v37, %v6961_v35 }
 0x535   : > { %v2452_v23 = vadd.f32 %v2451_v42, %v7213_v39  ;;  %v2488_v7 = vadd.f32 %v2487_v57, %v7209_v43  ;;  %v7239_v42 = vadd.f32 %v2407_v19, %v6961_v35  ;;  %v7242_v57 = vadd.f32 %v2403_v33, %v6966_v44  ;;  %v2421_v43 = vpop.f32.mrf.mxu1 }
 0x536   : > { %v7258_v33 = vadd.f32 %v2421_v43, %v6961_v35 }
 0x537   : > { %v2453_v36 = vadd.f32 %v2452_v23, %v7223_v17  ;;  %v2489_v38 = vadd.f32 %v2488_v7, %v7219_v34  ;;  %9420 = vst [vmem:[#allocation38_spill] sm:$0xff] %v7242_v57  ;;  %v2423_v34 = vpop.f32.mrf.mxu1 }
 0x538   : > { %9422 = vst [vmem:[#allocation40_spill] sm:$0xff] %v7258_v33  ;;  %v7271_v43 = vadd.f32 %v2423_v34, %v6966_v44 }
 0x539   : > { %v2454_v20 = vadd.f32 %v2453_v36, %v7232_v3  ;;  %v2490_v9 = vadd.f32 %v2489_v38, %v7229_v6  ;;  %v7251_v36 = vadd.f32 %v2417_v51, %v6961_v35  ;;  %v7254_v38 = vadd.f32 %v2409_v60, %v6966_v44 }
 0x53a   : > { %v7263_v6 = vadd.f32 %v2413_v2, %v6966_v44  ;;  %v4836_v2 = vld [vmem:[#allocation7 + $0x78] sm:$0xff]  }
 0x53b   : > { %v2455_v26 = vadd.f32 %v2454_v20, %v7239_v42  ;;  %v2491_v23 = vadd.f32 %v2490_v9, %v7242_v57  ;;  %9421 = vst [vmem:[#allocation39_spill] sm:$0xff] %v7254_v38  ;;  %v7267_v57 = vadd.f32 %v2419_v53, %v6966_v44  ;;  %4503 = vmatprep.subr.bf16.mxu0 %v4836_v2  ;;  %v4839_v53 = vld [vmem:[#allocation7 + $0x30] sm:$0xff]  }
 0x53d   : > { %v2456_v7 = vadd.f32 %v2455_v26, %v7246_v30  ;;  %v2492_v20 = vadd.f32 %v2491_v23, %v7254_v38  ;;  %v4837_v38 = vld [vmem:[#allocation7 + $0x38] sm:$0xff]  }
 0x53e   : > { %4504 = vmatpush3.bf16.msra.mxu0 %v4837_v38  ;;  %v4842_v38 = vld [vmem:[#allocation7 + $0x60] sm:$0xff]  }
 0x53f   : > { %v2457_v19 = vadd.f32 %v2456_v7, %v7251_v36  ;;  %v2493_v26 = vadd.f32 %v2492_v20, %v7263_v6  ;;  %v4838_v20 = vld [vmem:[#allocation7 + $0x70] sm:$0xff]  }
 0x540   : > { %4505 = vmatprep.subr.bf16.mxu0 %v4838_v20 }
 0x541   : > { %v2458_v37 = vadd.f32 %v2457_v19, %v7258_v33  ;;  %v2494_v7 = vadd.f32 %v2493_v26, %v7267_v57  ;;  %v4840_v26 = vld [vmem:[#allocation7 + $0x68] sm:$0xff]  }
 0x542   : > { %4506 = vmatpush3.bf16.msra.mxu0 %v4839_v53 }
 0x543   : > { %v2459_v9 = vrot.slane %v2458_v37, 4  ;;  %v2495_v19 = vadd.f32 %v2494_v7, %v7271_v43  ;;  %4507 = vmatprep.subr.bf16.mxu0 %v4840_v26  ;;  %v4843_v7 = vld [vmem:[#allocation7 + $0x20] sm:$0xff]  }
 0x545   : > { %v2460_v51 = vadd.f32 %v2459_v9, %v2458_v37  ;;  %v2496_v8 = vrot.slane %v2495_v19, 4 }
 0x547   : > { %v2461_v60 = vrot.slane %v2460_v51, 2  ;;  %v2497_v9 = vadd.f32 %v2496_v8, %v2495_v19  ;;  %v4845_v19 = vld [vmem:[#allocation7 + $0x18] sm:$0xff]  }
 0x549   : > { %v2462_v35 = vadd.f32 %v2461_v60, %v2460_v51  ;;  %v4841_v51 = vld [vmem:[#allocation7 + $0x28] sm:$0xff]   ;;  %v2498_v60 = vrot.slane %v2497_v9, 2 }
 0x54a   : > { %4508 = vmatpush3.bf16.msra.mxu0 %v4841_v51  ;;  %v4846_v51 = vld [vmem:[#allocation7 + $0x50] sm:$0xff]  }
 0x54b   : > { %v2463_v23 = vrot.slane %v2462_v35, 1  ;;  %4509 = vmatprep.subr.bf16.mxu0 %v4842_v38 }
 0x54d   : > { %v2464_v33 = vadd.f32 %v2463_v23, %v2462_v35  ;;  %v2499_v35 = vadd.f32 %v2498_v60, %v2497_v9  ;;  %v4844_v23 = vld [vmem:[#allocation7 + $0x58] sm:$0xff]   ;;  %v4847_v60 = vld [vmem:[#allocation7 + $0x10] sm:$0xff]  }
 0x54e   : > { %4510 = vmatpush3.bf16.msra.mxu0 %v4843_v7 }
 0x54f   : > { %v7274_v37 = vmul.f32 0.00390625, %v2464_v33  ;;  %v2500_v53 = vrot.slane %v2499_v35, 1  ;;  %4511 = vmatprep.subr.bf16.mxu0 %v4844_v23 }
 0x551   : > { %v7278_v44 = vsub.f32 %v6974_v46, %v7274_v37  ;;  %v7282_v34 = vsub.f32 %v6969_v61, %v7274_v37  ;;  %v7286_v8 = vsub.f32 %v6980_v45, %v7274_v37  ;;  %v7294_v61 = vsub.f32 %v6993_v58, %v7274_v37 }
 0x552   : > { %v7298_v2 = vsub.f32 %v7004_v32, %v7274_v37  ;;  %4512 = vmatpush3.bf16.msra.mxu0 %v4845_v19  ;;  %v7304_v9 = vsub.f32 %v7014_v11, %v7274_v37  ;;  %v7310_v32 = vsub.f32 %v7024_v0, %v7274_v37  ;;  %v7316_v11 = vsub.f32 %v7034_v31, %v7274_v37  ;;  %v4848_v19 = vld [vmem:[#allocation7 + $0x48] sm:$0xff]   ;;  %v4851_v31 = vld [vmem:[#allocation7] sm:$0xff]  }
 0x553   : > { %v2568_v33 = vmul.f32 %v7278_v44, %v7278_v44  ;;  %v2570_v46 = vmul.f32 %v7282_v34, %v7282_v34  ;;  %v2572_v45 = vmul.f32 %v7286_v8, %v7286_v8  ;;  %v2574_v58 = vmul.f32 %v7294_v61, %v7294_v61  ;;  %4513 = vmatprep.subr.bf16.mxu0 %v4846_v51 }
 0x554   : > { %v2576_v38 = vmul.f32 %v7298_v2, %v7298_v2  ;;  %v7322_v0 = vsub.f32 %v7044_v5, %v7274_v37  ;;  %v2582_v51 = vmul.f32 %v7316_v11, %v7316_v11  ;;  %v7336_v5 = vsub.f32 %v7064_v47, %v7274_v37 }
 0x555   : > { %v2632_v20 = vadd.f32 %v2570_v46, %v2568_v33  ;;  %v2501_v33 = vadd.f32 %v2500_v53, %v2499_v35  ;;  %v2578_v46 = vmul.f32 %v7304_v9, %v7304_v9  ;;  %v2580_v35 = vmul.f32 %v7310_v32, %v7310_v32 }
 0x556   : > { %4514 = vmatpush3.bf16.msra.mxu0 %v4847_v60 }
 0x557   : > { %v2633_v26 = vadd.f32 %v2632_v20, %v2572_v45  ;;  %v4849_v45 = vld [vmem:[#allocation7 + $0x8] sm:$0xff]   ;;  %v4850_v20 = vld [vmem:[#allocation7 + $0x40] sm:$0xff]   ;;  %4515 = vmatprep.subr.bf16.mxu0 %v4848_v19  ;;  %v7356_v19 = vsub.f32 %v7084_v16, %v7274_v37 }
 0x559   : > { %v2634_v7 = vadd.f32 %v2633_v26, %v2574_v58  ;;  %v7326_v58 = vmul.f32 0.00390625, %v2501_v33  ;;  %v7330_v26 = vsub.f32 %v7054_v62, %v7274_v37  ;;  %9424 = vst [vmem:[#allocation42_spill] sm:$0xff] %v7356_v19 }
 0x55a   : > { %4516 = vmatpush3.bf16.msra.mxu0 %v4849_v45 }
 0x55b   : > { %v2635_v23 = vadd.f32 %v2634_v7, %v2576_v38  ;;  %4517 = vmatprep.subr.bf16.mxu0 %v4850_v20  ;;  %v2584_v38 = vmul.f32 %v7322_v0, %v7322_v0  ;;  %v7342_v33 = vsub.f32 %v6985_v22, %v7326_v58  ;;  %v7346_v62 = vsub.f32 %v6977_v63, %v7326_v58 }
 0x55c   : > { %v2586_v47 = vmul.f32 %v7330_v26, %v7330_v26  ;;  %v2588_v22 = vmul.f32 %v7336_v5, %v7336_v5  ;;  %v7362_v63 = vsub.f32 %v6990_v10, %v7326_v58  ;;  %v7380_v10 = vsub.f32 %v7100_v54, %v7274_v37 }
 0x55d   : > { %v2636_v53 = vadd.f32 %v2635_v23, %v2578_v46  ;;  %v7350_v46 = vsub.f32 %v7074_v14, %v7274_v37  ;;  %v2569_v14 = vmul.f32 %v7342_v33, %v7342_v33  ;;  %v2571_v20 = vmul.f32 %v7346_v62, %v7346_v62 }
 0x55e   : > { %4518 = vmatpush3.bf16.msra.mxu0 %v4851_v31  ;;  %v7376_v31 = vsub.f32 %v7001_v40, %v7326_v58  ;;  %9426 = vst [vmem:[#allocation44_spill] sm:$0xff] %v7380_v10  ;;  %v7392_v40 = vsub.f32 %v7113_v12, %v7274_v37  ;;  %v2596_v12 = vmul.f32 %v7380_v10, %v7380_v10 }
 0x55f   : > { %v2637_v60 = vadd.f32 %v2636_v53, %v2580_v35  ;;  %9423 = vst [vmem:[#allocation41_spill] sm:$0xff] %v7350_v46  ;;  %v7370_v35 = vsub.f32 %v7096_v27, %v7274_v37  ;;  %v2590_v16 = vmul.f32 %v7350_v46, %v7350_v46  ;;  %v7386_v27 = vsub.f32 %v7011_v25, %v7326_v58 }
 0x560   : > { %9427 = vst [vmem:[#allocation45_spill] sm:$0xff] %v7392_v40  ;;  %v2575_v25 = vmul.f32 %v7376_v31, %v7376_v31 }
 0x561   : > { %v2638_v7 = vadd.f32 %v2637_v60, %v2582_v51  ;;  %9425 = vst [vmem:[#allocation43_spill] sm:$0xff] %v7370_v35  ;;  %v2592_v51 = vmul.f32 %v7356_v19, %v7356_v19  ;;  %v2594_v54 = vmul.f32 %v7370_v35, %v7370_v35 }
 0x563   : > { %v2639_v23 = vadd.f32 %v2638_v7, %v2584_v38  ;;  %v2573_v38 = vmul.f32 %v7362_v63, %v7362_v63  ;;  %v2669_v7 = vadd.f32 %v2571_v20, %v2569_v14  ;;  %v7410_v20 = vsub.f32 %v7031_v21, %v7326_v58 }
 0x565   : > { %v2640_v45 = vadd.f32 %v2639_v23, %v2586_v47  ;;  %v7398_v23 = vsub.f32 %v7021_v48, %v7326_v58  ;;  %v2577_v48 = vmul.f32 %v7386_v27, %v7386_v27 }
 0x567   : > { %v2641_v53 = vadd.f32 %v2640_v45, %v2588_v22  ;;  %v2670_v22 = vadd.f32 %v2669_v7, %v2573_v38  ;;  %v7404_v45 = vsub.f32 %v7123_v52, %v7274_v37  ;;  %v2598_v52 = vmul.f32 %v7392_v40, %v7392_v40 }
 0x568   : > { %v2579_v21 = vmul.f32 %v7398_v23, %v7398_v23  ;;  %v7428_v7 = vsub.f32 %v7143_v59, %v7274_v37 }
 0x569   : > { %v2642_v60 = vadd.f32 %v2641_v53, %v2590_v16  ;;  %v2671_v16 = vadd.f32 %v2670_v22, %v2575_v25  ;;  %v7416_v53 = vsub.f32 %v7133_v50, %v7274_v37  ;;  %v2600_v50 = vmul.f32 %v7404_v45, %v7404_v45 }
 0x56b   : > { %v2643_v47 = vadd.f32 %v2642_v60, %v2592_v51  ;;  %v7422_v60 = vsub.f32 %v7041_v13, %v7326_v58  ;;  %v2672_v38 = vadd.f32 %v2671_v16, %v2577_v48  ;;  %v2581_v13 = vmul.f32 %v7410_v20, %v7410_v20  ;;  %v9430_v48 = vld [vmem:[#allocation25_spill] sm:$0xff] }
 0x56c   : > { %v2602_v59 = vmul.f32 %v7416_v53, %v7416_v53  ;;  %v7446_v16 = vsub.f32 %v9430_v48, %v7326_v58  ;;  %v7464_v48 = vsub.f32 %v7173_v49, %v7274_v37 }
 0x56d   : > { %v2644_v14 = vadd.f32 %v2643_v47, %v2594_v54  ;;  %v9428_v47 = vld [vmem:[#allocation24_spill] sm:$0xff]  ;;  %v2673_v22 = vadd.f32 %v2672_v38, %v2579_v21  ;;  %v7458_v38 = vsub.f32 %v7071_v15, %v7326_v58 }
 0x56e   : > { %v7434_v25 = vsub.f32 %v9428_v47, %v7326_v58  ;;  %9431 = vst [vmem:[#allocation25_spill] sm:$0xff] %v7446_v16  ;;  %v7452_v47 = vsub.f32 %v7163_v29, %v7274_v37  ;;  %v2587_v15 = vmul.f32 %v7446_v16, %v7446_v16 }
 0x56f   : > { %v2645_v51 = vadd.f32 %v2644_v14, %v2596_v12  ;;  %v7440_v12 = vsub.f32 %v7153_v41, %v7274_v37  ;;  %v2604_v41 = vmul.f32 %v7428_v7, %v7428_v7  ;;  %9432 = vst [vmem:[#allocation46_spill] sm:$0xff] %v7458_v38 }
 0x570   : > { %9429 = vst [vmem:[#allocation24_spill] sm:$0xff] %v7434_v25  ;;  %v2608_v49 = vmul.f32 %v7452_v47, %v7452_v47 }
 0x571   : > { %v2646_v54 = vadd.f32 %v2645_v51, %v2598_v52  ;;  %v2583_v52 = vmul.f32 %v7422_v60, %v7422_v60  ;;  %v2674_v51 = vadd.f32 %v2673_v22, %v2581_v13  ;;  %v2606_v29 = vmul.f32 %v7440_v12, %v7440_v12  ;;  %v9433_v22 = vld [vmem:[#allocation26_spill] sm:$0xff] }
 0x572   : > { %v7470_v40 = vsub.f32 %v9433_v22, %v7326_v58  ;;  %v7488_v22 = vsub.f32 %v7193_v55, %v7274_v37 }
 0x573   : > { %v2647_v14 = vadd.f32 %v2646_v54, %v2600_v50  ;;  %v2585_v50 = vmul.f32 %v7434_v25, %v7434_v25  ;;  %v2675_v54 = vadd.f32 %v2674_v51, %v2583_v52  ;;  %v7482_v51 = vsub.f32 %v7091_v28, %v7326_v58 }
 0x574   : > { %9434 = vst [vmem:[#allocation26_spill] sm:$0xff] %v7470_v40  ;;  %v2591_v28 = vmul.f32 %v7470_v40, %v7470_v40 }
 0x575   : > { %v2648_v21 = vadd.f32 %v2647_v14, %v2602_v59  ;;  %v2676_v59 = vadd.f32 %v2675_v54, %v2585_v50  ;;  %v7476_v14 = vsub.f32 %v7183_v4, %v7274_v37  ;;  %9435 = vst [vmem:[#allocation47_spill] sm:$0xff] %v7482_v51  ;;  %v2610_v4 = vmul.f32 %v7464_v48, %v7464_v48  ;;  %v9436_v54 = vld [vmem:[#allocation27_spill] sm:$0xff] }
 0x576   : > { %v7494_v10 = vsub.f32 %v9436_v54, %v7326_v58  ;;  %v7512_v54 = vsub.f32 %v7213_v39, %v7274_v37 }
 0x577   : > { %v2649_v13 = vadd.f32 %v2648_v21, %v2604_v41  ;;  %v2589_v41 = vmul.f32 %v7458_v38, %v7458_v38  ;;  %v2677_v21 = vadd.f32 %v2676_v59, %v2587_v15  ;;  %v2612_v55 = vmul.f32 %v7476_v14, %v7476_v14 }
 0x578   : > { %9437 = vst [vmem:[#allocation27_spill] sm:$0xff] %v7494_v10  ;;  %v7506_v59 = vsub.f32 %v7109_v1, %v7326_v58  ;;  %v2595_v1 = vmul.f32 %v7494_v10, %v7494_v10  ;;  %v9449_v10 = vld [vmem:[#allocation34_spill] sm:$0xff] }
 0x579   : > { %v2650_v52 = vadd.f32 %v2649_v13, %v2606_v29  ;;  %v2678_v29 = vadd.f32 %v2677_v21, %v2589_v41  ;;  %v7500_v13 = vsub.f32 %v7203_v18, %v7274_v37  ;;  %v2614_v18 = vmul.f32 %v7488_v22, %v7488_v22  ;;  %v9439_v21 = vld [vmem:[#allocation28_spill] sm:$0xff] }
 0x57a   : > { %9438 = vst [vmem:[#allocation48_spill] sm:$0xff] %v7506_v59  ;;  %v7518_v35 = vsub.f32 %v9439_v21, %v7326_v58  ;;  %v7536_v21 = vsub.f32 %v7232_v3, %v7274_v37 }
 0x57b   : > { %v2651_v50 = vadd.f32 %v2650_v52, %v2608_v49  ;;  %v2593_v49 = vmul.f32 %v7482_v51, %v7482_v51  ;;  %v2679_v52 = vadd.f32 %v2678_v29, %v2591_v28  ;;  %v2616_v39 = vmul.f32 %v7500_v13, %v7500_v13 }
 0x57c   : > { %9440 = vst [vmem:[#allocation28_spill] sm:$0xff] %v7518_v35  ;;  %v7530_v29 = vsub.f32 %v7129_v24, %v7326_v58  ;;  %v2599_v24 = vmul.f32 %v7518_v35, %v7518_v35  ;;  %v7606_v51 = vsub.f32 %v9449_v10, %v7326_v58 }
 0x57d   : > { %v2652_v15 = vadd.f32 %v2651_v50, %v2610_v4  ;;  %v2680_v4 = vadd.f32 %v2679_v52, %v2593_v49  ;;  %v7524_v50 = vsub.f32 %v7223_v17, %v7274_v37  ;;  %v2618_v17 = vmul.f32 %v7512_v54, %v7512_v54  ;;  %v9442_v52 = vld [vmem:[#allocation29_spill] sm:$0xff] }
 0x57e   : > { %9441 = vst [vmem:[#allocation49_spill] sm:$0xff] %v7530_v29  ;;  %v7542_v19 = vsub.f32 %v9442_v52, %v7326_v58  ;;  %v7560_v52 = vsub.f32 %v7246_v30, %v7274_v37  ;;  %v2615_v10 = vmul.f32 %v7606_v51, %v7606_v51 }
 0x57f   : > { %v2653_v41 = vadd.f32 %v2652_v15, %v2612_v55  ;;  %v2597_v55 = vmul.f32 %v7506_v59, %v7506_v59  ;;  %v2681_v15 = vadd.f32 %v2680_v4, %v2595_v1  ;;  %v2620_v3 = vmul.f32 %v7524_v50, %v7524_v50 }
 0x580   : > { %9443 = vst [vmem:[#allocation29_spill] sm:$0xff] %v7542_v19  ;;  %v7554_v4 = vsub.f32 %v7149_v56, %v7326_v58  ;;  %v2603_v56 = vmul.f32 %v7542_v19, %v7542_v19 }
 0x581   : > { %v2654_v28 = vadd.f32 %v2653_v41, %v2614_v18  ;;  %v2682_v18 = vadd.f32 %v2681_v15, %v2597_v55  ;;  %v7548_v41 = vsub.f32 %v7239_v42, %v7274_v37  ;;  %v2622_v42 = vmul.f32 %v7536_v21, %v7536_v21  ;;  %v9444_v15 = vld [vmem:[#allocation30_spill] sm:$0xff] }
 0x582   : > { %v7566_v35 = vsub.f32 %v9444_v15, %v7326_v58  ;;  %v9446_v15 = vld [vmem:[#allocation40_spill] sm:$0xff] }
 0x583   : > { %v2655_v49 = vadd.f32 %v2654_v28, %v2616_v39  ;;  %v2601_v39 = vmul.f32 %v7530_v29, %v7530_v29  ;;  %v2683_v28 = vadd.f32 %v2682_v18, %v2599_v24  ;;  %v2624_v30 = vmul.f32 %v7548_v41, %v7548_v41  ;;  %v9445_v18 = vld [vmem:[#allocation31_spill] sm:$0xff] }
 0x584   : > { %v7578_v29 = vsub.f32 %v9445_v18, %v7326_v58  ;;  %v7584_v19 = vsub.f32 %v9446_v15, %v7274_v37 }
 0x585   : > { %v2656_v1 = vadd.f32 %v2655_v49, %v2618_v17  ;;  %v2684_v17 = vadd.f32 %v2683_v28, %v2601_v39  ;;  %v7572_v49 = vsub.f32 %v7251_v36, %v7274_v37  ;;  %v2626_v36 = vmul.f32 %v7560_v52, %v7560_v52  ;;  %v9447_v28 = vld [vmem:[#allocation32_spill] sm:$0xff] }
 0x586   : > { %v7590_v59 = vsub.f32 %v9447_v28, %v7326_v58  ;;  %v2609_v15 = vmul.f32 %v7578_v29, %v7578_v29 }
 0x587   : > { %v2657_v55 = vadd.f32 %v2656_v1, %v2620_v3  ;;  %v2605_v3 = vmul.f32 %v7554_v4, %v7554_v4  ;;  %v2685_v1 = vadd.f32 %v2684_v17, %v2603_v56  ;;  %v2628_v18 = vmul.f32 %v7572_v49, %v7572_v49  ;;  %v9448_v17 = vld [vmem:[#allocation33_spill] sm:$0xff] }
 0x588   : > { %v7598_v37 = vsub.f32 %v9448_v17, %v7326_v58 }
 0x589   : > { %v2658_v24 = vadd.f32 %v2657_v55, %v2622_v42  ;;  %v2607_v42 = vmul.f32 %v7566_v35, %v7566_v35  ;;  %v2686_v55 = vadd.f32 %v2685_v1, %v2605_v3  ;;  %v2611_v3 = vmul.f32 %v7590_v59, %v7590_v59 }
 0x58b   : > { %v2659_v39 = vadd.f32 %v2658_v24, %v2624_v30  ;;  %v2687_v30 = vadd.f32 %v2686_v55, %v2607_v42  ;;  %v2630_v24 = vmul.f32 %v7584_v19, %v7584_v19  ;;  %v2613_v42 = vmul.f32 %v7598_v37, %v7598_v37 }
 0x58d   : > { %v2660_v56 = vadd.f32 %v2659_v39, %v2626_v36  ;;  %v2688_v1 = vadd.f32 %v2687_v30, %v2609_v15  ;;  %v9450_v39 = vld [vmem:[#allocation35_spill] sm:$0xff]  ;;  %v9453_v15 = vld [vmem:[#allocation37_spill] sm:$0xff] }
 0x58e   : > { %v7612_v17 = vsub.f32 %v9450_v39, %v7326_v58  ;;  %v7624_v30 = vsub.f32 %v9453_v15, %v7326_v58 }
 0x58f   : > { %v2661_v28 = vadd.f32 %v2660_v56, %v2628_v18  ;;  %v2689_v55 = vadd.f32 %v2688_v1, %v2611_v3  ;;  %v9451_v18 = vld [vmem:[#allocation36_spill] sm:$0xff]  ;;  %v9454_v3 = vld [vmem:[#allocation38_spill] sm:$0xff] }
 0x590   : > { %v7618_v56 = vsub.f32 %v9451_v18, %v7326_v58  ;;  %v7630_v1 = vsub.f32 %v9454_v3, %v7326_v58 }
 0x591   : > { %v2662_v36 = vadd.f32 %v2661_v28, %v2630_v24  ;;  %v2690_v40 = vadd.f32 %v2689_v55, %v2613_v42  ;;  %v2617_v24 = vmul.f32 %v7612_v17, %v7612_v17  ;;  %v2621_v42 = vmul.f32 %v7624_v30, %v7624_v30 }
 0x592   : > { %9452 = vst [vmem:[#allocation30_spill] sm:$0xff] %v7618_v56  ;;  %v2619_v18 = vmul.f32 %v7618_v56, %v7618_v56 }
 0x593   : > { %v2663_v46 = vrot.slane %v2662_v36, 4  ;;  %v2691_v28 = vadd.f32 %v2690_v40, %v2615_v10  ;;  %v7642_v40 = vsub.f32 %v7263_v6, %v7326_v58  ;;  %v2623_v10 = vmul.f32 %v7630_v1, %v7630_v1 }
 0x595   : > { %v2664_v38 = vadd.f32 %v2663_v46, %v2662_v36  ;;  %v2692_v16 = vadd.f32 %v2691_v28, %v2617_v24  ;;  %v9455_v46 = vld [vmem:[#allocation39_spill] sm:$0xff]  ;;  %v2627_v6 = vmul.f32 %v7642_v40, %v7642_v40 }
 0x596   : > { %v7636_v36 = vsub.f32 %v9455_v46, %v7326_v58 }
 0x597   : > { %v2665_v39 = vrot.slane %v2664_v38, 2  ;;  %v2693_v55 = vadd.f32 %v2692_v16, %v2619_v18  ;;  %v7654_v16 = vsub.f32 %v7271_v43, %v7326_v58  ;;  %v2426_v43 = vld [vmem:[%s9260_s14] sm:$0x3] }
 0x598   : > { %v2625_v24 = vmul.f32 %v7636_v36, %v7636_v36 }
 0x599   : > { %v2666_v25 = vadd.f32 %v2665_v39, %v2664_v38  ;;  %v2694_v3 = vadd.f32 %v2693_v55, %v2621_v42  ;;  %v7648_v38 = vsub.f32 %v7267_v57, %v7326_v58  ;;  %v2631_v57 = vmul.f32 %v7654_v16, %v7654_v16 }
 0x59b   : > { %v2667_v15 = vrot.slane %v2666_v25, 1  ;;  %v2695_v28 = vadd.f32 %v2694_v3, %v2623_v10  ;;  %v7668_v3 = vld [vmem:[%s9261_s15] sm:$0x3] }
 0x59d   : > { %v2668_v56 = vadd.f32 %v2667_v15, %v2666_v25  ;;  %v2696_v18 = vadd.f32 %v2695_v28, %v2625_v24  ;;  %v2629_v25 = vmul.f32 %v7648_v38, %v7648_v38  ;;  %v9456_v24 = vld [vmem:[#allocation22_spill] sm:$0xff] }
 0x59e   : > { %v7671_v28 = vrot.slane %v2426_v43, %v9456_v24 }
 0x59f   : > { %v2706_v39 = vmul.f32 0.00390625, %v2668_v56  ;;  %v2697_v42 = vadd.f32 %v2696_v18, %v2627_v6  ;;  %v7677_v6 = vrot.slane %v7668_v3, %v9456_v24 }
 0x5a0   : > { %9457 = vst [vmem:[#allocation31_spill] sm:$0xff] %v7671_v28 }
 0x5a1   : > { %v2708_v46 = vadd.f32 0.001, %v2706_v39  ;;  %v2698_v55 = vadd.f32 %v2697_v42, %v2629_v25 }
 0x5a3   : > { %4858 = vrsqrt.f32 %v2708_v46  ;;  %v2699_v15 = vadd.f32 %v2698_v55, %v2631_v57 }
 0x5a5   : > { %v2700_v56 = vrot.slane %v2699_v15, 4 }
 0x5a7   : > { %v2701_v10 = vadd.f32 %v2700_v56, %v2699_v15 }
 0x5a9   : > { %v2702_v58 = vrot.slane %v2701_v10, 2 }
 0x5ab   : > { %v2703_v46 = vadd.f32 %v2702_v58, %v2701_v10 }
 0x5ad   : > { %v2704_v57 = vrot.slane %v2703_v46, 1 }
 0x5af   : > { %v2705_v55 = vadd.f32 %v2704_v57, %v2703_v46 }
 0x5b0   : > { %v7673_v39 = vpop.eup %4858 }
 0x5b1   : > { %9458 = vst [vmem:[#allocation40_spill] sm:$0xff] %v7673_v39  ;;  %v2774_v18 = vmul.f32 %v7673_v39, %v7584_v19  ;;  %v2744_v15 = vmul.f32 %v7673_v39, %v7404_v45  ;;  %v2746_v56 = vmul.f32 %v7673_v39, %v7416_v53  ;;  %v2748_v24 = vmul.f32 %v7673_v39, %v7428_v7 }
 0x5b2   : > { %v2750_v19 = vmul.f32 %v7673_v39, %v7440_v12  ;;  %v2752_v10 = vmul.f32 %v7673_v39, %v7452_v47  ;;  %v2754_v58 = vmul.f32 %v7673_v39, %v7464_v48  ;;  %v2756_v46 = vmul.f32 %v7673_v39, %v7476_v14 }
 0x5b3   : > { %v2849_v25 = vmul.f32 %v7671_v28, %v2774_v18  ;;  %v2707_v18 = vmul.f32 0.00390625, %v2705_v55  ;;  %v2758_v45 = vmul.f32 %v7673_v39, %v7488_v22  ;;  %v2760_v53 = vmul.f32 %v7673_v39, %v7500_v13 }
 0x5b4   : > { %v2762_v7 = vmul.f32 %v7673_v39, %v7512_v54  ;;  %v2764_v12 = vmul.f32 %v7673_v39, %v7524_v50  ;;  %v2766_v47 = vmul.f32 %v7673_v39, %v7536_v21  ;;  %v2768_v48 = vmul.f32 %v7673_v39, %v7548_v41 }
 0x5b5   : > { %v7683_v42 = vadd.f32 %v7677_v6, %v2849_v25  ;;  %v2709_v25 = vadd.f32 0.001, %v2707_v18  ;;  %v2770_v14 = vmul.f32 %v7673_v39, %v7560_v52  ;;  %v2772_v22 = vmul.f32 %v7673_v39, %v7572_v49 }
 0x5b6   : > { %v7716_v13 = vmul.f32 %v7671_v28, %v2744_v15  ;;  %v7719_v54 = vmul.f32 %v7671_v28, %v2746_v56  ;;  %v7722_v50 = vmul.f32 %v7671_v28, %v2748_v24  ;;  %v7725_v21 = vmul.f32 %v7671_v28, %v2750_v19 }
 0x5b7   : > { %4860 = vrsqrt.f32 %v2709_v25  ;;  %v7728_v41 = vmul.f32 %v7671_v28, %v2752_v10  ;;  %v7731_v52 = vmul.f32 %v7671_v28, %v2754_v58  ;;  %v7734_v49 = vmul.f32 %v7671_v28, %v2756_v46 }
 0x5b8   : > { %v7737_v57 = vmul.f32 %v7671_v28, %v2758_v45  ;;  %v7740_v55 = vmul.f32 %v7671_v28, %v2760_v53  ;;  %v7743_v24 = vmul.f32 %v7671_v28, %v2762_v7  ;;  %v2839_v15 = vmul.f32 %v7671_v28, %v2764_v12 }
 0x5b9   : > { %v2841_v56 = vmul.f32 %v7671_v28, %v2766_v47  ;;  %v2843_v19 = vmul.f32 %v7671_v28, %v2768_v48  ;;  %v2845_v10 = vmul.f32 %v7671_v28, %v2770_v14  ;;  %v2847_v58 = vmul.f32 %v7671_v28, %v2772_v22  ;;  %v9459_v22 = vld [vmem:[#allocation23_spill] sm:$0xff] }
 0x5ba   : > { %v7751_v18 = vadd.f32 %v7677_v6, %v2839_v15  ;;  %v2712_v12 = vmul.f32 %v7673_v39, %v7278_v44  ;;  %v2714_v47 = vmul.f32 %v7673_v39, %v7282_v34  ;;  %v2716_v48 = vmul.f32 %v7673_v39, %v7286_v8 }
 0x5bb   : > { %v7754_v46 = vadd.f32 %v7677_v6, %v2841_v56  ;;  %v7757_v45 = vadd.f32 %v7677_v6, %v2843_v19  ;;  %v7760_v53 = vadd.f32 %v7677_v6, %v2845_v10  ;;  %v7763_v7 = vadd.f32 %v7677_v6, %v2847_v58 }
 0x5bc   : > { %v2787_v25 = vmul.f32 %v7671_v28, %v2712_v12  ;;  %v2789_v14 = vmul.f32 %v7671_v28, %v2714_v47  ;;  %v7774_v15 = vrot.slane %v2426_v43, %v9459_v22  ;;  %v2718_v56 = vmul.f32 %v7673_v39, %v7294_v61 }
 0x5bd   : > { %v2720_v44 = vmul.f32 %v7673_v39, %v7298_v2  ;;  %v2722_v34 = vmul.f32 %v7673_v39, %v7304_v9  ;;  %v2724_v8 = vmul.f32 %v7673_v39, %v7310_v32  ;;  %v2726_v10 = vmul.f32 %v7673_v39, %v7316_v11 }
 0x5be   : > { %v2728_v43 = vmul.f32 %v7673_v39, %v7322_v0  ;;  %v2730_v58 = vmul.f32 %v7673_v39, %v7330_v26  ;;  %v2791_v2 = vmul.f32 %v7671_v28, %v2716_v48  ;;  %v7796_v12 = vadd.f32 %v7677_v6, %v2787_v25 }
 0x5bf   : > { %v7799_v9 = vadd.f32 %v7677_v6, %v2789_v14  ;;  %v2793_v11 = vmul.f32 %v7671_v28, %v2718_v56  ;;  %v7811_v26 = vmul.f32 %v7671_v28, %v2720_v44  ;;  %v7815_v47 = vrot.slane %v7668_v3, %v9459_v22 }
 0x5c0   : > { %v7818_v48 = vmul.f32 %v7671_v28, %v2722_v34  ;;  %v7821_v25 = vmul.f32 %v7671_v28, %v2724_v8  ;;  %v7824_v14 = vmul.f32 %v7671_v28, %v2726_v10  ;;  %v7827_v56 = vmul.f32 %v7671_v28, %v2728_v43 }
 0x5c1   : > { %v2926_v44 = vmax.f32 %v7796_v12, 0.0  ;;  %v2928_v3 = vmax.f32 %v7799_v9, 0.0  ;;  %v7844_v43 = vadd.f32 %v7677_v6, %v2793_v11  ;;  %v9463_v11 = vld [vmem:[#allocation30_spill] sm:$0xff] }
 0x5c2   : > { %9461 = vst [vmem:[#allocation33_spill] sm:$0xff] %v7827_v56 }
 0x5c4   : > { %v7778_v19 = vpop.eup %4860 }
 0x5c5   : > { %v2775_v61 = vmul.f32 %v7778_v19, %v7654_v16  ;;  %v7808_v16 = vmul.f32 %v7673_v39, %v7336_v5  ;;  %v7830_v5 = vmul.f32 %v7671_v28, %v2730_v58  ;;  %v2713_v34 = vmul.f32 %v7778_v19, %v7342_v33 }
 0x5c6   : > { %v2715_v8 = vmul.f32 %v7778_v19, %v7346_v62  ;;  %v2717_v10 = vmul.f32 %v7778_v19, %v7362_v63  ;;  %v2719_v58 = vmul.f32 %v7778_v19, %v7376_v31  ;;  %v2721_v12 = vmul.f32 %v7778_v19, %v7386_v27 }
 0x5c7   : > { %v7802_v32 = vmul.f32 %v7774_v15, %v2775_v61  ;;  %9460 = vst [vmem:[#allocation32_spill] sm:$0xff] %v7808_v16  ;;  %9462 = vst [vmem:[#allocation34_spill] sm:$0xff] %v7830_v5  ;;  %v7835_v61 = vadd.f32 %v7677_v6, %v2791_v2  ;;  %v2723_v2 = vmul.f32 %v7778_v19, %v7398_v23 }
 0x5c8   : > { %v2725_v33 = vmul.f32 %v7778_v19, %v7410_v20  ;;  %v2727_v62 = vmul.f32 %v7778_v19, %v7422_v60  ;;  %v2749_v63 = vmul.f32 %v7778_v19, %v7554_v4  ;;  %v2751_v9 = vmul.f32 %v7778_v19, %v7566_v35 }
 0x5c9   : > { %v2753_v31 = vmul.f32 %v7778_v19, %v7578_v29  ;;  %v2755_v27 = vmul.f32 %v7778_v19, %v7590_v59  ;;  %v2757_v23 = vmul.f32 %v7778_v19, %v7598_v37  ;;  %v2759_v20 = vmul.f32 %v7778_v19, %v7606_v51 }
 0x5ca   : > { %v2761_v60 = vmul.f32 %v7778_v19, %v7612_v17  ;;  %v2763_v4 = vmul.f32 %v7778_v19, %v9463_v11  ;;  %v2765_v35 = vmul.f32 %v7778_v19, %v7624_v30  ;;  %v2767_v29 = vmul.f32 %v7778_v19, %v7630_v1 }
 0x5cb   : > { %v2769_v59 = vmul.f32 %v7778_v19, %v7636_v36  ;;  %v2771_v37 = vmul.f32 %v7778_v19, %v7642_v40  ;;  %v2773_v51 = vmul.f32 %v7778_v19, %v7648_v38  ;;  %v2788_v17 = vmul.f32 %v7774_v15, %v2713_v34 }
 0x5cc   : > { %v2790_v0 = vmul.f32 %v7774_v15, %v2715_v8  ;;  %v2792_v11 = vmul.f32 %v7774_v15, %v2717_v10  ;;  %v2794_v30 = vmul.f32 %v7774_v15, %v2719_v58  ;;  %v2796_v22 = vmul.f32 %v7774_v15, %v2721_v12 }
 0x5cd   : > { %v7888_v1 = vmul.f32 %v7774_v15, %v2749_v63  ;;  %v7891_v36 = vmul.f32 %v7774_v15, %v2751_v9  ;;  %v7894_v40 = vmul.f32 %v7774_v15, %v2753_v31  ;;  %v7897_v38 = vmul.f32 %v7774_v15, %v2755_v27 }
 0x5ce   : > { %v7900_v34 = vmul.f32 %v7774_v15, %v2757_v23  ;;  %v7903_v8 = vmul.f32 %v7774_v15, %v2759_v20  ;;  %v7906_v10 = vmul.f32 %v7774_v15, %v2761_v60  ;;  %v7909_v58 = vmul.f32 %v7774_v15, %v2763_v4 }
 0x5cf   : > { %v7912_v12 = vmul.f32 %v7774_v15, %v2765_v35  ;;  %v7915_v63 = vmul.f32 %v7774_v15, %v2767_v29  ;;  %v7918_v9 = vmul.f32 %v7774_v15, %v2769_v59  ;;  %v7921_v31 = vmul.f32 %v7774_v15, %v2771_v37  ;;  %v9464_v35 = vld [vmem:[#allocation24_spill] sm:$0xff] }
 0x5d0   : > { %v7924_v27 = vmul.f32 %v7774_v15, %v2773_v51  ;;  %v2863_v23 = vadd.f32 %v7815_v47, %v2788_v17  ;;  %v2865_v20 = vadd.f32 %v7815_v47, %v2790_v0  ;;  %v2867_v60 = vadd.f32 %v7815_v47, %v2792_v11  ;;  %v9465_v17 = vld [vmem:[#allocation25_spill] sm:$0xff] }
 0x5d1   : > { %v2869_v4 = vadd.f32 %v7815_v47, %v2794_v30  ;;  %v2729_v29 = vmul.f32 %v7778_v19, %v9464_v35  ;;  %v2798_v59 = vmul.f32 %v7774_v15, %v2723_v2  ;;  %v2800_v28 = vmul.f32 %v7774_v15, %v2725_v33 }
 0x5d2   : > { %v2802_v37 = vmul.f32 %v7774_v15, %v2727_v62  ;;  %v2927_v16 = vmax.f32 %v2863_v23, 0.0  ;;  %v2929_v51 = vmax.f32 %v2865_v20, 0.0  ;;  %v2931_v5 = vmax.f32 %v2867_v60, 0.0 }
 0x5d3   : > { %v2933_v56 = vmax.f32 %v2869_v4, 0.0  ;;  %v2731_v0 = vmul.f32 %v7778_v19, %v9465_v17  ;;  %v2978_v11 = vmax.f32 %v7751_v18, 0.0  ;;  %v2870_v30 = vadd.f32 %v7677_v6, %v7811_v26 }
 0x5d4   : > { %v2872_v35 = vadd.f32 %v7677_v6, %v7818_v48  ;;  %v3022_v2 = vpack.c.bf16 %v2928_v3, %v2926_v44  ;;  %v3023_v39 = vpack.c.bf16 %v2929_v51, %v2927_v16  ;;  %v2930_v33 = vmax.f32 %v7835_v61, 0.0 }
 0x5d5   : > { %v2871_v62 = vadd.f32 %v7815_v47, %v2796_v22  ;;  %v2804_v23 = vmul.f32 %v7774_v15, %v2729_v29  ;;  %v2873_v20 = vadd.f32 %v7815_v47, %v2798_v59  ;;  %v2875_v60 = vadd.f32 %v7815_v47, %v2800_v28  ;;  %v9466_v22 = vld [vmem:[#allocation46_spill] sm:$0xff] }
 0x5d6   : > { %v2877_v4 = vadd.f32 %v7815_v47, %v2802_v37  ;;  %3189 = vmatprep.mubr.bf16.mxu0 %v3023_v39  ;;  %v3025_v17 = vpack.c.bf16 %v2933_v56, %v2931_v5  ;;  %v2932_v26 = vmax.f32 %v7844_v43, 0.0  ;;  %v7951_v48 = vadd.f32 %v7677_v6, %v7821_v25  ;;  %v9467_v39 = vld [vmem:[#allocation26_spill] sm:$0xff] }
 0x5d7   : > { %v7955_v16 = vadd.f32 %v7677_v6, %v7824_v14  ;;  %v2733_v44 = vmul.f32 %v7778_v19, %v9466_v22  ;;  %v2806_v3 = vmul.f32 %v7774_v15, %v2731_v0  ;;  %3190 = vmatmul.mubr.bf16.vlgmr.msra.gmra.mxu0 %v3022_v2  ;;  %v2934_v28 = vmax.f32 %v2870_v30, 0.0 }
 0x5d8   : > { %v2936_v61 = vmax.f32 %v2872_v35, 0.0  ;;  %v2735_v56 = vmul.f32 %v7778_v19, %v9467_v39  ;;  %v2980_v5 = vmax.f32 %v7754_v46, 0.0  ;;  %v2982_v25 = vmax.f32 %v7757_v45, 0.0  ;;  %3197 = vmatprep.mubr.bf16.mxu0 %v3025_v17  ;;  %v9469_v45 = vld [vmem:[#allocation41_spill] sm:$0xff] }
 0x5d9   : > { %v2935_v43 = vmax.f32 %v2871_v62, 0.0  ;;  %v2937_v29 = vmax.f32 %v2873_v20, 0.0  ;;  %v2939_v14 = vmax.f32 %v2875_v60, 0.0  ;;  %v2941_v59 = vmax.f32 %v2877_v4, 0.0 }
 0x5da   : > { %v7965_v37 = vadd.f32 %v7815_v47, %v2804_v23  ;;  %v2984_v51 = vmax.f32 %v7760_v53, 0.0  ;;  %v2986_v0 = vmax.f32 %v7763_v7, 0.0  ;;  %v3024_v30 = vpack.c.bf16 %v2932_v26, %v2930_v33 }
 0x5db   : > { %v2938_v35 = vmax.f32 %v7951_v48, 0.0  ;;  %v7971_v2 = vmul.f32 %v7774_v15, %v2733_v44  ;;  %v3026_v22 = vpack.c.bf16 %v2936_v61, %v2934_v28  ;;  %v2940_v17 = vmax.f32 %v7955_v16, 0.0 }
 0x5dc   : > { %v7975_v62 = vadd.f32 %v7815_v47, %v2806_v3  ;;  %v7978_v20 = vmul.f32 %v7774_v15, %v2735_v56  ;;  %v2894_v23 = vadd.f32 %v7677_v6, %v7716_v13  ;;  %v2896_v33 = vadd.f32 %v7677_v6, %v7719_v54 }
 0x5dd   : > { %v2899_v60 = vadd.f32 %v7815_v47, %v7888_v1  ;;  %v3027_v4 = vpack.c.bf16 %v2937_v29, %v2935_v43  ;;  %v3029_v26 = vpack.c.bf16 %v2941_v59, %v2939_v14  ;;  %v2943_v44 = vmax.f32 %v7965_v37, 0.0 }
 0x5de   : > { %v2901_v3 = vadd.f32 %v7815_v47, %v7891_v36  ;;  %v2958_v28 = vmax.f32 %v2894_v23, 0.0  ;;  %v2960_v61 = vmax.f32 %v2896_v33, 0.0  ;;  %v2898_v56 = vadd.f32 %v7677_v6, %v7722_v50 }
 0x5df   : > { %v2963_v39 = vmax.f32 %v2899_v60, 0.0  ;;  %3198 = vmatmul.mubr.bf16.gmra.mxu0 %v3024_v30  ;;  %v2945_v13 = vmax.f32 %v7975_v62, 0.0  ;;  %v2900_v1 = vadd.f32 %v7677_v6, %v7725_v21  ;;  %v2903_v43 = vadd.f32 %v7815_v47, %v7894_v40 }
 0x5e0   : > { %v2965_v54 = vmax.f32 %v2901_v3, 0.0  ;;  %3205 = vmatprep.mubr.bf16.mxu0 %v3027_v4  ;;  %v7996_v29 = vpack.c.bf16 %v2960_v61, %v2958_v28  ;;  %v2962_v36 = vmax.f32 %v2898_v56, 0.0  ;;  %v2905_v14 = vadd.f32 %v7815_v47, %v7897_v38 }
 0x5e1   : > { %v2902_v50 = vadd.f32 %v7677_v6, %v7728_v41  ;;  %v2964_v30 = vmax.f32 %v2900_v1, 0.0  ;;  %v2967_v23 = vmax.f32 %v2903_v43, 0.0  ;;  %v2904_v21 = vadd.f32 %v7677_v6, %v7731_v52 }
 0x5e2   : > { %v8002_v59 = vpack.c.bf16 %v2965_v54, %v2963_v39  ;;  %v2969_v33 = vmax.f32 %v2905_v14, 0.0  ;;  %v2907_v40 = vadd.f32 %v7815_v47, %v7900_v34  ;;  %v2909_v4 = vadd.f32 %v7815_v47, %v7903_v8 }
 0x5e3   : > { %v2966_v60 = vmax.f32 %v2902_v50, 0.0  ;;  %v8010_v3 = vpack.c.bf16 %v2964_v30, %v2962_v36  ;;  %v2968_v38 = vmax.f32 %v2904_v21, 0.0  ;;  %v2906_v41 = vadd.f32 %v7677_v6, %v7734_v49 }
 0x5e4   : > { %v2908_v28 = vadd.f32 %v7677_v6, %v7737_v57  ;;  %v8016_v61 = vpack.c.bf16 %v2969_v33, %v2967_v23  ;;  %v2971_v52 = vmax.f32 %v2907_v40, 0.0  ;;  %v2973_v39 = vmax.f32 %v2909_v4, 0.0  ;;  %v9470_v40 = vld [vmem:[#allocation40_spill] sm:$0xff]  ;;  %v9472_v4 = vld [vmem:[#allocation34_spill] sm:$0xff] }
 0x5e5   : > { %v2911_v56 = vadd.f32 %v7815_v47, %v7906_v10  ;;  %v8020_v34 = vpack.c.bf16 %v2968_v38, %v2966_v60  ;;  %v2970_v54 = vmax.f32 %v2906_v41, 0.0  ;;  %v2913_v1 = vadd.f32 %v7815_v47, %v7909_v58  ;;  %v9473_v41 = vld [vmem:[#allocation47_spill] sm:$0xff] }
 0x5e6   : > { %v2972_v8 = vmax.f32 %v2908_v28, 0.0  ;;  %v8024_v43 = vpack.c.bf16 %v2973_v39, %v2971_v52  ;;  %v2910_v57 = vadd.f32 %v7677_v6, %v7740_v55  ;;  %v2912_v36 = vadd.f32 %v7677_v6, %v7743_v24 }
 0x5e7   : > { %v2975_v49 = vmax.f32 %v2911_v56, 0.0  ;;  %3206 = vmatmul.mubr.bf16.gmra.mxu0 %v3026_v22  ;;  %v2977_v10 = vmax.f32 %v2913_v1, 0.0  ;;  %v2915_v50 = vadd.f32 %v7815_v47, %v7912_v12  ;;  %v2917_v30 = vadd.f32 %v7815_v47, %v7915_v63 }
 0x5e8   : > { %v8030_v14 = vpack.c.bf16 %v2972_v8, %v2970_v54  ;;  %3213 = vmatprep.mubr.bf16.mxu0 %v3029_v26  ;;  %v2974_v58 = vmax.f32 %v2910_v57, 0.0  ;;  %v2976_v23 = vmax.f32 %v2912_v36, 0.0  ;;  %v8040_v55 = vpack.c.bf16 %v2980_v5, %v2978_v11  ;;  %v9478_v57 = vld [vmem:[#allocation43_spill] sm:$0xff] }
 0x5e9   : > { %v2919_v24 = vadd.f32 %v7815_v47, %v7918_v9  ;;  %v8044_v22 = vpack.c.bf16 %v2977_v10, %v2975_v49  ;;  %v2979_v21 = vmax.f32 %v2915_v50, 0.0  ;;  %v2981_v33 = vmax.f32 %v2917_v30, 0.0  ;;  %v9477_v49 = vld [vmem:[#allocation42_spill] sm:$0xff]  ;;  %v9479_v10 = vld [vmem:[#allocation48_spill] sm:$0xff] }
 0x5ea   : > { %v2921_v12 = vadd.f32 %v7815_v47, %v7921_v31  ;;  %v8048_v63 = vpack.c.bf16 %v2976_v23, %v2974_v58  ;;  %v8054_v18 = vpack.c.bf16 %v2984_v51, %v2982_v25  ;;  %v2923_v46 = vadd.f32 %v7815_v47, %v7924_v27  ;;  %v9471_v25 = vld [vmem:[#allocation33_spill] sm:$0xff] }
 0x5eb   : > { %v2983_v26 = vmax.f32 %v2919_v24, 0.0  ;;  %v8058_v9 = vpack.c.bf16 %v2981_v33, %v2979_v21  ;;  %v2925_v5 = vadd.f32 %v7815_v47, %v7802_v32  ;;  %v9468_v31 = vmax.f32 %v7683_v42, 0.0  ;;  %v9480_v24 = vld [vmem:[#allocation28_spill] sm:$0xff] }
 0x5ec   : > { %v2985_v11 = vmax.f32 %v2921_v12, 0.0  ;;  %v2734_v53 = vmul.f32 %v9470_v40, %v9469_v45  ;;  %v2878_v51 = vadd.f32 %v7677_v6, %v9471_v25  ;;  %v2880_v27 = vadd.f32 %v7677_v6, %v9472_v4  ;;  %v9481_v4 = vld [vmem:[#allocation44_spill] sm:$0xff] }
 0x5ed   : > { %v8066_v60 = vpack.c.bf16 %v9468_v31, %v2986_v0  ;;  %v2987_v38 = vmax.f32 %v2923_v46, 0.0  ;;  %v2737_v28 = vmul.f32 %v7778_v19, %v9473_v41  ;;  %v3028_v42 = vpack.c.bf16 %v2940_v17, %v2938_v35  ;;  %v9474_v0 = vld [vmem:[#allocation27_spill] sm:$0xff]  ;;  %v9475_v35 = vld [vmem:[#allocation32_spill] sm:$0xff] }
 0x5ee   : > { %v8080_v7 = vpack.c.bf16 %v2985_v11, %v2983_v26  ;;  %v2989_v32 = vmax.f32 %v2925_v5, 0.0  ;;  %v2739_v52 = vmul.f32 %v7778_v19, %v9474_v0  ;;  %v3031_v39 = vpack.c.bf16 %v2945_v13, %v2943_v44  ;;  %v9476_v17 = vld [vmem:[#allocation31_spill] sm:$0xff] }
 0x5ef   : > { %v2883_v56 = vadd.f32 %v7815_v47, %v7971_v2  ;;  %v2885_v48 = vadd.f32 %v7815_v47, %v7978_v20  ;;  %3214 = vmatmul.mubr.bf16.gmra.mxu0 %v3028_v42  ;;  %v2807_v54 = vmul.f32 %v9476_v17, %v9475_v35  ;;  %v2809_v8 = vmul.f32 %v9476_v17, %v2734_v53 }
 0x5f0   : > { %v8092_v16 = vpack.c.bf16 %v2989_v32, %v2987_v38  ;;  %3221 = vmatprep.mubr.bf16.mxu0 %v3031_v39  ;;  %v2942_v1 = vmax.f32 %v2878_v51, 0.0  ;;  %v2944_v37 = vmax.f32 %v2880_v27, 0.0  ;;  %v2812_v62 = vmul.f32 %v7774_v15, %v2737_v28  ;;  %v9482_v38 = vld [vmem:[#allocation45_spill] sm:$0xff] }
 0x5f1   : > { %v2814_v44 = vmul.f32 %v7774_v15, %v2739_v52  ;;  %v2947_v13 = vmax.f32 %v2883_v56, 0.0  ;;  %v2949_v2 = vmax.f32 %v2885_v48, 0.0  ;;  %v2736_v20 = vmul.f32 %v9470_v40, %v9477_v49  ;;  %v9483_v28 = vld [vmem:[#allocation49_spill] sm:$0xff] }
 0x5f2   : > { %v2738_v36 = vmul.f32 %v9470_v40, %v9478_v57  ;;  %v2741_v50 = vmul.f32 %v7778_v19, %v9479_v10  ;;  %v3030_v30 = vpack.c.bf16 %v2944_v37, %v2942_v1  ;;  %v2882_v58 = vadd.f32 %v7677_v6, %v2807_v54  ;;  %v9484_v39 = vld [vmem:[#allocation29_spill] sm:$0xff] }
 0x5f3   : > { %v2884_v23 = vadd.f32 %v7677_v6, %v2809_v8  ;;  %v2743_v21 = vmul.f32 %v7778_v19, %v9480_v24  ;;  %v3033_v33 = vpack.c.bf16 %v2949_v2, %v2947_v13  ;;  %v2887_v12 = vadd.f32 %v7815_v47, %v2812_v62 }
 0x5f4   : > { %v2889_v26 = vadd.f32 %v7815_v47, %v2814_v44  ;;  %v2811_v46 = vmul.f32 %v9476_v17, %v2736_v20  ;;  %v2813_v11 = vmul.f32 %v9476_v17, %v2738_v36  ;;  %v2946_v5 = vmax.f32 %v2882_v58, 0.0 }
 0x5f5   : > { %v2948_v31 = vmax.f32 %v2884_v23, 0.0  ;;  %v2816_v45 = vmul.f32 %v7774_v15, %v2741_v50  ;;  %v2818_v53 = vmul.f32 %v7774_v15, %v2743_v21  ;;  %v2951_v25 = vmax.f32 %v2887_v12, 0.0  ;;  %v4928_v12 = vld [vmem:[%s5392_s23 + $0x10] sm:$0xff] }
 0x5f6   : > { %v2953_v51 = vmax.f32 %v2889_v26, 0.0  ;;  %v2740_v27 = vmul.f32 %v9470_v40, %v9481_v4  ;;  %v2742_v41 = vmul.f32 %v9470_v40, %v9482_v38  ;;  %v2745_v42 = vmul.f32 %v7778_v19, %v9483_v28  ;;  %v4930_v38 = vld [vmem:[%s5392_s23 + $0x20] sm:$0xff] }
 0x5f7   : > { %3222 = vmatmul.mubr.bf16.gmra.mxu0 %v3030_v30  ;;  %v3032_v32 = vpack.c.bf16 %v2948_v31, %v2946_v5  ;;  %v2886_v0 = vadd.f32 %v7677_v6, %v2811_v46  ;;  %v2888_v52 = vadd.f32 %v7677_v6, %v2813_v11  ;;  %v2747_v56 = vmul.f32 %v7778_v19, %v9484_v39 }
 0x5f8   : > { %3229 = vmatprep.mubr.bf16.mxu0 %v3033_v33  ;;  %v3035_v48 = vpack.c.bf16 %v2953_v51, %v2951_v25  ;;  %v2891_v35 = vadd.f32 %v7815_v47, %v2816_v45  ;;  %v2893_v54 = vadd.f32 %v7815_v47, %v2818_v53  ;;  %v2815_v40 = vmul.f32 %v9476_v17, %v2740_v27  ;;  %v4929_v45 = vld [vmem:[%s5392_s23 + $0x18] sm:$0xff] }
 0x5f9   : > { %v2817_v8 = vmul.f32 %v9476_v17, %v2742_v41  ;;  %v2950_v1 = vmax.f32 %v2886_v0, 0.0  ;;  %v2952_v37 = vmax.f32 %v2888_v52, 0.0  ;;  %v2820_v62 = vmul.f32 %v7774_v15, %v2745_v42  ;;  %v4931_v52 = vld [vmem:[%s5392_s23 + $0x28] sm:$0xff] }
 0x5fa   : > { %v2822_v44 = vmul.f32 %v7774_v15, %v2747_v56  ;;  %v2955_v13 = vmax.f32 %v2891_v35, 0.0  ;;  %v2957_v2 = vmax.f32 %v2893_v54, 0.0  ;;  %v2890_v49 = vadd.f32 %v7677_v6, %v2815_v40  ;;  %v4932_v40 = vld [vmem:[%s5392_s23 + $0x30] sm:$0xff] }
 0x5fb   : > { %v3034_v19 = vpack.c.bf16 %v2952_v37, %v2950_v1  ;;  %v2892_v20 = vadd.f32 %v7677_v6, %v2817_v8  ;;  %v2895_v36 = vadd.f32 %v7815_v47, %v2820_v62  ;;  %v5146_v6 = vmov 0.0  }
 0x5fc   : > { %v3037_v57 = vpack.c.bf16 %v2957_v2, %v2955_v13  ;;  %v2897_v10 = vadd.f32 %v7815_v47, %v2822_v44  ;;  %v2954_v17 = vmax.f32 %v2890_v49, 0.0  ;;  %3616 = vmatprep.subr.mxu1 %v5146_v6  ;;  %v4933_v13 = vld [vmem:[%s5392_s23 + $0x38] sm:$0xff] }
 0x5fd   : > { %v2956_v50 = vmax.f32 %v2892_v20, 0.0  ;;  %v2959_v30 = vmax.f32 %v2895_v36, 0.0  ;;  %v4934_v36 = vld [vmem:[%s5392_s23 + $0x40] sm:$0xff] }
 0x5fe   : > { %v2961_v58 = vmax.f32 %v2897_v10, 0.0 }
 0x5ff   : > { %3230 = vmatmul.mubr.bf16.gmra.mxu0 %v3032_v32  ;;  %v3036_v23 = vpack.c.bf16 %v2956_v50, %v2954_v17 }
 0x600   : > { %3237 = vmatprep.mubr.bf16.mxu0 %v3035_v48  ;;  %v3039_v15 = vpack.c.bf16 %v2961_v58, %v2959_v30  ;;  %v3382_v58 = vld [vmem:[%s677_s28] sm:$0x3] }
 0x607   : > { %3238 = vmatmul.mubr.bf16.gmra.mxu0 %v3034_v19 }
 0x608   : > { %3245 = vmatprep.mubr.bf16.mxu0 %v3037_v57 }
 0x60f   : > { %3246 = vmatmul.mubr.bf16.gmra.mxu0 %v3036_v23 }
 0x610   : > { %3253 = vmatprep.mubr.bf16.mxu0 %v3039_v15  ;;  %v9486_v15 = vld [vmem:[#allocation23_spill] sm:$0xff] }
 0x617   : > { %3254 = vmatmul.mubr.bf16.gmra.mxu0 %v7996_v29  ;;  %v8154_v29 = vld [vmem:[%s9263_s17] ss:$0 sm:$0xff] }
 0x618   : > { %3261 = vmatprep.mubr.bf16.mxu0 %v8002_v59 }
 0x61f   : > { %3262 = vmatmul.mubr.bf16.gmra.mxu0 %v8010_v3 }
 0x620   : > { %3269 = vmatprep.mubr.bf16.mxu0 %v8016_v61 }
 0x627   : > { %3270 = vmatmul.mubr.bf16.gmra.mxu0 %v8020_v34 }
 0x628   : > { %3277 = vmatprep.mubr.bf16.mxu0 %v8024_v43 }
 0x62f   : > { %3278 = vmatmul.mubr.bf16.gmra.mxu0 %v8030_v14  ;;  %v4926_v14 = vld [vmem:[%s5392_s23] sm:$0xff] }
 0x630   : > { %3285 = vmatprep.mubr.bf16.mxu0 %v8044_v22 }
 0x637   : > { %3286 = vmatmul.mubr.bf16.gmra.mxu0 %v8048_v63 }
 0x638   : > { %3293 = vmatprep.mubr.bf16.mxu0 %v8058_v9 }
 0x63f   : > { %3294 = vmatmul.mubr.bf16.gmra.mxu0 %v8040_v55 }
 0x640   : > { %3301 = vmatprep.mubr.bf16.mxu0 %v8080_v7 }
 0x647   : > { %3302 = vmatmul.mubr.bf16.gmra.mxu0 %v8054_v18 }
 0x648   : > { %3309 = vmatprep.mubr.bf16.mxu0 %v8092_v16 }
 0x64f   : > { %3310 = vmatmul.mubr.bf16.gmra.mxu0 %v8066_v60  ;;  %v4927_v60 = vld [vmem:[%s5392_s23 + $0x8] sm:$0xff] }
 0x697   : > { %v4519_v47 = vpop.f32.mrf.mxu0 }
 0x699   : > { %v4520_v59 = vpop.f32.mrf.mxu0 }
 0x69a   : > { %v4521_v3 = vadd.f32 %v4520_v59, %v4519_v47  ;;  %v8220_v47 = vrot.slane %v3382_v58, %v9486_v15  ;;  %v4935_v59 = vld [vmem:[%s5392_s23 + $0x48] sm:$0xff] }
 0x69b   : > { %v4522_v61 = vpop.f32.mrf.mxu0 }
 0x69c   : > { %v3192_v34 = vadd.f32 %v4521_v3, %v8154_v29 }
 0x69d   : > { %v4523_v43 = vpop.f32.mrf.mxu0 }
 0x69e   : > { %v8158_v55 = vadd.f32 %v4926_v14, %v3192_v34  ;;  %v4524_v22 = vadd.f32 %v4523_v43, %v4522_v61  ;;  %v9487_v43 = vld [vmem:[#allocation21_spill] sm:$0xff] }
 0x69f   : > { %v4525_v63 = vpop.f32.mrf.mxu0  ;;  %vm3425_vm1 = vcmp.eq.s32.totalorder %v9487_v43, %v8220_v47 }
 0x6a0   : > { %3350 = vst [vmem:[%s8161_s27] sm:$0xff] %v8158_v55  ;;  %v3195_v18 = vadd.f32 %v4524_v22, %v8154_v29  ;;  %v5147_v22 = vmov 1.0  }
 0x6a1   : > { %v4526_v9 = vpop.f32.mrf.mxu0  ;;  %4384 = vmatprep.mubr.msk.f32.mxu1 %vm3425_vm1, %v5147_v22 }
 0x6a2   : > { %v8167_v7 = vadd.f32 %v4927_v60, %v3195_v18  ;;  %v4527_v16 = vadd.f32 %v4526_v9, %v4525_v63  ;;  %v4936_v18 = vld [vmem:[%s5392_s23 + $0x50] sm:$0xff] }
 0x6a3   : > { %v4528_v24 = vpop.f32.mrf.mxu0 }
 0x6a4   : > { %3351 = vst [vmem:[%s8161_s27 + $0x8] sm:$0xff] %v8167_v7  ;;  %v3200_v21 = vadd.f32 %v4527_v16, %v8154_v29 }
 0x6a5   : > { %v4529_v33 = vpop.f32.mrf.mxu0 }
 0x6a6   : > { %v8173_v26 = vadd.f32 %v4928_v12, %v3200_v21  ;;  %v4530_v46 = vadd.f32 %v4529_v33, %v4528_v24  ;;  %v4937_v33 = vld [vmem:[%s5392_s23 + $0x58] sm:$0xff] }
 0x6a7   : > { %v4531_v11 = vpop.f32.mrf.mxu0 }
 0x6a8   : > { %3352 = vst [vmem:[%s8161_s27 + $0x10] sm:$0xff] %v8173_v26  ;;  %v3203_v5 = vadd.f32 %v4530_v46, %v8154_v29 }
 0x6a9   : > { %v4532_v31 = vpop.f32.mrf.mxu0 }
 0x6aa   : > { %v8179_v53 = vadd.f32 %v4929_v45, %v3203_v5  ;;  %v4533_v25 = vadd.f32 %v4532_v31, %v4531_v11  ;;  %v4938_v45 = vld [vmem:[%s5392_s23 + $0x60] sm:$0xff] }
 0x6ab   : > { %v4534_v51 = vpop.f32.mrf.mxu0 }
 0x6ac   : > { %3353 = vst [vmem:[%s8161_s27 + $0x18] sm:$0xff] %v8179_v53  ;;  %v3208_v4 = vadd.f32 %v4533_v25, %v8154_v29 }
 0x6ad   : > { %v4535_v27 = vpop.f32.mrf.mxu0 }
 0x6ae   : > { %v8185_v41 = vadd.f32 %v4930_v38, %v3208_v4  ;;  %v4536_v28 = vadd.f32 %v4535_v27, %v4534_v51 }
 0x6af   : > { %v4537_v42 = vpop.f32.mrf.mxu0 }
 0x6b0   : > { %3354 = vst [vmem:[%s8161_s27 + $0x20] sm:$0xff] %v8185_v41  ;;  %v3211_v32 = vadd.f32 %v4536_v28, %v8154_v29  ;;  %v4939_v28 = vld [vmem:[%s5392_s23 + $0x68] sm:$0xff] }
 0x6b1   : > { %v4538_v0 = vpop.f32.mrf.mxu0 }
 0x6b2   : > { %v8191_v39 = vadd.f32 %v4931_v52, %v3211_v32  ;;  %v4539_v56 = vadd.f32 %v4538_v0, %v4537_v42 }
 0x6b3   : > { %v4540_v48 = vpop.f32.mrf.mxu0 }
 0x6b4   : > { %3355 = vst [vmem:[%s8161_s27 + $0x28] sm:$0xff] %v8191_v39  ;;  %v3216_v35 = vadd.f32 %v4539_v56, %v8154_v29 }
 0x6b5   : > { %v4541_v54 = vpop.f32.mrf.mxu0 }
 0x6b6   : > { %v8197_v8 = vadd.f32 %v4932_v40, %v3216_v35  ;;  %v4542_v1 = vadd.f32 %v4541_v54, %v4540_v48  ;;  %v4940_v48 = vld [vmem:[%s5392_s23 + $0x70] sm:$0xff] }
 0x6b7   : > { %v4543_v37 = vpop.f32.mrf.mxu0 }
 0x6b8   : > { %3356 = vst [vmem:[%s8161_s27 + $0x30] sm:$0xff] %v8197_v8  ;;  %v3219_v62 = vadd.f32 %v4542_v1, %v8154_v29 }
 0x6b9   : > { %v4544_v44 = vpop.f32.mrf.mxu0 }
 0x6ba   : > { %v8203_v2 = vadd.f32 %v4933_v13, %v3219_v62  ;;  %v4545_v19 = vadd.f32 %v4544_v44, %v4543_v37  ;;  %v4941_v62 = vld [vmem:[%s5392_s23 + $0x78] sm:$0xff] }
 0x6bb   : > { %v4546_v49 = vpop.f32.mrf.mxu0 }
 0x6bc   : > { %3357 = vst [vmem:[%s8161_s27 + $0x38] sm:$0xff] %v8203_v2  ;;  %v3224_v20 = vadd.f32 %v4545_v19, %v8154_v29 }
 0x6bd   : > { %v4547_v57 = vpop.f32.mrf.mxu0 }
 0x6be   : > { %v8211_v10 = vadd.f32 %v4934_v36, %v3224_v20  ;;  %v4548_v17 = vadd.f32 %v4547_v57, %v4546_v49  ;;  %v4942_v57 = vld [vmem:[%s5392_s23 + $0x80] sm:$0xff] }
 0x6bf   : > { %v4549_v50 = vpop.f32.mrf.mxu0 }
 0x6c0   : > { %3358 = vst [vmem:[%s8161_s27 + $0x40] sm:$0xff] %v8211_v10  ;;  %v3227_v30 = vadd.f32 %v4548_v17, %v8154_v29 }
 0x6c1   : > { %v4550_v23 = vpop.f32.mrf.mxu0 }
 0x6c2   : > { %v8223_v3 = vadd.f32 %v4935_v59, %v3227_v30  ;;  %v4551_v61 = vadd.f32 %v4550_v23, %v4549_v50  ;;  %v9488_v50 = vld [vmem:[#allocation22_spill] sm:$0xff] }
 0x6c3   : > { %v4552_v34 = vpop.f32.mrf.mxu0  ;;  %v8260_v30 = vrot.slane %v3382_v58, %v9488_v50 }
 0x6c4   : > { %3359 = vst [vmem:[%s8161_s27 + $0x48] sm:$0xff] %v8223_v3  ;;  %v3232_v14 = vadd.f32 %v4551_v61, %v8154_v29  ;;  %v8268_v61 = vadd.s32 8, %v9487_v43 }
 0x6c5   : > { %v4553_v63 = vpop.f32.mrf.mxu0  ;;  %vm3424_vm2 = vcmp.eq.s32.totalorder %v9487_v43, %v8260_v30 }
 0x6c6   : > { %v8235_v9 = vadd.f32 %v4936_v18, %v3232_v14  ;;  %v4554_v60 = vadd.f32 %v4553_v63, %v4552_v34  ;;  %v4943_v34 = vld [vmem:[%s5392_s23 + $0x88] sm:$0xff]  ;;  %v4320_v18 = vsel %vm3424_vm2, 1.0, %v5146_v6  ;;  %vm3427_vm3 = vcmp.eq.s32.totalorder %v8268_v61, %v8220_v47 }
 0x6c7   : > { %v4555_v16 = vpop.f32.mrf.mxu0  ;;  %vm3426_vm4 = vcmp.eq.s32.totalorder %v8268_v61, %v8260_v30 }
 0x6c8   : > { %3360 = vst [vmem:[%s8161_s27 + $0x50] sm:$0xff] %v8235_v9  ;;  %v3235_v24 = vadd.f32 %v4554_v60, %v8154_v29  ;;  %v4321_v60 = vsel %vm3425_vm1, 1.0, %v5146_v6 }
 0x6c9   : > { %v4556_v21 = vpop.f32.mrf.mxu0 }
 0x6ca   : > { %v3329_v12 = vadd.f32 %v4937_v33, %v3235_v24  ;;  %v4557_v46 = vadd.f32 %v4556_v21, %v4555_v16  ;;  %v3841_v24 = vadd.f32 %v4321_v60, %v4320_v18  ;;  %v8291_v33 = vadd.s32 16, %v9487_v43 }
 0x6cb   : > { %v4558_v11 = vpop.f32.mrf.mxu0 }
 0x6cc   : > { %3361 = vst [vmem:[%s8161_s27 + $0x58] sm:$0xff] %v3329_v12  ;;  %v3240_v5 = vadd.f32 %v4557_v46, %v8154_v29  ;;  %v4944_v46 = vld [vmem:[%s5392_s23 + $0x90] sm:$0xff]  ;;  %3842 = vadd.xlane.f32.xlu0 %v3841_v24  ;;  %vm3429_vm5 = vcmp.eq.s32.totalorder %v8291_v33, %v8220_v47  ;;  %vm3428_vm6 = vcmp.eq.s32.totalorder %v8291_v33, %v8260_v30  ;;  %v4949_v24 = vld [vmem:[%s5392_s23 + $0xb8] sm:$0xff] }
 0x6cd   : > { %v4559_v31 = vpop.f32.mrf.mxu0 }
 0x6ce   : > { %v3330_v25 = vadd.f32 %v4938_v45, %v3240_v5  ;;  %v4560_v51 = vadd.f32 %v4559_v31, %v4558_v11  ;;  %v4322_v31 = vsel %vm3426_vm4, 1.0, %v5146_v6  ;;  %v4323_v45 = vsel %vm3427_vm3, 1.0, %v5146_v6 }
 0x6cf   : > { %v4561_v4 = vpop.f32.mrf.mxu0 }
 0x6d0   : > { %3362 = vst [vmem:[%s8161_s27 + $0x60] sm:$0xff] %v3330_v25  ;;  %v3243_v27 = vadd.f32 %v4560_v51, %v8154_v29 }
 0x6d1   : > { %v4562_v38 = vpop.f32.mrf.mxu0 }
 0x6d2   : > { %v3331_v42 = vadd.f32 %v4939_v28, %v3243_v27  ;;  %v4563_v32 = vadd.f32 %v4562_v38, %v4561_v4  ;;  %v8316_v4 = vadd.s32 24, %v9487_v43  ;;  %v4945_v27 = vld [vmem:[%s5392_s23 + $0x98] sm:$0xff] }
 0x6d3   : > { %v4564_v0 = vpop.f32.mrf.mxu0 }
 0x6d4   : > { %3363 = vst [vmem:[%s8161_s27 + $0x68] sm:$0xff] %v3331_v42  ;;  %v3248_v52 = vadd.f32 %v4563_v32, %v8154_v29  ;;  %v4325_v32 = vsel %vm3429_vm5, 1.0, %v5146_v6  ;;  %vm3431_vm7 = vcmp.eq.s32.totalorder %v8316_v4, %v8220_v47  ;;  %vm3430_vm8 = vcmp.eq.s32.totalorder %v8316_v4, %v8260_v30 }
 0x6d5   : > { %v4565_v56 = vpop.f32.mrf.mxu0 }
 0x6d6   : > { %v3332_v35 = vadd.f32 %v4940_v48, %v3248_v52  ;;  %v4566_v54 = vadd.f32 %v4565_v56, %v4564_v0  ;;  %v8341_v56 = vadd.s32 32, %v9487_v43  ;;  %v4946_v48 = vld [vmem:[%s5392_s23 + $0xa0] sm:$0xff] }
 0x6d7   : > { %v4567_v40 = vpop.f32.mrf.mxu0 }
 0x6d8   : > { %3364 = vst [vmem:[%s8161_s27 + $0x70] sm:$0xff] %v3332_v35  ;;  %v3251_v1 = vadd.f32 %v4566_v54, %v8154_v29  ;;  %vm3433_vm9 = vcmp.eq.s32.totalorder %v8341_v56, %v8220_v47  ;;  %vm9358_vm10 = vcmp.eq.s32.totalorder %v8341_v56, %v8260_v30 }
 0x6d9   : > { %v4568_v37 = vpop.f32.mrf.mxu0 }
 0x6da   : > { %v3333_v44 = vadd.f32 %v4941_v62, %v3251_v1  ;;  %v4569_v13 = vadd.f32 %v4568_v37, %v4567_v40  ;;  %v4326_v40 = vsel %vm3430_vm8, 1.0, %v5146_v6  ;;  %v4327_v1 = vsel %vm3431_vm7, 1.0, %v5146_v6 }
 0x6db   : > { %v4570_v19 = vpop.f32.mrf.mxu0  ;;  %v3850_v37 = vadd.f32 %v4327_v1, %v4326_v40 }
 0x6dc   : > { %3365 = vst [vmem:[%s8161_s27 + $0x78] sm:$0xff] %v3333_v44  ;;  %v3256_v49 = vadd.f32 %v4569_v13, %v8154_v29  ;;  %3617 = vmatpush1.msra.mxu1 %v3333_v44  ;;  %v8366_v44 = vadd.s32 40, %v9487_v43  ;;  %v4947_v13 = vld [vmem:[%s5392_s23 + $0xa8] sm:$0xff] }
 0x6dd   : > { %v4571_v20 = vpop.f32.mrf.mxu0  ;;  %3618 = vmatprep.subr.mxu1 %v5146_v6 }
 0x6de   : > { %v8257_v36 = vadd.f32 %v4942_v57, %v3256_v49  ;;  %v4572_v17 = vadd.f32 %v4571_v20, %v4570_v19  ;;  %3619 = vmatpush1.msra.mxu1 %v3332_v35  ;;  %v4328_v20 = vsel %vm9358_vm10, 1.0, %v5146_v6  ;;  %v4329_v57 = vsel %vm3433_vm9, 1.0, %v5146_v6 }
 0x6df   : > { %v4573_v23 = vpop.f32.mrf.mxu0  ;;  %3620 = vmatprep.subr.mxu1 %v5146_v6  ;;  %vm9357_vm11 = vcmp.eq.s32.totalorder %v8366_v44, %v8220_v47  ;;  %vm9356_vm12 = vcmp.eq.s32.totalorder %v8366_v44, %v8260_v30 }
 0x6e0   : > { %3366 = vst [vmem:[%s8161_s27 + $0x80] sm:$0xff] %v8257_v36  ;;  %v3259_v15 = vadd.f32 %v4572_v17, %v8154_v29  ;;  %3621 = vmatpush1.msra.mxu1 %v3331_v42  ;;  %v4324_v42 = vsel %vm3428_vm6, 1.0, %v5146_v6  ;;  %v3853_v17 = vadd.f32 %v4329_v57, %v4328_v20  ;;  %v8486_v57 = vadd.s32 80, %v9487_v43 }
 0x6e1   : > { %v4574_v59 = vpop.f32.mrf.mxu0  ;;  %3622 = vmatprep.subr.mxu1 %v5146_v6  ;;  %v3847_v0 = vadd.f32 %v4325_v32, %v4324_v42 }
 0x6e2   : > { %v8271_v14 = vadd.f32 %v4943_v34, %v3259_v15  ;;  %v4575_v58 = vadd.f32 %v4574_v59, %v4573_v23  ;;  %3623 = vmatpush1.msra.mxu1 %v3330_v25  ;;  %v3844_v25 = vadd.f32 %v4323_v45, %v4322_v31  ;;  %v8391_v23 = vadd.s32 48, %v9487_v43  ;;  %v4948_v15 = vld [vmem:[%s5392_s23 + $0xb0] sm:$0xff] }
 0x6e3   : > { %v4576_v63 = vpop.f32.mrf.mxu0  ;;  %3624 = vmatprep.subr.mxu1 %v5146_v6  ;;  %3848 = vadd.xlane.f32.xlu1 %v3847_v0 }
 0x6e4   : > { %3367 = vst [vmem:[%s8161_s27 + $0x88] sm:$0xff] %v8271_v14  ;;  %v3264_v16 = vadd.f32 %v4575_v58, %v8154_v29  ;;  %3625 = vmatpush1.msra.mxu1 %v3329_v12  ;;  %3845 = vadd.xlane.f32.xlu0 %v3844_v25  ;;  %v4330_v58 = vsel %vm9356_vm12, 1.0, %v5146_v6  ;;  %vm9353_vm13 = vcmp.eq.s32.totalorder %v8391_v23, %v8220_v47 }
 0x6e5   : > { %v4577_v21 = vpop.f32.mrf.mxu0  ;;  %3626 = vmatprep.subr.mxu1 %v5146_v6  ;;  %vm9338_vm14 = vcmp.eq.s32.totalorder %v8391_v23, %v8260_v30 }
 0x6e6   : > { %v8294_v11 = vadd.f32 %v4944_v46, %v3264_v16  ;;  %v4578_v5 = vadd.f32 %v4577_v21, %v4576_v63  ;;  %3627 = vmatpush1.msra.mxu1 %v8235_v9  ;;  %v4331_v63 = vsel %vm9357_vm11, 1.0, %v5146_v6  ;;  %v8416_v16 = vadd.s32 56, %v9487_v43 }
 0x6e7   : > { %v4579_v12 = vpop.f32.mrf.mxu0  ;;  %3628 = vmatprep.subr.mxu1 %v5146_v6  ;;  %3851 = vadd.xlane.f32.xlu1 %v3850_v37  ;;  %v3856_v18 = vadd.f32 %v4331_v63, %v4330_v58  ;;  %v8500_v58 = vadd.s32 88, %v9487_v43  ;;  %v4953_v63 = vld [vmem:[%s5392_s23 + $0xd8] sm:$0xff] }
 0x6e8   : > { %3368 = vst [vmem:[%s8161_s27 + $0x90] sm:$0xff] %v8294_v11  ;;  %v3267_v9 = vadd.f32 %v4578_v5, %v8154_v29  ;;  %3629 = vmatpush1.msra.mxu1 %v8223_v3  ;;  %3854 = vadd.xlane.f32.xlu0 %v3853_v17  ;;  %v4332_v5 = vsel %vm9338_vm14, 1.0, %v5146_v6  ;;  %vm9327_vm15 = vcmp.eq.s32.totalorder %v8416_v16, %v8220_v47 }
 0x6e9   : > { %v4580_v51 = vpop.f32.mrf.mxu0  ;;  %3630 = vmatprep.subr.mxu1 %v5146_v6  ;;  %vm9326_vm0 = vcmp.eq.s32.totalorder %v8416_v16, %v8260_v30  ;;  %v4335_v42 = vsel %vm9327_vm15, 1.0, %v5146_v6 }
 0x6ea   : > { %v8319_v38 = vadd.f32 %v4945_v27, %v3267_v9  ;;  %v4581_v28 = vadd.f32 %v4580_v51, %v4579_v12  ;;  %3631 = vmatpush1.msra.mxu1 %v8211_v10  ;;  %v4333_v12 = vsel %vm9353_vm13, 1.0, %v5146_v6  ;;  %v4950_v9 = vld [vmem:[%s5392_s23 + $0xc0] sm:$0xff]  ;;  %v8444_v27 = vadd.s32 64, %v9487_v43 }
 0x6eb   : > { %v4582_v3 = vpop.f32.mrf.mxu0  ;;  %3632 = vmatprep.subr.mxu1 %v5146_v6  ;;  %3857 = vadd.xlane.f32.xlu1 %v3856_v18  ;;  %v3859_v31 = vadd.f32 %v4333_v12, %v4332_v5 }
 0x6ec   : > { %3369 = vst [vmem:[%s8161_s27 + $0x98] sm:$0xff] %v8319_v38  ;;  %v3272_v10 = vadd.f32 %v4581_v28, %v8154_v29  ;;  %3633 = vmatpush1.msra.mxu1 %v8203_v2  ;;  %vm9331_vm1 = vcmp.eq.s32.totalorder %v8444_v27, %v8220_v47 }
 0x6ed   : > { %v4583_v52 = vpop.f32.mrf.mxu0  ;;  %3634 = vmatprep.subr.mxu1 %v5146_v6  ;;  %3860 = vadd.xlane.f32.xlu0 %v3859_v31 }
 0x6ee   : > { %v8344_v35 = vadd.f32 %v4946_v48, %v3272_v10  ;;  %v4584_v54 = vadd.f32 %v4583_v52, %v4582_v3  ;;  %3635 = vmatpush1.msra.mxu1 %v8197_v8  ;;  %v4334_v3 = vsel %vm9326_vm0, 1.0, %v5146_v6  ;;  %v8458_v52 = vadd.s32 72, %v9487_v43  ;;  %v4951_v48 = vld [vmem:[%s5392_s23 + $0xc8] sm:$0xff] }
 0x6ef   : > { %v4585_v2 = vpop.f32.mrf.mxu0  ;;  %3636 = vmatprep.subr.mxu1 %v5146_v6  ;;  %v3862_v10 = vadd.f32 %v4335_v42, %v4334_v3  ;;  %vm9328_vm0 = vcmp.eq.s32.totalorder %v8444_v27, %v8260_v30 }
 0x6f0   : > { %3370 = vst [vmem:[%s8161_s27 + $0xa0] sm:$0xff] %v8344_v35  ;;  %v3275_v8 = vadd.f32 %v4584_v54, %v8154_v29  ;;  %3637 = vmatpush1.msra.mxu1 %v8191_v39  ;;  %v4336_v1 = vsel %vm9328_vm0, 1.0, %v5146_v6  ;;  %vm9330_vm15 = vcmp.eq.s32.totalorder %v8458_v52, %v8220_v47  ;;  %vm9329_vm0 = vcmp.eq.s32.totalorder %v8458_v52, %v8260_v30 }
 0x6f1   : > { %v4586_v62 = vpop.f32.mrf.mxu0  ;;  %3638 = vmatprep.subr.mxu1 %v5146_v6  ;;  %3863 = vadd.xlane.f32.xlu1 %v3862_v10  ;;  %v4338_v17 = vsel %vm9329_vm0, 1.0, %v5146_v6  ;;  %vm9334_vm0 = vcmp.eq.s32.totalorder %v8486_v57, %v8220_v47 }
 0x6f2   : > { %v8369_v19 = vadd.f32 %v4947_v13, %v3275_v8  ;;  %v4587_v49 = vadd.f32 %v4586_v62, %v4585_v2  ;;  %3639 = vmatpush1.msra.mxu1 %v8185_v41  ;;  %v4337_v8 = vsel %vm9331_vm1, 1.0, %v5146_v6  ;;  %vm9335_vm1 = vcmp.eq.s32.totalorder %v8500_v58, %v8220_v47 }
 0x6f3   : > { %v4588_v39 = vpop.f32.mrf.mxu0  ;;  %3640 = vmatprep.subr.mxu1 %v5146_v6  ;;  %v3865_v62 = vadd.f32 %v4337_v8, %v4336_v1  ;;  %v4343_v3 = vsel %vm9335_vm1, 1.0, %v5146_v6 }
 0x6f4   : > { %3371 = vst [vmem:[%s8161_s27 + $0xa8] sm:$0xff] %v8369_v19  ;;  %v3280_v41 = vadd.f32 %v4587_v49, %v8154_v29  ;;  %3641 = vmatpush1.msra.mxu1 %v8179_v53  ;;  %v4952_v49 = vld [vmem:[%s5392_s23 + $0xd0] sm:$0xff] }
 0x6f5   : > { %v4589_v50 = vpop.f32.mrf.mxu0  ;;  %3642 = vmatprep.subr.mxu1 %v5146_v6  ;;  %3866 = vadd.xlane.f32.xlu0 %v3865_v62 }
 0x6f6   : > { %v8394_v59 = vadd.f32 %v4948_v15, %v3280_v41  ;;  %v4590_v34 = vadd.f32 %v4589_v50, %v4588_v39  ;;  %3643 = vmatpush1.msra.mxu1 %v8173_v26  ;;  %v4339_v50 = vsel %vm9330_vm15, 1.0, %v5146_v6  ;;  %vm9332_vm15 = vcmp.eq.s32.totalorder %v8486_v57, %v8260_v30 }
 0x6f7   : > { %v4591_v53 = vpop.f32.mrf.mxu0  ;;  %3644 = vmatprep.subr.mxu1 %v5146_v6 }
 0x6f8   : > { %3372 = vst [vmem:[%s8161_s27 + $0xb0] sm:$0xff] %v8394_v59  ;;  %v3283_v26 = vadd.f32 %v4590_v34, %v8154_v29  ;;  %3645 = vmatpush1.msra.mxu1 %v8167_v7  ;;  %v3868_v34 = vadd.f32 %v4339_v50, %v4338_v17  ;;  %v8562_v50 = vadd.s32 112, %v9487_v43 }
 0x6f9   : > { %v4592_v60 = vpop.f32.mrf.mxu0  ;;  %3646 = vmatprep.subr.mxu1 %v5146_v6 }
 0x6fa   : > { %v8419_v21 = vadd.f32 %v4949_v24, %v3283_v26  ;;  %v4593_v46 = vadd.f32 %v4592_v60, %v4591_v53  ;;  %3647 = vmatpush1.msra.mxu1 %v8158_v55  ;;  %3869 = vadd.xlane.f32.xlu1 %v3868_v34  ;;  %v4340_v24 = vsel %vm9332_vm15, 1.0, %v5146_v6  ;;  %vm9333_vm15 = vcmp.eq.s32.totalorder %v8500_v58, %v8260_v30 }
 0x6fb   : > { %v4594_v7 = vpop.f32.mrf.mxu0  ;;  %3648 = vmatprep.subr.mxu1 %v5146_v6  ;;  %vm9341_vm14 = vcmp.eq.s32.totalorder %v8562_v50, %v8260_v30 }
 0x6fc   : > { %3373 = vst [vmem:[%s8161_s27 + $0xb8] sm:$0xff] %v8419_v21  ;;  %v3288_v55 = vadd.f32 %v4593_v46, %v8154_v29  ;;  %v4341_v46 = vsel %vm9334_vm0, 1.0, %v5146_v6 }
 0x6fd   : > { %v4595_v45 = vpop.f32.mrf.mxu0  ;;  %v3871_v5 = vadd.f32 %v4341_v46, %v4340_v24  ;;  %v8580_v24 = vadd.s32 120, %v9487_v43  ;;  %v4348_v46 = vsel %vm9341_vm14, 1.0, %v5146_v6 }
 0x6fe   : > { %v8439_v25 = vadd.f32 %v4950_v9, %v3288_v55  ;;  %v4596_v51 = vadd.f32 %v4595_v45, %v4594_v7  ;;  %v4954_v55 = vld [vmem:[%s5392_s23 + $0xe0] sm:$0xff]  ;;  %v8526_v9 = vadd.s32 96, %v9487_v43 }
 0x6ff   : > { %v4597_v28 = vpop.f32.mrf.mxu0  ;;  %3872 = vadd.xlane.f32.xlu0 %v3871_v5  ;;  %v8597_v5 = vadd.s32 128, %v9487_v43 }
 0x700   : > { %3374 = vst [vmem:[%s8161_s27 + $0xc0] sm:$0xff] %v8439_v25  ;;  %v3291_v32 = vadd.f32 %v4596_v51, %v8154_v29  ;;  %vm9336_vm0 = vcmp.eq.s32.totalorder %v8526_v9, %v8260_v30 }
 0x701   : > { %v4598_v0 = vpop.f32.mrf.mxu0  ;;  %v4344_v8 = vsel %vm9336_vm0, 1.0, %v5146_v6  ;;  %vm9346_vm14 = vcmp.eq.s32.totalorder %v8597_v5, %v8220_v47 }
 0x702   : > { %v8461_v54 = vadd.f32 %v4951_v48, %v3291_v32  ;;  %v4599_v2 = vadd.f32 %v4598_v0, %v4597_v28  ;;  %v4342_v28 = vsel %vm9333_vm15, 1.0, %v5146_v6  ;;  %v8539_v0 = vadd.s32 104, %v9487_v43  ;;  %v4955_v48 = vld [vmem:[%s5392_s23 + $0xe8] sm:$0xff] }
 0x703   : > { %v4600_v40 = vpop.f32.mrf.mxu0  ;;  %v3874_v32 = vadd.f32 %v4343_v3, %v4342_v28  ;;  %vm9337_vm15 = vcmp.eq.s32.totalorder %v8526_v9, %v8220_v47 }
 0x704   : > { %3375 = vst [vmem:[%s8161_s27 + $0xc8] sm:$0xff] %v8461_v54  ;;  %v3296_v37 = vadd.f32 %v4599_v2, %v8154_v29  ;;  %vm9340_vm1 = vcmp.eq.s32.totalorder %v8539_v0, %v8220_v47  ;;  %vm9339_vm0 = vcmp.eq.s32.totalorder %v8539_v0, %v8260_v30 }
 0x705   : > { %v4601_v13 = vpop.f32.mrf.mxu0  ;;  %3875 = vadd.xlane.f32.xlu1 %v3874_v32  ;;  %v4347_v34 = vsel %vm9340_vm1, 1.0, %v5146_v6  ;;  %vm9343_vm1 = vcmp.eq.s32.totalorder %v8580_v24, %v8260_v30 }
 0x706   : > { %v8481_v39 = vadd.f32 %v4952_v49, %v3296_v37  ;;  %v4602_v20 = vadd.f32 %v4601_v13, %v4600_v40  ;;  %v4345_v37 = vsel %vm9337_vm15, 1.0, %v5146_v6  ;;  %vm9342_vm15 = vcmp.eq.s32.totalorder %v8562_v50, %v8220_v47 }
 0x707   : > { %v4603_v41 = vpop.f32.mrf.mxu0  ;;  %v3877_v13 = vadd.f32 %v4345_v37, %v4344_v8  ;;  %v8688_v8 = vadd.s32 176, %v9487_v43  ;;  %v8691_v37 = vadd.s32 184, %v9487_v43 }
 0x708   : > { %3376 = vst [vmem:[%s8161_s27 + $0xd0] sm:$0xff] %v8481_v39  ;;  %v3299_v15 = vadd.f32 %v4602_v20, %v8154_v29  ;;  %v4956_v20 = vld [vmem:[%s5392_s23 + $0xf0] sm:$0xff] }
 0x709   : > { %v4604_v53 = vpop.f32.mrf.mxu0  ;;  %3878 = vadd.xlane.f32.xlu0 %v3877_v13  ;;  %vm3469_vm13 = vcmp.eq.s32.totalorder %v8688_v8, %v8220_v47  ;;  %vm9360_vm12 = vcmp.eq.s32.totalorder %v8691_v37, %v8260_v30 }
 0x70a   : > { %v8503_v26 = vadd.f32 %v4953_v63, %v3299_v15  ;;  %v4605_v18 = vadd.f32 %v4604_v53, %v4603_v41  ;;  %v4346_v15 = vsel %vm9339_vm0, 1.0, %v5146_v6  ;;  %vm9344_vm0 = vcmp.eq.s32.totalorder %v8580_v24, %v8220_v47 }
 0x70b   : > { %v4606_v60 = vpop.f32.mrf.mxu0  ;;  %v3880_v63 = vadd.f32 %v4347_v34, %v4346_v15 }
 0x70c   : > { %3377 = vst [vmem:[%s8161_s27 + $0xd8] sm:$0xff] %v8503_v26  ;;  %v3304_v7 = vadd.f32 %v4605_v18, %v8154_v29  ;;  %v4957_v18 = vld [vmem:[%s5392_s23 + $0xf8] sm:$0xff]  ;;  %s9370_s23 = sshll.u32 %s5273_s1, 12 }
 0x70d   : > { %v4607_v12 = vpop.f32.mrf.mxu0  ;;  %3881 = vadd.xlane.f32.xlu1 %v3880_v63  ;;  %s9128_s20 = scalar_lea.hbm %s9533_s12, %s9370_s23 }
 0x70e   : > { %v3346_v31 = vadd.f32 %v4954_v55, %v3304_v7  ;;  %v4608_v45 = vadd.f32 %v4607_v12, %v4606_v60  ;;  %v4350_v12 = vsel %vm9343_vm1, 1.0, %v5146_v6  ;;  %v4351_v55 = vsel %vm9344_vm0, 1.0, %v5146_v6 }
 0x70f   : > { %v4609_v51 = vpop.f32.mrf.mxu0 }
 0x710   : > { %3378 = vst [vmem:[%s8161_s27 + $0xe0] sm:$0xff] %v3346_v31  ;;  %v3307_v42 = vadd.f32 %v4608_v45, %v8154_v29  ;;  %v3886_v45 = vadd.f32 %v4351_v55, %v4350_v12 }
 0x711   : > { %v4610_v10 = vpop.f32.mrf.mxu0 }
 0x712   : > { %v3347_v2 = vadd.f32 %v4955_v48, %v3307_v42  ;;  %v4611_v40 = vadd.f32 %v4610_v10, %v4609_v51  ;;  %v8614_v51 = vadd.s32 136, %v9487_v43  ;;  %3887 = vadd.xlane.f32.xlu1 %v3886_v45  ;;  %v8633_v42 = vadd.s32 144, %v9487_v43 }
 0x713   : > { %v4612_v1 = vpop.f32.mrf.mxu0  ;;  %v8652_v10 = vadd.s32 152, %v9487_v43 }
 0x714   : > { %3379 = vst [vmem:[%s8161_s27 + $0xe8] sm:$0xff] %v3347_v2  ;;  %v3312_v62 = vadd.f32 %v4611_v40, %v8154_v29  ;;  %vm9348_vm1 = vcmp.eq.s32.totalorder %v8614_v51, %v8220_v47  ;;  %vm9347_vm0 = vcmp.eq.s32.totalorder %v8614_v51, %v8260_v30  ;;  %v8684_v40 = vadd.s32 168, %v9487_v43 }
 0x715   : > { %v4613_v49 = vpop.f32.mrf.mxu0 }
 0x716   : > { %v3348_v41 = vadd.f32 %v4956_v20, %v3312_v62  ;;  %v4614_v17 = vadd.f32 %v4613_v49, %v4612_v1  ;;  %v8733_v49 = vadd.s32 208, %v9487_v43 }
 0x718   : > { %3380 = vst [vmem:[%s8161_s27 + $0xf0] sm:$0xff] %v3348_v41  ;;  %v3315_v53 = vadd.f32 %v4614_v17, %v8154_v29  ;;  %v4349_v29 = vsel %vm9342_vm15, 1.0, %v5146_v6  ;;  %vm9345_vm15 = vcmp.eq.s32.totalorder %v8597_v5, %v8260_v30  ;;  %v4365_v17 = vsel %vm3469_vm13, 1.0, %v5146_v6 }
 0x719   : > { %v3883_v7 = vadd.f32 %v4349_v29, %v4348_v46  ;;  %v4352_v28 = vsel %vm9345_vm15, 1.0, %v5146_v6  ;;  %vm9352_vm15 = vcmp.eq.s32.totalorder %v8633_v42, %v8220_v47  ;;  %v8781_v46 = vadd.s32 224, %v9487_v43 }
 0x71a   : > { %v3349_v60 = vadd.f32 %v4957_v18, %v3315_v53  ;;  %v4366_v53 = vsel %vm9360_vm12, 1.0, %v5146_v6  ;;  %v8765_v18 = vadd.s32 216, %v9487_v43 }
 0x71b   : > { %3884 = vadd.xlane.f32.xlu0 %v3883_v7 }
 0x71c   : > { %3381 = vst [vmem:[%s8161_s27 + $0xf8] sm:$0xff] %v3349_v60  ;;  %3649 = vmatpush2.msra.mxu1 %v3349_v60  ;;  %s5148_s27 = smov [#allocation8]  }
 0x71d   : > { %3650 = vmatprep.subr.mxu1 %v5146_v6  ;;  %s5042_s26 = sshll.u32 %s5148_s27, 4  ;;  %s5043_s26 = int_to_ptr.vmem [resolvable:$false] %s5042_s26 }
 0x71e   : > { %3651 = vmatpush2.msra.mxu1 %v3348_v41  ;;  %s5044_s22 = scalar_lea.vmem %s5043_s26, 8192  ;;  %p5045_p0 = scmp.lt.s32.totalorder %s9131_s24, %s5043_s26 }
 0x71f   : > { %3652 = vmatprep.subr.mxu1 %v5146_v6  ;;  %p5046_p5 = scmp.lt.s32.totalorder %s5044_s22, %s5038_s0 }
 0x720   : > { %3653 = vmatpush2.msra.mxu1 %v3347_v2  ;;  %v8671_v2 = vadd.s32 160, %v9487_v43 }
 0x721   : > { %3654 = vmatprep.subr.mxu1 %v5146_v6  ;;  %p5047_p3 = por %p5046_p5, %p5045_p0 }
 0x722   : > { %3655 = vmatpush2.msra.mxu1 %v3346_v31  ;;  %v4353_v31 = vsel %vm9346_vm14, 1.0, %v5146_v6  ;;  %vm9351_vm14 = vcmp.eq.s32.totalorder %v8633_v42, %v8260_v30 }
 0x723   : > { %3656 = vmatprep.subr.mxu1 %v5146_v6  ;;  %v3889_v3 = vadd.f32 %v4353_v31, %v4352_v28  ;;  %v8812_v28 = vadd.s32 232, %v9487_v43  ;;  %v8819_v31 = vadd.s32 240, %v9487_v43  ;;  %p5048_p11 = pnand %p5047_p3, %p5041_p13 }
 0x724   : > { %3657 = vmatpush2.msra.mxu1 %v8503_v26  ;;  %v4354_v26 = vsel %vm9347_vm0, 1.0, %v5146_v6  ;;  %vm9350_vm0 = vcmp.eq.s32.totalorder %v8652_v10, %v8220_v47 }
 0x725   : > { %3658 = vmatprep.subr.mxu1 %v5146_v6  ;;  %3890 = vadd.xlane.f32.xlu0 %v3889_v3 }
 0x726   : > { %3659 = vmatpush2.msra.mxu1 %v8481_v39  ;;  %v4355_v39 = vsel %vm9348_vm1, 1.0, %v5146_v6  ;;  %vm9349_vm1 = vcmp.eq.s32.totalorder %v8652_v10, %v8260_v30 }
 0x727   : > { %3660 = vmatprep.subr.mxu1 %v5146_v6  ;;  %v3892_v32 = vadd.f32 %v4355_v39, %v4354_v26 }
 0x728   : > { %3661 = vmatpush2.msra.mxu1 %v8461_v54  ;;  %v4356_v54 = vsel %vm9351_vm14, 1.0, %v5146_v6  ;;  %vm3467_vm14 = vcmp.eq.s32.totalorder %v8684_v40, %v8220_v47 }
 0x729   : > { %3662 = vmatprep.subr.mxu1 %v5146_v6  ;;  %3893 = vadd.xlane.f32.xlu1 %v3892_v32  ;;  %v4363_v20 = vsel %vm3467_vm14, 1.0, %v5146_v6 }
 0x72a   : > { %3663 = vmatpush2.msra.mxu1 %v8439_v25  ;;  %v4357_v25 = vsel %vm9352_vm15, 1.0, %v5146_v6  ;;  %vm3466_vm15 = vcmp.eq.s32.totalorder %v8684_v40, %v8260_v30 }
 0x72b   : > { %3664 = vmatprep.subr.mxu1 %v5146_v6  ;;  %v3895_v48 = vadd.f32 %v4357_v25, %v4356_v54  ;;  %v8854_v25 = vadd.s32 248, %v9487_v43 }
 0x72c   : > { %3665 = vmatpush2.msra.mxu1 %v8419_v21  ;;  %v4358_v21 = vsel %vm9349_vm1, 1.0, %v5146_v6  ;;  %vm9355_vm1 = vcmp.eq.s32.totalorder %v8671_v2, %v8220_v47 }
 0x72d   : > { %3666 = vmatprep.subr.mxu1 %v5146_v6  ;;  %3896 = vadd.xlane.f32.xlu0 %v3895_v48 }
 0x72e   : > { %3667 = vmatpush2.msra.mxu1 %v8394_v59  ;;  %v4359_v59 = vsel %vm9350_vm0, 1.0, %v5146_v6  ;;  %vm9354_vm0 = vcmp.eq.s32.totalorder %v8671_v2, %v8260_v30 }
 0x72f   : > { %3668 = vmatprep.subr.mxu1 %v5146_v6  ;;  %v3898_v1 = vadd.f32 %v4359_v59, %v4358_v21  ;;  %v4360_v62 = vsel %vm9354_vm0, 1.0, %v5146_v6  ;;  %vm9359_vm0 = vcmp.eq.s32.totalorder %v8688_v8, %v8260_v30 }
 0x730   : > { %3669 = vmatpush2.msra.mxu1 %v8369_v19  ;;  %v8699_v19 = vadd.s32 192, %v9487_v43  ;;  %v4364_v41 = vsel %vm9359_vm0, 1.0, %v5146_v6 }
 0x731   : > { %3670 = vmatprep.subr.mxu1 %v5146_v6  ;;  %3899 = vadd.xlane.f32.xlu1 %v3898_v1  ;;  %v3907_v34 = vadd.f32 %v4365_v17, %v4364_v41 }
 0x732   : > { %3671 = vmatpush2.msra.mxu1 %v8344_v35  ;;  %v4361_v35 = vsel %vm9355_vm1, 1.0, %v5146_v6  ;;  %vm9361_vm1 = vcmp.eq.s32.totalorder %v8691_v37, %v8220_v47  ;;  %vm3473_vm11 = vcmp.eq.s32.totalorder %v8699_v19, %v8220_v47  ;;  %vm9362_vm10 = vcmp.eq.s32.totalorder %v8699_v19, %v8260_v30 }
 0x733   : > { %3672 = vmatprep.subr.mxu1 %v5146_v6  ;;  %v3901_v13 = vadd.f32 %v4361_v35, %v4360_v62  ;;  %v4367_v63 = vsel %vm9361_vm1, 1.0, %v5146_v6  ;;  %v4369_v60 = vsel %vm3473_vm11, 1.0, %v5146_v6  ;;  %vm3477_vm1 = vcmp.eq.s32.totalorder %v8733_v49, %v8220_v47 }
 0x734   : > { %3673 = vmatpush2.msra.mxu1 %v8319_v38  ;;  %v8723_v38 = vadd.s32 200, %v9487_v43  ;;  %v3910_v29 = vadd.f32 %v4367_v63, %v4366_v53  ;;  %v4373_v45 = vsel %vm3477_vm1, 1.0, %v5146_v6 }
 0x735   : > { %3674 = vmatprep.subr.mxu1 %v5146_v6  ;;  %3902 = vadd.xlane.f32.xlu0 %v3901_v13 }
 0x736   : > { %3675 = vmatpush2.msra.mxu1 %v8294_v11  ;;  %v4362_v11 = vsel %vm3466_vm15, 1.0, %v5146_v6  ;;  %vm3475_vm0 = vcmp.eq.s32.totalorder %v8723_v38, %v8220_v47  ;;  %vm9363_vm12 = vcmp.eq.s32.totalorder %v8723_v38, %v8260_v30 }
 0x737   : > { %3676 = vmatprep.subr.mxu1 %v5146_v6  ;;  %v3904_v15 = vadd.f32 %v4363_v20, %v4362_v11  ;;  %v4370_v7 = vsel %vm9363_vm12, 1.0, %v5146_v6  ;;  %v4371_v12 = vsel %vm3475_vm0, 1.0, %v5146_v6  ;;  %vm9365_vm12 = vcmp.eq.s32.totalorder %v8765_v18, %v8260_v30 }
 0x738   : > { %3677 = vmatpush2.msra.mxu1 %v8271_v14  ;;  %v4368_v14 = vsel %vm9362_vm10, 1.0, %v5146_v6  ;;  %vm9364_vm10 = vcmp.eq.s32.totalorder %v8733_v49, %v8260_v30  ;;  %v3916_v3 = vadd.f32 %v4371_v12, %v4370_v7  ;;  %v4374_v39 = vsel %vm9365_vm12, 1.0, %v5146_v6 }
 0x739   : > { %3678 = vmatprep.subr.mxu1 %v5146_v6  ;;  %3905 = vadd.xlane.f32.xlu1 %v3904_v15  ;;  %v4372_v55 = vsel %vm9364_vm10, 1.0, %v5146_v6  ;;  %vm3480_vm10 = vcmp.eq.s32.totalorder %v8781_v46, %v8260_v30  ;;  %vm9367_vm12 = vcmp.eq.s32.totalorder %v8812_v28, %v8260_v30 }
 0x73a   : > { %3679 = vmatpush2.msra.mxu1 %v8257_v36  ;;  %3908 = vadd.xlane.f32.xlu0 %v3907_v34  ;;  %v3913_v36 = vadd.f32 %v4369_v60, %v4368_v14  ;;  %v3919_v26 = vadd.f32 %v4373_v45, %v4372_v55  ;;  %v4376_v61 = vsel %vm3480_vm10, 1.0, %v5146_v6  ;;  %v4378_v59 = vsel %vm9367_vm12, 1.0, %v5146_v6 }
 0x73b   : > { %4385 = vmatmul.mubr.msk.f32.vlgmr.msra.gmra.mxu1 %vm3424_vm2, %v5147_v22  ;;  %vm9366_vm2 = vcmp.eq.s32.totalorder %v8765_v18, %v8220_v47  ;;  %vm9368_vm12 = vcmp.eq.s32.totalorder %v8854_v25, %v8260_v30 }
 0x73c   : > { %4386 = vmatprep.mubr.msk.f32.mxu1 %vm3427_vm3, %v5147_v22  ;;  %vm3481_vm3 = vcmp.eq.s32.totalorder %v8781_v46, %v8220_v47  ;;  %v4375_v32 = vsel %vm9366_vm2, 1.0, %v5146_v6  ;;  %vm3485_vm2 = vcmp.eq.s32.totalorder %v8819_v31, %v8220_v47  ;;  %v4382_v13 = vsel %vm9368_vm12, 1.0, %v5146_v6 }
 0x73d   : > { %3911 = vadd.xlane.f32.xlu1 %v3910_v29  ;;  %v4377_v54 = vsel %vm3481_vm3, 1.0, %v5146_v6  ;;  %v3922_v48 = vadd.f32 %v4375_v32, %v4374_v39  ;;  %v4381_v1 = vsel %vm3485_vm2, 1.0, %v5146_v6  ;;  %vm9491_vm12 = vcmp.eq.s32.totalorder %v8366_v44, %v8260_v30 }
 0x73e   : > { %3914 = vadd.xlane.f32.xlu0 %v3913_v36  ;;  %v3925_v21 = vadd.f32 %v4377_v54, %v4376_v61 }
 0x73f   : > { %4387 = vmatmul.mubr.msk.f32.gmra.mxu1 %vm3426_vm4, %v5147_v22  ;;  %vm3483_vm4 = vcmp.eq.s32.totalorder %v8812_v28, %v8220_v47 }
 0x740   : > { %4388 = vmatprep.mubr.msk.f32.mxu1 %vm3429_vm5, %v5147_v22  ;;  %vm3484_vm5 = vcmp.eq.s32.totalorder %v8819_v31, %v8260_v30  ;;  %v4379_v43 = vsel %vm3483_vm4, 1.0, %v5146_v6 }
 0x741   : > { %3917 = vadd.xlane.f32.xlu1 %v3916_v3  ;;  %v4380_v33 = vsel %vm3484_vm5, 1.0, %v5146_v6  ;;  %v3928_v62 = vadd.f32 %v4379_v43, %v4378_v59 }
 0x742   : > { %3920 = vadd.xlane.f32.xlu0 %v3919_v26  ;;  %v3931_v35 = vadd.f32 %v4381_v1, %v4380_v33 }
 0x743   : > { %4389 = vmatmul.mubr.msk.f32.gmra.mxu1 %vm3428_vm6, %v5147_v22  ;;  %vm9369_vm6 = vcmp.eq.s32.totalorder %v8854_v25, %v8220_v47 }
 0x744   : > { %4390 = vmatprep.mubr.msk.f32.mxu1 %vm3431_vm7, %v5147_v22  ;;  %v4383_v11 = vsel %vm9369_vm6, 1.0, %v5146_v6  ;;  %vm9489_vm7 = vcmp.eq.s32.totalorder %v8341_v56, %v8260_v30  ;;  %vm9495_vm6 = vcmp.eq.s32.totalorder %v8416_v16, %v8260_v30 }
 0x745   : > { %3923 = vadd.xlane.f32.xlu1 %v3922_v48  ;;  %v3934_v4 = vadd.f32 %v4383_v11, %v4382_v13 }
 0x746   : > { %3926 = vadd.xlane.f32.xlu0 %v3925_v21 }
 0x747   : > { %4391 = vmatmul.mubr.msk.f32.gmra.mxu1 %vm3430_vm8, %v5147_v22  ;;  %vm9490_vm8 = vcmp.eq.s32.totalorder %v8366_v44, %v8220_v47 }
 0x748   : > { %4392 = vmatprep.mubr.msk.f32.mxu1 %vm3433_vm9, %v5147_v22  ;;  %vm9492_vm9 = vcmp.eq.s32.totalorder %v8391_v23, %v8220_v47 }
 0x749   : > { %3929 = vadd.xlane.f32.xlu1 %v3928_v62 }
 0x74a   : > { %3932 = vadd.xlane.f32.xlu0 %v3931_v35 }
 0x74b   : > { %4393 = vmatmul.mubr.msk.f32.gmra.mxu1 %vm9489_vm7, %v5147_v22  ;;  %vm9493_vm7 = vcmp.eq.s32.totalorder %v8391_v23, %v8260_v30 }
 0x74c   : > { %4394 = vmatprep.mubr.msk.f32.mxu1 %vm9490_vm8, %v5147_v22  ;;  %vm9494_vm8 = vcmp.eq.s32.totalorder %v8416_v16, %v8220_v47 }
 0x74d   : > { %3935 = vadd.xlane.f32.xlu1 %v3934_v4 }
 0x74f   : > { %4395 = vmatmul.mubr.msk.f32.gmra.mxu1 %vm9491_vm12, %v5147_v22  ;;  %vm9496_vm12 = vcmp.eq.s32.totalorder %v8444_v27, %v8220_v47 }
 0x750   : > { %4396 = vmatprep.mubr.msk.f32.mxu1 %vm9492_vm9, %v5147_v22  ;;  %vm9497_vm9 = vcmp.eq.s32.totalorder %v8444_v27, %v8260_v30 }
 0x753   : > { %4397 = vmatmul.mubr.msk.f32.gmra.mxu1 %vm9493_vm7, %v5147_v22  ;;  %vm9498_vm7 = vcmp.eq.s32.totalorder %v8458_v52, %v8220_v47 }
 0x754   : > { %4398 = vmatprep.mubr.msk.f32.mxu1 %vm9494_vm8, %v5147_v22  ;;  %vm9499_vm8 = vcmp.eq.s32.totalorder %v8458_v52, %v8260_v30 }
 0x755   : > { %v3843_v6 = vpop.xlane.xlu0 %3842 }
 0x756   : > { %v3937_v56 = vmax.f32 %v3843_v6, 1.0 }
 0x757   : > { %4399 = vmatmul.mubr.msk.f32.gmra.mxu1 %vm9495_vm6, %v5147_v22  ;;  %vm9500_vm6 = vcmp.eq.s32.totalorder %v8486_v57, %v8220_v47 }
 0x758   : > { %4400 = vmatprep.mubr.msk.f32.mxu1 %vm9496_vm12, %v5147_v22  ;;  %vm9501_vm12 = vcmp.eq.s32.totalorder %v8486_v57, %v8260_v30  ;;  %4862 = vrcp.f32 %v3937_v56 }
 0x75b   : > { %4401 = vmatmul.mubr.msk.f32.gmra.mxu1 %vm9497_vm9, %v5147_v22  ;;  %vm9502_vm9 = vcmp.eq.s32.totalorder %v8500_v58, %v8220_v47 }
 0x75c   : > { %4402 = vmatprep.mubr.msk.f32.mxu1 %vm9498_vm7, %v5147_v22  ;;  %vm9503_vm7 = vcmp.eq.s32.totalorder %v8500_v58, %v8260_v30 }
 0x75f   : > { %4403 = vmatmul.mubr.msk.f32.gmra.mxu1 %vm9499_vm8, %v5147_v22  ;;  %vm9504_vm8 = vcmp.eq.s32.totalorder %v8526_v9, %v8220_v47 }
 0x760   : > { %4404 = vmatprep.mubr.msk.f32.mxu1 %vm9500_vm6, %v5147_v22  ;;  %vm9505_vm6 = vcmp.eq.s32.totalorder %v8526_v9, %v8260_v30 }
 0x763   : > { %4405 = vmatmul.mubr.msk.f32.gmra.mxu1 %vm9501_vm12, %v5147_v22  ;;  %vm9506_vm12 = vcmp.eq.s32.totalorder %v8539_v0, %v8220_v47 }
 0x764   : > { %4406 = vmatprep.mubr.msk.f32.mxu1 %vm9502_vm9, %v5147_v22  ;;  %vm9507_vm9 = vcmp.eq.s32.totalorder %v8539_v0, %v8260_v30 }
 0x767   : > { %4407 = vmatmul.mubr.msk.f32.gmra.mxu1 %vm9503_vm7, %v5147_v22  ;;  %vm9508_vm7 = vcmp.eq.s32.totalorder %v8562_v50, %v8220_v47 }
 0x768   : > { %4408 = vmatprep.mubr.msk.f32.mxu1 %vm9504_vm8, %v5147_v22  ;;  %vm9509_vm8 = vcmp.eq.s32.totalorder %v8562_v50, %v8260_v30 }
 0x76b   : > { %4409 = vmatmul.mubr.msk.f32.gmra.mxu1 %vm9505_vm6, %v5147_v22  ;;  %vm9510_vm6 = vcmp.eq.s32.totalorder %v8580_v24, %v8220_v47 }
 0x76c   : > { %4410 = vmatprep.mubr.msk.f32.mxu1 %vm9506_vm12, %v5147_v22  ;;  %vm9511_vm12 = vcmp.eq.s32.totalorder %v8580_v24, %v8260_v30  ;;  %v3849_v23 = vpop.xlane.xlu1 %3848 }
 0x76d   : > { %v3846_v44 = vpop.xlane.xlu0 %3845  ;;  %v3939_v27 = vmax.f32 %v3849_v23, 1.0 }
 0x76e   : > { %v3938_v16 = vmax.f32 %v3846_v44, 1.0 }
 0x76f   : > { %4411 = vmatmul.mubr.msk.f32.gmra.mxu1 %vm9507_vm9, %v5147_v22  ;;  %vm9512_vm9 = vcmp.eq.s32.totalorder %v8597_v5, %v8220_v47 }
 0x770   : > { %4412 = vmatprep.mubr.msk.f32.mxu1 %vm9508_vm7, %v5147_v22  ;;  %vm9513_vm7 = vcmp.eq.s32.totalorder %v8597_v5, %v8260_v30  ;;  %4864 = vrcp.f32 %v3938_v16  ;;  %v3852_v52 = vpop.xlane.xlu1 %3851 }
 0x771   : > { %4866 = vrcp.f32 %v3939_v27  ;;  %v3855_v57 = vpop.xlane.xlu0 %3854 }
 0x772   : > { %v3941_v58 = vmax.f32 %v3855_v57, 1.0 }
 0x773   : > { %4413 = vmatmul.mubr.msk.f32.gmra.mxu1 %vm9509_vm8, %v5147_v22  ;;  %vm9514_vm8 = vcmp.eq.s32.totalorder %v8614_v51, %v8220_v47 }
 0x774   : > { %4414 = vmatprep.mubr.msk.f32.mxu1 %vm9510_vm6, %v5147_v22  ;;  %vm9515_vm6 = vcmp.eq.s32.totalorder %v8614_v51, %v8260_v30 }
 0x776   : > { %v3861_v51 = vpop.xlane.xlu0 %3860 }
 0x777   : > { %4415 = vmatmul.mubr.msk.f32.gmra.mxu1 %vm9511_vm12, %v5147_v22  ;;  %vm9516_vm12 = vcmp.eq.s32.totalorder %v8633_v42, %v8220_v47 }
 0x778   : > { %4416 = vmatprep.mubr.msk.f32.mxu1 %vm9512_vm9, %v5147_v22  ;;  %vm9517_vm9 = vcmp.eq.s32.totalorder %v8633_v42, %v8260_v30 }
 0x77b   : > { %4417 = vmatmul.mubr.msk.f32.gmra.mxu1 %vm9513_vm7, %v5147_v22  ;;  %vm9518_vm7 = vcmp.eq.s32.totalorder %v8652_v10, %v8220_v47 }
 0x77c   : > { %4418 = vmatprep.mubr.msk.f32.mxu1 %vm9514_vm8, %v5147_v22  ;;  %vm9519_vm8 = vcmp.eq.s32.totalorder %v8652_v10, %v8260_v30 }
 0x77f   : > { %4419 = vmatmul.mubr.msk.f32.gmra.mxu1 %vm9515_vm6, %v5147_v22  ;;  %vm9520_vm6 = vcmp.eq.s32.totalorder %v8671_v2, %v8220_v47 }
 0x780   : > { %4420 = vmatprep.mubr.msk.f32.mxu1 %vm9516_vm12, %v5147_v22  ;;  %vm9521_vm12 = vcmp.eq.s32.totalorder %v8671_v2, %v8260_v30 }
 0x783   : > { %4421 = vmatmul.mubr.msk.f32.gmra.mxu1 %vm9517_vm9, %v5147_v22  ;;  %vm9522_vm9 = vcmp.eq.s32.totalorder %v8688_v8, %v8260_v30 }
 0x784   : > { %4422 = vmatprep.mubr.msk.f32.mxu1 %vm9518_vm7, %v5147_v22  ;;  %vm9523_vm7 = vcmp.eq.s32.totalorder %v8691_v37, %v8220_v47 }
 0x787   : > { %4423 = vmatmul.mubr.msk.f32.gmra.mxu1 %vm9519_vm8, %v5147_v22  ;;  %vm9528_vm8 = vcmp.eq.s32.totalorder %v8765_v18, %v8220_v47 }
 0x788   : > { %4424 = vmatprep.mubr.msk.f32.mxu1 %vm9520_vm6, %v5147_v22 }
 0x78b   : > { %4425 = vmatmul.mubr.msk.f32.gmra.mxu1 %vm9521_vm12, %v5147_v22 }
 0x78c   : > { %4426 = vmatprep.mubr.msk.f32.mxu1 %vm3467_vm14, %v5147_v22  ;;  %vm9524_vm14 = vcmp.eq.s32.totalorder %v8691_v37, %v8260_v30 }
 0x78f   : > { %4427 = vmatmul.mubr.msk.f32.gmra.mxu1 %vm3466_vm15, %v5147_v22  ;;  %vm9526_vm15 = vcmp.eq.s32.totalorder %v8723_v38, %v8260_v30 }
 0x790   : > { %4428 = vmatprep.mubr.msk.f32.mxu1 %vm3469_vm13, %v5147_v22  ;;  %vm9525_vm13 = vcmp.eq.s32.totalorder %v8699_v19, %v8260_v30 }
 0x793   : > { %4429 = vmatmul.mubr.msk.f32.gmra.mxu1 %vm9522_vm9, %v5147_v22 }
 0x794   : > { %4430 = vmatprep.mubr.msk.f32.mxu1 %vm9523_vm7, %v5147_v22 }
 0x797   : > { %4431 = vmatmul.mubr.msk.f32.gmra.mxu1 %vm9524_vm14, %v5147_v22 }
 0x798   : > { %4432 = vmatprep.mubr.msk.f32.mxu1 %vm3473_vm11, %v5147_v22  ;;  %vm9527_vm11 = vcmp.eq.s32.totalorder %v8733_v49, %v8260_v30 }
 0x79b   : > { %4433 = vmatmul.mubr.msk.f32.gmra.mxu1 %vm9525_vm13, %v5147_v22 }
 0x79c   : > { %4434 = vmatprep.mubr.msk.f32.mxu1 %vm3475_vm0, %v5147_v22  ;;  %vm9529_vm0 = vcmp.eq.s32.totalorder %v8765_v18, %v8260_v30 }
 0x79f   : > { %4435 = vmatmul.mubr.msk.f32.gmra.mxu1 %vm9526_vm15, %v5147_v22 }
 0x7a0   : > { %4436 = vmatprep.mubr.msk.f32.mxu1 %vm3477_vm1, %v5147_v22  ;;  %vm9530_vm1 = vcmp.eq.s32.totalorder %v8812_v28, %v8260_v30 }
 0x7a3   : > { %4437 = vmatmul.mubr.msk.f32.gmra.mxu1 %vm9527_vm11, %v5147_v22 }
 0x7a4   : > { %4438 = vmatprep.mubr.msk.f32.mxu1 %vm9528_vm8, %v5147_v22 }
 0x7a7   : > { %4439 = vmatmul.mubr.msk.f32.gmra.mxu1 %vm9529_vm0, %v5147_v22 }
 0x7a8   : > { %4440 = vmatprep.mubr.msk.f32.mxu1 %vm3481_vm3, %v5147_v22  ;;  %vm9532_vm3 = vcmp.eq.s32.totalorder %v8854_v25, %v8260_v30  ;;  %v3858_v30 = vpop.xlane.xlu1 %3857 }
 0x7a9   : > { %v3942_v50 = vmax.f32 %v3858_v30, 1.0 }
 0x7ab   : > { %4441 = vmatmul.mubr.msk.f32.gmra.mxu1 %vm3480_vm10, %v5147_v22  ;;  %vm9531_vm10 = vcmp.eq.s32.totalorder %v8854_v25, %v8220_v47  ;;  %v3940_v47 = vmax.f32 %v3852_v52, 1.0 }
 0x7ac   : > { %4442 = vmatprep.mubr.msk.f32.mxu1 %vm3483_vm4, %v5147_v22 }
 0x7ad   : > { %4868 = vrcp.f32 %v3940_v47 }
 0x7ae   : > { %4870 = vrcp.f32 %v3941_v58 }
 0x7af   : > { %4443 = vmatmul.mubr.msk.f32.gmra.mxu1 %vm9530_vm1, %v5147_v22 }
 0x7b0   : > { %4444 = vmatprep.mubr.msk.f32.mxu1 %vm3485_vm2, %v5147_v22 }
 0x7b3   : > { %4445 = vmatmul.mubr.msk.f32.gmra.mxu1 %vm3484_vm5, %v5147_v22 }
 0x7b4   : > { %4446 = vmatprep.mubr.msk.f32.mxu1 %vm9531_vm10, %v5147_v22 }
 0x7b7   : > { %4447 = vmatmul.mubr.msk.f32.gmra.mxu1 %vm9532_vm3, %v5147_v22  ;;  %v4863_v22 = vpop.eup %4862 }
 0x7b8   : > { %v4865_v24 = vpop.eup %4864 }
 0x7fb   : > { %v3682_v9 = vpop.f32.mrf.mxu1 }
 0x7fc   : > { %v4001_v0 = vmul.f32 %v4863_v22, %v3682_v9 }
 0x7fd   : > { %v3684_v5 = vpop.f32.mrf.mxu1 }
 0x7fe   : > { %4033 = vst [vmem:[%s9134_s25] sm:$0xff] %v4001_v0 }
 0x7ff   : > { %5051 = shalt.err (!%p5048_p11)
}
 0x800   : > { %s5052_s18 = scalar_lea.hbm %s9128_s20, 4096  ;;  %s5056_s29 = scalar_lea.hbm %s9533_s12, 8192 }
 0x801   : > { %p5053_p9 = scmp.ne.s32.totalorder %s9128_s20, %s5052_s18  ;;  %p5057_p6 = scmp.lt.s32.totalorder %s9128_s20, %s9533_s12 }
 0x802   : > { %p5058_p8 = scmp.lt.s32.totalorder %s5056_s29, %s5052_s18 }
 0x803   : > { %p5054_p1 = pnand %p5053_p9, %p9534_p7 }
 0x804   : > { %p5059_p10 = por %p5058_p8, %p5057_p6 }
 0x805   : > { %p5055_p4 = pneg %p5054_p1 }
 0x807   : > { %p5060_p2 = pnand %p5059_p10, %p5055_p4 }
 0x809   : > { %5063 = shalt.err (!%p5060_p2)
}
 0x80a   : > { %s5149_s0 = smov 128   ;;  %s5150_s26 = smov 8   ;;  %v3687_v42 = vpop.f32.mrf.mxu1  ;;  %4872 = vrcp.f32 %v3942_v50  ;;  %v3943_v2 = vmax.f32 %v3861_v51, 1.0  ;;  %v4867_v40 = vpop.eup %4866 }
 0x80b   : > { %4729 = dma.vmem_to_hbm [thread:$0]  (%p9534_p7), %s9131_s24, 4096, %s9128_s20, %s4066_s2, %s5149_s0, %s5149_s0, %s5150_s26   ;;  %v4002_v10 = vmul.f32 %v4865_v24, %v3687_v42  ;;  %v3864_v37 = vpop.xlane.xlu1 %3863  ;;  %v4869_v20 = vpop.eup %4868 }
 0x80c   : > { %v3689_v8 = vpop.f32.mrf.mxu1  ;;  %4874 = vrcp.f32 %v3943_v2  ;;  %v3944_v49 = vmax.f32 %v3864_v37, 1.0  ;;  %v3867_v17 = vpop.xlane.xlu0 %3866  ;;  %s4100_s23 = sshll.u32 %s9134_s25, 4  ;;  %s9535_s20 = sshll.u32 %s5273_s1, 12  ;;  %s9201_s23 = int_to_ptr.vmem [resolvable:$true] %s4100_s23 }
 0x80d   : > { %4034 = vst [vmem:[%s9134_s25 + $0x8] sm:$0xff] %v4002_v10  ;;  %v3945_v53 = vmax.f32 %v3867_v17, 1.0  ;;  %v4871_v63 = vpop.eup %4870  ;;  %s9536_s22 = sld [smem:[#allocation57_spill]]  ;;  %s4071_s28 = scalar_lea.sflag [#allocation10], %s5385_s3 }
 0x80e   : > { %v3692_v19 = vpop.f32.mrf.mxu1  ;;  %4876 = vrcp.f32 %v3944_v49  ;;  %s5064_s21 = scalar_lea.vmem %s9201_s23, 4096  ;;  %s5151_s29 = smov [#allocation9]  }
 0x80f   : > { %v4003_v38 = vmul.f32 %v4867_v40, %v3692_v19  ;;  %v3870_v14 = vpop.xlane.xlu1 %3869  ;;  %4878 = vrcp.f32 %v3945_v53  ;;  %p5065_p12 = scmp.ne.s32.totalorder %s9201_s23, %s5064_s21  ;;  %s5068_s1 = sshll.u32 %s5151_s29, 4  ;;  %s5069_s1 = int_to_ptr.vmem [resolvable:$false] %s5068_s1 }
 0x810   : > { %v3694_v41 = vpop.f32.mrf.mxu1  ;;  %v3946_v29 = vmax.f32 %v3870_v14, 1.0  ;;  %v3873_v12 = vpop.xlane.xlu0 %3872  ;;  %s5070_s27 = scalar_lea.vmem %s5069_s1, 8192  ;;  %p5071_p5 = scmp.lt.s32.totalorder %s9201_s23, %s5069_s1 }
 0x811   : > { %4035 = vst [vmem:[%s9134_s25 + $0x10] sm:$0xff] %v4003_v38  ;;  %v3947_v28 = vmax.f32 %v3873_v12, 1.0  ;;  %p5066_p13 = pnand %p5065_p12, %p9534_p7  ;;  %p5072_p3 = scmp.lt.s32.totalorder %s5070_s27, %s5064_s21 }
 0x812   : > { %v3697_v15 = vpop.f32.mrf.mxu1  ;;  %4880 = vrcp.f32 %v3946_v29 }
 0x813   : > { %v4004_v34 = vmul.f32 %v4869_v20, %v3697_v15  ;;  %v3876_v26 = vpop.xlane.xlu1 %3875  ;;  %4882 = vrcp.f32 %v3947_v28  ;;  %s9199_s18 = scalar_lea.hbm %s9536_s22, %s9535_s20  ;;  %p5067_p0 = pneg %p5066_p13 }
 0x814   : > { %v3699_v18 = vpop.f32.mrf.mxu1  ;;  %v3948_v61 = vmax.f32 %v3876_v26, 1.0  ;;  %v3879_v48 = vpop.xlane.xlu0 %3878  ;;  %p5073_p11 = por %p5072_p3, %p5071_p5 }
 0x815   : > { %4036 = vst [vmem:[%s9134_s25 + $0x18] sm:$0xff] %v4004_v34  ;;  %v3949_v43 = vmax.f32 %v3879_v48, 1.0 }
 0x816   : > { %v3702_v60 = vpop.f32.mrf.mxu1  ;;  %4884 = vrcp.f32 %v3948_v61  ;;  %p5074_p9 = pnand %p5073_p11, %p5067_p0 }
 0x817   : > { %v4005_v46 = vmul.f32 %v4871_v63, %v3702_v60  ;;  %v4873_v36 = vpop.eup %4872  ;;  %v3882_v62 = vpop.xlane.xlu1 %3881  ;;  %4886 = vrcp.f32 %v3949_v43 }
 0x818   : > { %v3704_v7 = vpop.f32.mrf.mxu1  ;;  %v3950_v11 = vmax.f32 %v3882_v62, 1.0  ;;  %v3885_v56 = vpop.xlane.xlu0 %3884 }
 0x819   : > { %4037 = vst [vmem:[%s9134_s25 + $0x20] sm:$0xff] %v4005_v46  ;;  %v4875_v31 = vpop.eup %4874  ;;  %v3951_v16 = vmax.f32 %v3885_v56, 1.0 }
 0x81a   : > { %v3707_v55 = vpop.f32.mrf.mxu1  ;;  %4888 = vrcp.f32 %v3950_v11 }
 0x81b   : > { %v4006_v45 = vmul.f32 %v4873_v36, %v3707_v55  ;;  %v4877_v54 = vpop.eup %4876  ;;  %v3888_v47 = vpop.xlane.xlu1 %3887  ;;  %4890 = vrcp.f32 %v3951_v16 }
 0x81c   : > { %v3709_v3 = vpop.f32.mrf.mxu1  ;;  %v4879_v33 = vpop.eup %4878  ;;  %v3952_v22 = vmax.f32 %v3888_v47, 1.0 }
 0x81d   : > { %4038 = vst [vmem:[%s9134_s25 + $0x28] sm:$0xff] %v4006_v45  ;;  %v3891_v0 = vpop.xlane.xlu0 %3890 }
 0x81e   : > { %v3712_v39 = vpop.f32.mrf.mxu1  ;;  %4892 = vrcp.f32 %v3952_v22  ;;  %v3953_v5 = vmax.f32 %v3891_v0, 1.0 }
 0x81f   : > { %v4007_v32 = vmul.f32 %v4875_v31, %v3712_v39  ;;  %v4881_v4 = vpop.eup %4880  ;;  %v3894_v10 = vpop.xlane.xlu1 %3893 }
 0x820   : > { %v3714_v25 = vpop.f32.mrf.mxu1  ;;  %v4883_v27 = vpop.eup %4882  ;;  %4894 = vrcp.f32 %v3953_v5  ;;  %v3954_v8 = vmax.f32 %v3894_v10, 1.0 }
 0x821   : > { %4039 = vst [vmem:[%s9134_s25 + $0x30] sm:$0xff] %v4007_v32  ;;  %v3897_v38 = vpop.xlane.xlu0 %3896 }
 0x822   : > { %v3717_v21 = vpop.f32.mrf.mxu1  ;;  %4896 = vrcp.f32 %v3954_v8  ;;  %v3955_v41 = vmax.f32 %v3897_v38, 1.0 }
 0x823   : > { %v4008_v59 = vmul.f32 %v4877_v54, %v3717_v21  ;;  %v4885_v30 = vpop.eup %4884  ;;  %v3900_v34 = vpop.xlane.xlu1 %3899 }
 0x824   : > { %v3719_v1 = vpop.f32.mrf.mxu1  ;;  %v4887_v51 = vpop.eup %4886  ;;  %4898 = vrcp.f32 %v3955_v41  ;;  %v3956_v18 = vmax.f32 %v3900_v34, 1.0 }
 0x825   : > { %4040 = vst [vmem:[%s9134_s25 + $0x38] sm:$0xff] %v4008_v59  ;;  %v3903_v46 = vpop.xlane.xlu0 %3902 }
 0x826   : > { %v3722_v35 = vpop.f32.mrf.mxu1  ;;  %4900 = vrcp.f32 %v3956_v18  ;;  %v3957_v7 = vmax.f32 %v3903_v46, 1.0 }
 0x827   : > { %v4009_v13 = vmul.f32 %v4879_v33, %v3722_v35  ;;  %v4889_v37 = vpop.eup %4888  ;;  %v3906_v45 = vpop.xlane.xlu1 %3905 }
 0x828   : > { %v3724_v6 = vpop.f32.mrf.mxu1  ;;  %v4891_v17 = vpop.eup %4890  ;;  %4902 = vrcp.f32 %v3957_v7  ;;  %v3958_v3 = vmax.f32 %v3906_v45, 1.0 }
 0x829   : > { %4041 = vst [vmem:[%s9134_s25 + $0x40] sm:$0xff] %v4009_v13  ;;  %v3909_v32 = vpop.xlane.xlu0 %3908 }
 0x82a   : > { %v3727_v44 = vpop.f32.mrf.mxu1  ;;  %4904 = vrcp.f32 %v3958_v3  ;;  %v3959_v25 = vmax.f32 %v3909_v32, 1.0 }
 0x82b   : > { %v4010_v23 = vmul.f32 %v4881_v4, %v3727_v44  ;;  %v4893_v14 = vpop.eup %4892  ;;  %v3912_v59 = vpop.xlane.xlu1 %3911 }
 0x82c   : > { %v3729_v52 = vpop.f32.mrf.mxu1  ;;  %4906 = vrcp.f32 %v3959_v25  ;;  %v3960_v1 = vmax.f32 %v3912_v59, 1.0 }
 0x82d   : > { %4042 = vst [vmem:[%s9134_s25 + $0x48] sm:$0xff] %v4010_v23  ;;  %v4895_v12 = vpop.eup %4894  ;;  %v3915_v13 = vpop.xlane.xlu0 %3914 }
 0x82e   : > { %v3732_v57 = vpop.f32.mrf.mxu1  ;;  %4908 = vrcp.f32 %v3960_v1  ;;  %v3961_v6 = vmax.f32 %v3915_v13, 1.0 }
 0x82f   : > { %v4011_v58 = vmul.f32 %v4883_v27, %v3732_v57  ;;  %v4897_v26 = vpop.eup %4896  ;;  %v3918_v23 = vpop.xlane.xlu1 %3917 }
 0x830   : > { %v3734_v9 = vpop.f32.mrf.mxu1  ;;  %4910 = vrcp.f32 %v3961_v6  ;;  %v3962_v52 = vmax.f32 %v3918_v23, 1.0 }
 0x831   : > { %4043 = vst [vmem:[%s9134_s25 + $0x50] sm:$0xff] %v4011_v58  ;;  %v4899_v48 = vpop.eup %4898  ;;  %v3921_v58 = vpop.xlane.xlu0 %3920 }
 0x832   : > { %v3737_v50 = vpop.f32.mrf.mxu1  ;;  %4912 = vrcp.f32 %v3962_v52  ;;  %v3963_v9 = vmax.f32 %v3921_v58, 1.0 }
 0x833   : > { %v4012_v24 = vmul.f32 %v4885_v30, %v3737_v50  ;;  %v4901_v62 = vpop.eup %4900 }
 0x834   : > { %v3739_v42 = vpop.f32.mrf.mxu1  ;;  %4914 = vrcp.f32 %v3963_v9 }
 0x835   : > { %4044 = vst [vmem:[%s9134_s25 + $0x58] sm:$0xff] %v4012_v24  ;;  %v4903_v56 = vpop.eup %4902  ;;  %v3924_v24 = vpop.xlane.xlu1 %3923 }
 0x836   : > { %v3742_v2 = vpop.f32.mrf.mxu1  ;;  %v3964_v42 = vmax.f32 %v3924_v24, 1.0 }
 0x837   : > { %v4013_v40 = vmul.f32 %v4887_v51, %v3742_v2  ;;  %v4905_v47 = vpop.eup %4904 }
 0x838   : > { %v3744_v19 = vpop.f32.mrf.mxu1  ;;  %4916 = vrcp.f32 %v3964_v42 }
 0x839   : > { %4045 = vst [vmem:[%s9134_s25 + $0x60] sm:$0xff] %v4013_v40  ;;  %v4907_v0 = vpop.eup %4906  ;;  %v3927_v40 = vpop.xlane.xlu0 %3926 }
 0x83a   : > { %v3747_v49 = vpop.f32.mrf.mxu1  ;;  %v3965_v19 = vmax.f32 %v3927_v40, 1.0 }
 0x83b   : > { %v4014_v20 = vmul.f32 %v4889_v37, %v3747_v49  ;;  %v4909_v10 = vpop.eup %4908 }
 0x83c   : > { %v3749_v15 = vpop.f32.mrf.mxu1  ;;  %4918 = vrcp.f32 %v3965_v19 }
 0x83d   : > { %4046 = vst [vmem:[%s9134_s25 + $0x68] sm:$0xff] %v4014_v20  ;;  %v4911_v38 = vpop.eup %4910  ;;  %v3930_v20 = vpop.xlane.xlu1 %3929 }
 0x83e   : > { %v3752_v53 = vpop.f32.mrf.mxu1  ;;  %v3966_v15 = vmax.f32 %v3930_v20, 1.0 }
 0x83f   : > { %v4015_v63 = vmul.f32 %v4891_v17, %v3752_v53  ;;  %v4913_v34 = vpop.eup %4912 }
 0x840   : > { %v3754_v60 = vpop.f32.mrf.mxu1  ;;  %4920 = vrcp.f32 %v3966_v15 }
 0x841   : > { %4047 = vst [vmem:[%s9134_s25 + $0x70] sm:$0xff] %v4015_v63  ;;  %v3933_v63 = vpop.xlane.xlu0 %3932  ;;  %v4915_v46 = vpop.eup %4914 }
 0x842   : > { %v3757_v29 = vpop.f32.mrf.mxu1  ;;  %v3967_v60 = vmax.f32 %v3933_v63, 1.0 }
 0x843   : > { %v4016_v36 = vmul.f32 %v4893_v14, %v3757_v29 }
 0x844   : > { %v3759_v55 = vpop.f32.mrf.mxu1  ;;  %4922 = vrcp.f32 %v3967_v60 }
 0x845   : > { %4048 = vst [vmem:[%s9134_s25 + $0x78] sm:$0xff] %v4016_v36  ;;  %v3936_v36 = vpop.xlane.xlu1 %3935  ;;  %v4917_v45 = vpop.eup %4916 }
 0x846   : > { %v3762_v28 = vpop.f32.mrf.mxu1  ;;  %v3968_v55 = vmax.f32 %v3936_v36, 1.0 }
 0x847   : > { %v4017_v31 = vmul.f32 %v4895_v12, %v3762_v28 }
 0x848   : > { %v3764_v39 = vpop.f32.mrf.mxu1  ;;  %4924 = vrcp.f32 %v3968_v55 }
 0x849   : > { %4049 = vst [vmem:[%s9134_s25 + $0x80] sm:$0xff] %v4017_v31 }
 0x84a   : > { %v3767_v61 = vpop.f32.mrf.mxu1 }
 0x84b   : > { %v4018_v54 = vmul.f32 %v4897_v26, %v3767_v61  ;;  %v4919_v26 = vpop.eup %4918 }
 0x84c   : > { %v3769_v21 = vpop.f32.mrf.mxu1 }
 0x84d   : > { %4050 = vst [vmem:[%s9134_s25 + $0x88] sm:$0xff] %v4018_v54  ;;  %v4921_v54 = vpop.eup %4920 }
 0x84e   : > { %v3772_v43 = vpop.f32.mrf.mxu1 }
 0x84f   : > { %v4019_v33 = vmul.f32 %v4899_v48, %v3772_v43 }
 0x850   : > { %v3774_v35 = vpop.f32.mrf.mxu1 }
 0x851   : > { %4051 = vst [vmem:[%s9134_s25 + $0x90] sm:$0xff] %v4019_v33  ;;  %v4923_v59 = vpop.eup %4922 }
 0x852   : > { %v3777_v11 = vpop.f32.mrf.mxu1 }
 0x853   : > { %v4020_v4 = vmul.f32 %v4901_v62, %v3777_v11 }
 0x854   : > { %v3779_v44 = vpop.f32.mrf.mxu1 }
 0x855   : > { %4052 = vst [vmem:[%s9134_s25 + $0x98] sm:$0xff] %v4020_v4  ;;  %v4925_v62 = vpop.eup %4924 }
 0x856   : > { %v3782_v16 = vpop.f32.mrf.mxu1 }
 0x857   : > { %v4021_v27 = vmul.f32 %v4903_v56, %v3782_v16 }
 0x858   : > { %v3784_v57 = vpop.f32.mrf.mxu1 }
 0x859   : > { %4053 = vst [vmem:[%s9134_s25 + $0xa0] sm:$0xff] %v4021_v27 }
 0x85a   : > { %v3787_v22 = vpop.f32.mrf.mxu1 }
 0x85b   : > { %v4022_v30 = vmul.f32 %v4905_v47, %v3787_v22 }
 0x85c   : > { %v3789_v50 = vpop.f32.mrf.mxu1 }
 0x85d   : > { %4054 = vst [vmem:[%s9134_s25 + $0xa8] sm:$0xff] %v4022_v30 }
 0x85e   : > { %v3792_v5 = vpop.f32.mrf.mxu1 }
 0x85f   : > { %v4023_v51 = vmul.f32 %v4907_v0, %v3792_v5 }
 0x860   : > { %v3794_v2 = vpop.f32.mrf.mxu1 }
 0x861   : > { %4055 = vst [vmem:[%s9134_s25 + $0xb0] sm:$0xff] %v4023_v51 }
 0x862   : > { %v3797_v8 = vpop.f32.mrf.mxu1 }
 0x863   : > { %v4024_v37 = vmul.f32 %v4909_v10, %v3797_v8 }
 0x864   : > { %v3799_v49 = vpop.f32.mrf.mxu1 }
 0x865   : > { %4056 = vst [vmem:[%s9134_s25 + $0xb8] sm:$0xff] %v4024_v37 }
 0x866   : > { %v3802_v41 = vpop.f32.mrf.mxu1 }
 0x867   : > { %v4025_v17 = vmul.f32 %v4911_v38, %v3802_v41 }
 0x868   : > { %v3804_v53 = vpop.f32.mrf.mxu1 }
 0x869   : > { %4057 = vst [vmem:[%s9134_s25 + $0xc0] sm:$0xff] %v4025_v17 }
 0x86a   : > { %v3807_v18 = vpop.f32.mrf.mxu1 }
 0x86b   : > { %v4026_v14 = vmul.f32 %v4913_v34, %v3807_v18 }
 0x86c   : > { %v3809_v29 = vpop.f32.mrf.mxu1 }
 0x86d   : > { %4058 = vst [vmem:[%s9134_s25 + $0xc8] sm:$0xff] %v4026_v14 }
 0x86e   : > { %v3812_v7 = vpop.f32.mrf.mxu1 }
 0x86f   : > { %v4027_v12 = vmul.f32 %v4915_v46, %v3812_v7 }
 0x870   : > { %v3814_v28 = vpop.f32.mrf.mxu1 }
 0x871   : > { %4059 = vst [vmem:[%s9134_s25 + $0xd0] sm:$0xff] %v4027_v12 }
 0x872   : > { %v3817_v31 = vpop.f32.mrf.mxu1 }
 0x873   : > { %v4028_v3 = vmul.f32 %v4917_v45, %v3817_v31 }
 0x874   : > { %v3819_v39 = vpop.f32.mrf.mxu1 }
 0x875   : > { %4060 = vst [vmem:[%s9134_s25 + $0xd8] sm:$0xff] %v4028_v3 }
 0x876   : > { %v3822_v32 = vpop.f32.mrf.mxu1 }
 0x877   : > { %v4029_v61 = vmul.f32 %v4919_v26, %v3822_v32 }
 0x878   : > { %v3824_v25 = vpop.f32.mrf.mxu1 }
 0x879   : > { %4061 = vst [vmem:[%s9134_s25 + $0xe0] sm:$0xff] %v4029_v61 }
 0x87a   : > { %v3827_v48 = vpop.f32.mrf.mxu1 }
 0x87b   : > { %v4030_v21 = vmul.f32 %v4921_v54, %v3827_v48 }
 0x87c   : > { %v3829_v43 = vpop.f32.mrf.mxu1 }
 0x87d   : > { %4062 = vst [vmem:[%s9134_s25 + $0xe8] sm:$0xff] %v4030_v21 }
 0x87e   : > { %v3832_v33 = vpop.f32.mrf.mxu1 }
 0x87f   : > { %v4031_v1 = vmul.f32 %v4923_v59, %v3832_v33 }
 0x880   : > { %v3834_v35 = vpop.f32.mrf.mxu1 }
 0x881   : > { %4063 = vst [vmem:[%s9134_s25 + $0xf0] sm:$0xff] %v4031_v1 }
 0x882   : > { %v3837_v13 = vpop.f32.mrf.mxu1 }
 0x883   : > { %v4032_v11 = vmul.f32 %v4925_v62, %v3837_v13 }
 0x884   : > { %v3839_v4 = vpop.f32.mrf.mxu1 }
 0x885   : > { %4064 = vst [vmem:[%s9134_s25 + $0xf8] sm:$0xff] %v4032_v11 }
 0x886   : > { %5077 = shalt.err (!%p5074_p9)
}
 0x887   : > { %s5078_s25 = scalar_lea.hbm %s9199_s18, 4096  ;;  %s5082_s24 = scalar_lea.hbm %s9536_s22, 8192 }
 0x888   : > { %p5079_p1 = scmp.ne.s32.totalorder %s9199_s18, %s5078_s25  ;;  %p5083_p8 = scmp.lt.s32.totalorder %s9199_s18, %s9536_s22 }
 0x889   : > { %p5084_p10 = scmp.lt.s32.totalorder %s5082_s24, %s5078_s25 }
 0x88a   : > { %p5080_p4 = pnand %p5079_p1, %p9534_p7 }
 0x88b   : > { %p5085_p2 = por %p5084_p10, %p5083_p8 }
 0x88c   : > { %p5081_p6 = pneg %p5080_p4 }
 0x88e   : > { %p5086_p12 = pnand %p5085_p2, %p5081_p6 }
 0x890   : > { %5089 = shalt.err (!%p5086_p12)
}
 0x891   : > { %4730 = dma.vmem_to_hbm [thread:$0]  (%p9534_p7), %s9201_s23, 4096, %s9199_s18, %s4071_s28, %s5149_s0, %s5149_s0, %s5150_s26  }
 0x892 PF: > { %s9537_s21 = sld [smem:[#allocation15_spill]] }
 0x893   : > { %s9538_s1 = sld [smem:[#allocation18_spill]] }
 0x894   : > { %s9539_s27 = sld [smem:[#allocation17_spill]] }
 0x898   : > { %s4115_s3 = sand.u32 1, %s9537_s21  }
 0x899   : > { %p9540_p13 = scmp.ne.s32.totalorder %s9538_s1, 0  ;;  %s4116_s25 = scalar_lea.sflag [#allocation4], %s4115_s3 }
 0x89a   : > { %p9541_p0 = scmp.ge.s32.totalorder %s9539_s27, 2 }
 0x89c   : > { %p4745_p5 = pnand %p9541_p0, %p9540_p13 }
 0x89e   : > { %p4746_p3 = pneg %p4745_p5 }
 0x8a0   : > { %5115 = dma.done.wait (%p4746_p3), %s4116_s25, 4096  }
 0x8a1   : > { %5117 = vsyncadd (%p4746_p3), %s4116_s25, 4294963200  ;;  %s4125_s20 = scalar_lea.sflag [#allocation10], %s4115_s3 }
 0x8a2   : > { %5119 = dma.done.wait (%p4746_p3), %s4125_s20, 4096  }
 0x8a3   : > { %5121 = vsyncadd (%p4746_p3), %s4125_s20, 4294963200  ;;  %s9542_s21 = sld [smem:[#allocation19_spill]]  ;;  %s9545_s0 = smov %s5128_s30 }
 0x8a4   : > { %s9543_s19 = sld [smem:[#allocation16_spill]] }
 0x8a5   : > { %s9544_s20 = sld [smem:[#allocation20_spill]] }
 0x8a9   : > { %p37_p7 = scmp.ge.s32.totalorder %s9542_s21, 4  }
 0x8aa   : > { %s9546_s30 = smov %s9543_s19 }
 0x8ab   :  { %39 = sbr.rel (!%p37_p7) target bundleno = 17 (0x11), region = 165 }
 0x8b0   :  { %4130 = vsyncpa [#allocation3], 1 }
 0x8b1   :  { %4132 = vsyncpa [#allocation3 + $0x1], 1 }
 0x8b2   :  { %4133 = vsyncpa [#allocation6], 1 }
 0x8b3   :  { %4134 = vsyncpa [#allocation4], 1 }
 0x8b4   :  { %4136 = vsyncpa [#allocation4 + $0x1], 1 }
 0x8b5   :  { %4137 = vsyncpa [#allocation10], 1 }
 0x8b6   :  { %4139 = vsyncpa [#allocation10 + $0x1], 1 }

</bundles_post_ra>
